<compile_context>
chip_gen: v7x
topology: tpu7x:2x2x1
jax: 0.10.0
libtpu: 0.0.40
codegen_flags: <defaults>
</compile_context>

<pallas_src>
import functools
import math

import jax
import jax.numpy as jnp
from jax.experimental import pallas as pl
from jax.experimental.pallas import tpu as pltpu

# ---------------- scaled-down BERT config ----------------
HIDDEN = 128          # stands in for the hard-coded 768 of the reference model
N_HEADS = 4
HEAD_DIM = HIDDEN // N_HEADS
FFN = 256
N_LAYERS = 2
VOCAB = 64
MAX_POS = 32
ENTITY_EMB_DIM = 64   # != HIDDEN -> exercises the fc1 projection path
N_FEATURES = 10
ATTN_SCALE = 1.0 / math.sqrt(HEAD_DIM)


# ---------------- fused transformer-encoder kernel ----------------
def _encoder_kernel(x_ref, bias_ref, embg_ref, embb_ref,
                    wqkv_ref, bqkv_ref, wo_ref, bo_ref,
                    ln1g_ref, ln1b_ref, w1_ref, b1_ref,
                    w2_ref, b2_ref, ln2g_ref, ln2b_ref,
                    o_ref, xf_scr, *, cb, seq):
    layer = pl.program_id(1)
    n_layers = pl.num_programs(1)
    m = cb * seq

    def layer_norm(x, g, b):
        mu = jnp.mean(x, axis=-1, keepdims=True)
        var = jnp.mean((x - mu) ** 2, axis=-1, keepdims=True)
        return (x - mu) * jax.lax.rsqrt(var + 1e-12) * g + b

    # ---- embedding LayerNorm (only on the first layer step of each chunk) ----
    @pl.when(layer == 0)
    def _():
        x0 = x_ref[...].reshape(m, HIDDEN).astype(jnp.float32)
        xf_scr[...] = layer_norm(x0, embg_ref[...], embb_ref[...])

    xf = xf_scr[...]                                   # (M, H) f32, VMEM resident

    # ---- fused QKV projection (bf16 MXU inputs, f32 accumulation) ----
    qkv = jnp.dot(xf.astype(jnp.bfloat16), wqkv_ref[0],
                  preferred_element_type=jnp.float32) + bqkv_ref[0]
    qkv = qkv.reshape(cb, seq, 3 * HIDDEN)
    q_all = qkv[:, :, 0 * HIDDEN:1 * HIDDEN]           # 128-aligned lane slices
    k_all = qkv[:, :, 1 * HIDDEN:2 * HIDDEN]
    v_all = qkv[:, :, 2 * HIDDEN:3 * HIDDEN]
    bias = bias_ref[...]                               # (CB, 1, S) additive mask bias

    # ---- multi-head attention, heads kept lane-packed via per-head masks ----
    lane = jax.lax.broadcasted_iota(jnp.int32, (1, 1, HIDDEN), 2)
    attn = None
    for h in range(N_HEADS):
        hmask = ((lane >= h * HEAD_DIM) &
                 (lane < (h + 1) * HEAD_DIM)).astype(jnp.float32)
        q_h = q_all * hmask                            # zero outside this head's lanes
        v_h = v_all * hmask
        s = jnp.einsum("bqd,bkd->bqk", q_h, k_all,
                       preferred_element_type=jnp.float32) * ATTN_SCALE
        s = s + bias
        s = s - jnp.max(s, axis=-1, keepdims=True)
        p = jnp.exp(s)
        p = p * pl.reciprocal(jnp.sum(p, axis=-1, keepdims=True), approx=True)
        o_h = jnp.einsum("bqk,bkd->bqd", p, v_h,
                         preferred_element_type=jnp.float32)
        attn = o_h if attn is None else attn + o_h     # heads land in disjoint lanes
    attn = attn.reshape(m, HIDDEN)

    # ---- output projection + Add&LN ----
    ao = jnp.dot(attn.astype(jnp.bfloat16), wo_ref[0],
                 preferred_element_type=jnp.float32) + bo_ref[0]
    x1 = layer_norm(ao + xf, ln1g_ref[0], ln1b_ref[0])

    # ---- FFN (gelu) + Add&LN ----
    h1 = jnp.dot(x1.astype(jnp.bfloat16), w1_ref[0],
                 preferred_element_type=jnp.float32) + b1_ref[0]
    # TODO(synk): HF BERT uses exact erf GELU; tanh approximation kept for robust lowering.
    h1 = jax.nn.gelu(h1, approximate=True)
    h2 = jnp.dot(h1.astype(jnp.bfloat16), w2_ref[0],
                 preferred_element_type=jnp.float32) + b2_ref[0]
    x2 = layer_norm(h2 + x1, ln2g_ref[0], ln2b_ref[0])

    xf_scr[...] = x2                                   # carry to next layer step

    # ---- final layer: emit hidden states (lane-dense output slab) ----
    @pl.when(layer == n_layers - 1)
    def _():
        o_ref[...] = x2.reshape(1, cb, seq, HIDDEN)


def bert_encode_stacked(x_embeds, attn_bias, bp):
    """x_embeds: (4B, S, H) already includes word/pos/type embeddings.
       attn_bias: (4B, 1, S) additive mask bias.  Returns CLS vectors (4B, H)."""
    fb, s, h = x_embeds.shape
    num_chunks = 2 if fb % 2 == 0 else 1               # parallel axis -> v7x 2nd TC
    cb = fb // num_chunks
    kernel = functools.partial(_encoder_kernel, cb=cb, seq=s)
    hidden = pl.pallas_call(
        kernel,
        out_shape=jax.ShapeDtypeStruct((num_chunks, cb, s, h), jnp.float32),
        grid_spec=pltpu.PrefetchScalarGridSpec(
            num_scalar_prefetch=0,
            grid=(num_chunks, N_LAYERS),
            in_specs=[
                pl.BlockSpec((cb, s, h), lambda c, l: (c, 0, 0)),       # embeddings
                pl.BlockSpec((cb, 1, s), lambda c, l: (c, 0, 0)),       # mask bias
                pl.BlockSpec((1, h), lambda c, l: (0, 0)),              # emb LN gamma
                pl.BlockSpec((1, h), lambda c, l: (0, 0)),              # emb LN beta
                pl.BlockSpec((1, h, 3 * h), lambda c, l: (l, 0, 0)),    # wqkv (bf16)
                pl.BlockSpec((1, 1, 3 * h), lambda c, l: (l, 0, 0)),    # bqkv
                pl.BlockSpec((1, h, h), lambda c, l: (l, 0, 0)),        # wo (bf16)
                pl.BlockSpec((1, 1, h), lambda c, l: (l, 0, 0)),        # bo
                pl.BlockSpec((1, 1, h), lambda c, l: (l, 0, 0)),        # ln1 gamma
                pl.BlockSpec((1, 1, h), lambda c, l: (l, 0, 0)),        # ln1 beta
                pl.BlockSpec((1, h, FFN), lambda c, l: (l, 0, 0)),      # w1 (bf16)
                pl.BlockSpec((1, 1, FFN), lambda c, l: (l, 0, 0)),      # b1
                pl.BlockSpec((1, FFN, h), lambda c, l: (l, 0, 0)),      # w2 (bf16)
                pl.BlockSpec((1, 1, h), lambda c, l: (l, 0, 0)),        # b2
                pl.BlockSpec((1, 1, h), lambda c, l: (l, 0, 0)),        # ln2 gamma
                pl.BlockSpec((1, 1, h), lambda c, l: (l, 0, 0)),        # ln2 beta
            ],
            out_specs=pl.BlockSpec((1, cb, s, h), lambda c, l: (c, 0, 0, 0)),
            scratch_shapes=[pltpu.VMEM((cb * s, h), jnp.float32)],
        ),
        compiler_params=pltpu.CompilerParams(
            dimension_semantics=("parallel", "arbitrary")),
    )(x_embeds, attn_bias,
      bp["emb_ln_g"], bp["emb_ln_b"],
      bp["wqkv"], bp["bqkv"], bp["wo"], bp["bo"],
      bp["ln1_g"], bp["ln1_b"], bp["w1"], bp["b1"],
      bp["w2"], bp["b2"], bp["ln2_g"], bp["ln2_b"])
    return hidden.reshape(fb, s, h)[:, 0, :]           # CLS token per stacked sequence


# ---------------- small helper kernels ----------------
def _linear_kernel(x_ref, w_ref, b_ref, o_ref):
    y = jnp.dot(x_ref[...], w_ref[...], preferred_element_type=jnp.float32) + b_ref[...]
    o_ref[...] = y.astype(o_ref.dtype)


def linear(x, w, b):
    return pl.pallas_call(
        _linear_kernel,
        out_shape=jax.ShapeDtypeStruct((x.shape[0], w.shape[1]), jnp.float32),
    )(x, w, b)


def _combine_kernel(cls_ref, feat_ref,
                    wtc_ref, wta_ref, bt_ref,
                    wec_ref, wea_ref, be_ref,
                    wf_ref, bf_ref, o_ref):
    # cls_ref: (4, B, H) ordered [ctx_text, asp_text, ctx_ent, asp_ent]
    ct, at = cls_ref[0], cls_ref[1]
    ce, ae = cls_ref[2], cls_ref[3]
    # N=1 "matmuls" done as elementwise multiply + lane reduction (no MXU underfill)
    text = jnp.sum(ct * wtc_ref[...] + at * wta_ref[...], axis=-1, keepdims=True) + bt_ref[...]
    ent = jnp.sum(ce * wec_ref[...] + ae * wea_ref[...], axis=-1, keepdims=True) + be_ref[...]
    feat = jnp.sum(feat_ref[...] * wf_ref[...], axis=-1, keepdims=True) + bf_ref[...]
    o_ref[...] = (text + ent + feat).astype(o_ref.dtype)


# ---------------- parameter init (deterministic, synthetic) ----------------
def _dense(key, shape):
    return 0.02 * jax.random.normal(key, shape, dtype=jnp.float32)


def init_bert_params(key):
    ks = jax.random.split(key, 9)
    wq = _dense(ks[0], (N_LAYERS, HIDDEN, HIDDEN))
    wk = _dense(ks[1], (N_LAYERS, HIDDEN, HIDDEN))
    wv = _dense(ks[2], (N_LAYERS, HIDDEN, HIDDEN))
    return dict(
        word_emb=_dense(ks[3], (VOCAB, HIDDEN)),
        pos_emb=_dense(ks[4], (MAX_POS, HIDDEN)),
        type_emb=_dense(ks[5], (2, HIDDEN)),
        emb_ln_g=jnp.ones((1, HIDDEN), jnp.float32),
        emb_ln_b=jnp.zeros((1, HIDDEN), jnp.float32),
        # per-layer weights stacked on a leading layer axis; matmul weights in bf16
        wqkv=jnp.concatenate([wq, wk, wv], axis=-1).astype(jnp.bfloat16),   # (L,H,3H)
        bqkv=jnp.zeros((N_LAYERS, 1, 3 * HIDDEN), jnp.float32),
        wo=_dense(ks[6], (N_LAYERS, HIDDEN, HIDDEN)).astype(jnp.bfloat16),
        bo=jnp.zeros((N_LAYERS, 1, HIDDEN), jnp.float32),
        ln1_g=jnp.ones((N_LAYERS, 1, HIDDEN), jnp.float32),
        ln1_b=jnp.zeros((N_LAYERS, 1, HIDDEN), jnp.float32),
        w1=_dense(ks[7], (N_LAYERS, HIDDEN, FFN)).astype(jnp.bfloat16),
        b1=jnp.zeros((N_LAYERS, 1, FFN), jnp.float32),
        w2=_dense(ks[8], (N_LAYERS, FFN, HIDDEN)).astype(jnp.bfloat16),
        b2=jnp.zeros((N_LAYERS, 1, HIDDEN), jnp.float32),
        ln2_g=jnp.ones((N_LAYERS, 1, HIDDEN), jnp.float32),
        ln2_b=jnp.zeros((N_LAYERS, 1, HIDDEN), jnp.float32),
    )


def init_model_params(key):
    kb, kfc1, kts, kes, kf = jax.random.split(key, 5)
    # All four encoders come from the same "pretrained" checkpoint -> shared init.
    w_text = _dense(kts, (2 * HIDDEN, 1))
    w_ent = _dense(kes, (2 * HIDDEN, 1))
    return dict(
        bert=init_bert_params(kb),
        fc1_w=_dense(kfc1, (ENTITY_EMB_DIM, HIDDEN)),
        fc1_b=jnp.zeros((1, HIDDEN), jnp.float32),
        wtc=w_text[:HIDDEN, 0][None, :], wta=w_text[HIDDEN:, 0][None, :],
        bt=jnp.zeros((1, 1), jnp.float32),
        wec=w_ent[:HIDDEN, 0][None, :], wea=w_ent[HIDDEN:, 0][None, :],
        be=jnp.zeros((1, 1), jnp.float32),
        wf=_dense(kf, (N_FEATURES, 1))[:, 0][None, :],   # (1, N_FEATURES)
        bf=jnp.zeros((1, 1), jnp.float32),
    )


# ---------------- AspectLinkModel forward ----------------
@jax.jit
def aspect_link_forward(params,
                        context_input_ids, context_attention_mask,
                        aspect_input_ids, aspect_attention_mask,
                        context_inputs_embeds, aspect_inputs_embeds,
                        aspect_features):
    bp = params["bert"]
    B, S = context_input_ids.shape
    _, Se, E = context_inputs_embeds.shape
    assert Se == S, "stacked-encoder fast path assumes equal text/entity sequence lengths"
    # TODO(synk): pad the shorter sequence set before stacking if the lengths ever differ.

    # ---- glue: embedding gathers + single fused fc1 entity projection ----
    ctx_t = jnp.take(bp["word_emb"], context_input_ids, axis=0)           # (B,S,H)
    asp_t = jnp.take(bp["word_emb"], aspect_input_ids, axis=0)
    ent_in = jnp.concatenate([context_inputs_embeds, aspect_inputs_embeds], axis=0)
    ent_proj = linear(ent_in.reshape(2 * B * Se, E),
                      params["fc1_w"], params["fc1_b"]).reshape(2 * B, Se, HIDDEN)

    # stack the four weight-sharing encoder passes: [ctx_text, asp_text, ctx_ent, asp_ent]
    x = jnp.concatenate([ctx_t, asp_t, ent_proj], axis=0)                 # (4B,S,H)
    x = x + bp["pos_emb"][:S][None, :, :] + bp["type_emb"][0][None, None, :]

    ones = jnp.ones((2 * B, S), jnp.float32)          # entity branch has no mask
    mask = jnp.concatenate([context_attention_mask.astype(jnp.float32),
                            aspect_attention_mask.astype(jnp.float32),
                            ones], axis=0)                                # (4B,S)
    bias = ((1.0 - mask) * -10000.0)[:, None, :]                          # (4B,1,S)

    cls = bert_encode_stacked(x, bias, bp)                                # (4B,H)
    # NOTE: the reference F.pad branch compares CLS hidden sizes, which are always
    # equal (both = hidden size), so it is a no-op and omitted here.

    out = pl.pallas_call(
        _combine_kernel,
        out_shape=jax.ShapeDtypeStruct((B, 1), jnp.float32),
    )(cls.reshape(4, B, HIDDEN), aspect_features.astype(jnp.float32),
      params["wtc"], params["wta"], params["bt"],
      params["wec"], params["wea"], params["be"],
      params["wf"], params["bf"])

    # final_score.squeeze(dim=1)
    return out[:, 0]


if __name__ == "__main__":
    key = jax.random.PRNGKey(0)
    k_param, k1, k2, k3, k4, k5 = jax.random.split(key, 6)
    params = init_model_params(k_param)

    B, S_TEXT, S_ENT = 2, 8, 8
    context_input_ids = jax.random.randint(k1, (B, S_TEXT), 0, VOCAB, dtype=jnp.int32)
    aspect_input_ids = jax.random.randint(k2, (B, S_TEXT), 0, VOCAB, dtype=jnp.int32)
    context_attention_mask = jnp.ones((B, S_TEXT), jnp.float32)
    aspect_attention_mask = jnp.ones((B, S_TEXT), jnp.float32).at[:, -2:].set(0.0)
    context_inputs_embeds = jax.random.normal(k3, (B, S_ENT, ENTITY_EMB_DIM), jnp.float32)
    aspect_inputs_embeds = jax.random.normal(k4, (B, S_ENT, ENTITY_EMB_DIM), jnp.float32)
    aspect_features = jax.random.normal(k5, (B, N_FEATURES), jnp.float32)

    out = aspect_link_forward(params,
                              context_input_ids, context_attention_mask,
                              aspect_input_ids, aspect_attention_mask,
                              context_inputs_embeds, aspect_inputs_embeds,
                              aspect_features)
    out = jax.block_until_ready(out)
    assert out.shape == (B,), out.shape
    assert jnp.all(jnp.isfinite(out))
    print("KERNEL_OK")
</pallas_src>

<mosaic_0001>
module attributes {stable_mosaic.version = 11 : i64} {
  func.func @_linear_kernel(%arg0: memref<32x64xf32, #tpu.memory_space<vmem>>, %arg1: memref<64x128xf32, #tpu.memory_space<vmem>>, %arg2: memref<1x128xf32, #tpu.memory_space<vmem>>, %arg3: memref<32x128xf32, #tpu.memory_space<vmem>>) attributes {dimension_semantics = [], scalar_prefetch = 0 : i64, scratch_operands = 0 : i64, tpu.core_type = #tpu.core_type<tc>} {
    %c0 = arith.constant 0 : index
    %c0_0 = arith.constant 0 : index
    %0 = vector.load %arg0[%c0, %c0_0] : memref<32x64xf32, #tpu.memory_space<vmem>>, vector<32x64xf32>
    %c0_1 = arith.constant 0 : index
    %c0_2 = arith.constant 0 : index
    %1 = vector.load %arg1[%c0_1, %c0_2] : memref<64x128xf32, #tpu.memory_space<vmem>>, vector<64x128xf32>
    %cst = arith.constant dense<0.000000e+00> : vector<32x128xf32>
    %2 = tpu.matmul %0, %1, %cst {dimension_numbers = #tpu.dot_dimension_numbers<[1], [0], [0], [1], [0, 0, 1, 1], [], []>} : vector<32x64xf32>, vector<64x128xf32>, vector<32x128xf32> -> vector<32x128xf32>
    %c0_3 = arith.constant 0 : index
    %c0_4 = arith.constant 0 : index
    %3 = vector.load %arg2[%c0_3, %c0_4] : memref<1x128xf32, #tpu.memory_space<vmem>>, vector<1x128xf32>
    %4 = vector.broadcast %3 : vector<1x128xf32> to vector<32x128xf32>
    %5 = arith.addf %2, %4 : vector<32x128xf32>
    %c0_5 = arith.constant 0 : index
    %c0_6 = arith.constant 0 : index
    %6 = vector.load %arg3[%c0_5, %c0_6] : memref<32x128xf32, #tpu.memory_space<vmem>>, vector<32x128xf32>
    tpu.vector_store %arg3[%c0_5, %c0_6], %5 {strides = array<i32>} : memref<32x128xf32, #tpu.memory_space<vmem>>, vector<32x128xf32>,
    return
  }
}

module attributes {stable_mosaic.version = 11 : i64} {
  func.func @_combine_kernel(%arg0: memref<4x2x128xf32, #tpu.memory_space<vmem>>, %arg1: memref<2x10xf32, #tpu.memory_space<vmem>>, %arg2: memref<1x128xf32, #tpu.memory_space<vmem>>, %arg3: memref<1x128xf32, #tpu.memory_space<vmem>>, %arg4: memref<1x1xf32, #tpu.memory_space<vmem>>, %arg5: memref<1x128xf32, #tpu.memory_space<vmem>>, %arg6: memref<1x128xf32, #tpu.memory_space<vmem>>, %arg7: memref<1x1xf32, #tpu.memory_space<vmem>>, %arg8: memref<1x10xf32, #tpu.memory_space<vmem>>, %arg9: memref<1x1xf32, #tpu.memory_space<vmem>>, %arg10: memref<2x1xf32, #tpu.memory_space<vmem>>) attributes {dimension_semantics = [], scalar_prefetch = 0 : i64, scratch_operands = 0 : i64, tpu.core_type = #tpu.core_type<tc>} {
    %c0 = arith.constant 0 : index
    %c0_0 = arith.constant 0 : index
    %c0_1 = arith.constant 0 : index
    %0 = vector.load %arg0[%c0, %c0_0, %c0_1] : memref<4x2x128xf32, #tpu.memory_space<vmem>>, vector<1x2x128xf32>
    %1 = vector.shape_cast %0 : vector<1x2x128xf32> to vector<2x128xf32>
    %c1 = arith.constant 1 : index
    %c0_2 = arith.constant 0 : index
    %c0_3 = arith.constant 0 : index
    %2 = vector.load %arg0[%c1, %c0_2, %c0_3] : memref<4x2x128xf32, #tpu.memory_space<vmem>>, vector<1x2x128xf32>
    %3 = vector.shape_cast %2 : vector<1x2x128xf32> to vector<2x128xf32>
    %c2 = arith.constant 2 : index
    %c0_4 = arith.constant 0 : index
    %c0_5 = arith.constant 0 : index
    %4 = vector.load %arg0[%c2, %c0_4, %c0_5] : memref<4x2x128xf32, #tpu.memory_space<vmem>>, vector<1x2x128xf32>
    %5 = vector.shape_cast %4 : vector<1x2x128xf32> to vector<2x128xf32>
    %c3 = arith.constant 3 : index
    %c0_6 = arith.constant 0 : index
    %c0_7 = arith.constant 0 : index
    %6 = vector.load %arg0[%c3, %c0_6, %c0_7] : memref<4x2x128xf32, #tpu.memory_space<vmem>>, vector<1x2x128xf32>
    %7 = vector.shape_cast %6 : vector<1x2x128xf32> to vector<2x128xf32>
    %c0_8 = arith.constant 0 : index
    %c0_9 = arith.constant 0 : index
    %8 = vector.load %arg2[%c0_8, %c0_9] : memref<1x128xf32, #tpu.memory_space<vmem>>, vector<1x128xf32>
    %9 = vector.broadcast %8 : vector<1x128xf32> to vector<2x128xf32>
    %10 = arith.mulf %1, %9 : vector<2x128xf32>
    %c0_10 = arith.constant 0 : index
    %c0_11 = arith.constant 0 : index
    %11 = vector.load %arg3[%c0_10, %c0_11] : memref<1x128xf32, #tpu.memory_space<vmem>>, vector<1x128xf32>
    %12 = vector.broadcast %11 : vector<1x128xf32> to vector<2x128xf32>
    %13 = arith.mulf %3, %12 : vector<2x128xf32>
    %14 = arith.addf %10, %13 : vector<2x128xf32>
    %cst = arith.constant dense<0.000000e+00> : vector<2xf32>
    %15 = vector.multi_reduction <add>, %14, %cst [1] : vector<2x128xf32> to vector<2xf32>
    %16 = vector.shape_cast %15 : vector<2xf32> to vector<2x1xf32>
    %c0_12 = arith.constant 0 : index
    %c0_13 = arith.constant 0 : index
    %17 = vector.load %arg4[%c0_12, %c0_13] : memref<1x1xf32, #tpu.memory_space<vmem>>, vector<1x1xf32>
    %18 = vector.broadcast %17 : vector<1x1xf32> to vector<2x1xf32>
    %19 = arith.addf %16, %18 : vector<2x1xf32>
    %c0_14 = arith.constant 0 : index
    %c0_15 = arith.constant 0 : index
    %20 = vector.load %arg5[%c0_14, %c0_15] : memref<1x128xf32, #tpu.memory_space<vmem>>, vector<1x128xf32>
    %21 = vector.broadcast %20 : vector<1x128xf32> to vector<2x128xf32>
    %22 = arith.mulf %5, %21 : vector<2x128xf32>
    %c0_16 = arith.constant 0 : index
    %c0_17 = arith.constant 0 : index
    %23 = vector.load %arg6[%c0_16, %c0_17] : memref<1x128xf32, #tpu.memory_space<vmem>>, vector<1x128xf32>
    %24 = vector.broadcast %23 : vector<1x128xf32> to vector<2x128xf32>
    %25 = arith.mulf %7, %24 : vector<2x128xf32>
    %26 = arith.addf %22, %25 : vector<2x128xf32>
    %cst_18 = arith.constant dense<0.000000e+00> : vector<2xf32>
    %27 = vector.multi_reduction <add>, %26, %cst_18 [1] : vector<2x128xf32> to vector<2xf32>
    %28 = vector.shape_cast %27 : vector<2xf32> to vector<2x1xf32>
    %c0_19 = arith.constant 0 : index
    %c0_20 = arith.constant 0 : index
    %29 = vector.load %arg7[%c0_19, %c0_20] : memref<1x1xf32, #tpu.memory_space<vmem>>, vector<1x1xf32>
    %30 = vector.broadcast %29 : vector<1x1xf32> to vector<2x1xf32>
    %31 = arith.addf %28, %30 : vector<2x1xf32>
    %c0_21 = arith.constant 0 : index
    %c0_22 = arith.constant 0 : index
    %32 = vector.load %arg1[%c0_21, %c0_22] : memref<2x10xf32, #tpu.memory_space<vmem>>, vector<2x10xf32>
    %c0_23 = arith.constant 0 : index
    %c0_24 = arith.constant 0 : index
    %33 = vector.load %arg8[%c0_23, %c0_24] : memref<1x10xf32, #tpu.memory_space<vmem>>, vector<1x10xf32>
    %34 = vector.broadcast %33 : vector<1x10xf32> to vector<2x10xf32>
    %35 = arith.mulf %32, %34 : vector<2x10xf32>
    %cst_25 = arith.constant dense<0.000000e+00> : vector<2xf32>
    %36 = vector.multi_reduction <add>, %35, %cst_25 [1] : vector<2x10xf32> to vector<2xf32>
    %37 = vector.shape_cast %36 : vector<2xf32> to vector<2x1xf32>
    %c0_26 = arith.constant 0 : index
    %c0_27 = arith.constant 0 : index
    %38 = vector.load %arg9[%c0_26, %c0_27] : memref<1x1xf32, #tpu.memory_space<vmem>>, vector<1x1xf32>
    %39 = vector.broadcast %38 : vector<1x1xf32> to vector<2x1xf32>
    %40 = arith.addf %37, %39 : vector<2x1xf32>
    %41 = arith.addf %19, %31 : vector<2x1xf32>
    %42 = arith.addf %41, %40 : vector<2x1xf32>
    %c0_28 = arith.constant 0 : index
    %c0_29 = arith.constant 0 : index
    %43 = vector.load %arg10[%c0_28, %c0_29] : memref<2x1xf32, #tpu.memory_space<vmem>>, vector<2x1xf32>
    tpu.vector_store %arg10[%c0_28, %c0_29], %42 {strides = array<i32>} : memref<2x1xf32, #tpu.memory_space<vmem>>, vector<2x1xf32>,
    return
  }
}

module attributes {stable_mosaic.version = 11 : i64} {
  func.func @_encoder_kernel(%arg0: i32, %arg1: i32, %arg2: memref<4x8x128xf32, #tpu.memory_space<vmem>>, %arg3: memref<4x1x8xf32, #tpu.memory_space<vmem>>, %arg4: memref<1x128xf32, #tpu.memory_space<vmem>>, %arg5: memref<1x128xf32, #tpu.memory_space<vmem>>, %arg6: memref<1x128x384xbf16, #tpu.memory_space<vmem>>, %arg7: memref<1x1x384xf32, #tpu.memory_space<vmem>>, %arg8: memref<1x128x128xbf16, #tpu.memory_space<vmem>>, %arg9: memref<1x1x128xf32, #tpu.memory_space<vmem>>, %arg10: memref<1x1x128xf32, #tpu.memory_space<vmem>>, %arg11: memref<1x1x128xf32, #tpu.memory_space<vmem>>, %arg12: memref<1x128x256xbf16, #tpu.memory_space<vmem>>, %arg13: memref<1x1x256xf32, #tpu.memory_space<vmem>>, %arg14: memref<1x256x128xbf16, #tpu.memory_space<vmem>>, %arg15: memref<1x1x128xf32, #tpu.memory_space<vmem>>, %arg16: memref<1x1x128xf32, #tpu.memory_space<vmem>>, %arg17: memref<1x1x128xf32, #tpu.memory_space<vmem>>, %arg18: memref<1x4x8x128xf32, #tpu.memory_space<vmem>>, %arg19: memref<32x128xf32, #tpu.memory_space<vmem>>) attributes {dimension_semantics = [#tpu.dimension_semantics<parallel>, #tpu.dimension_semantics<arbitrary>], iteration_bounds = array<i64: 2, 2>, scalar_prefetch = 0 : i64, scratch_operands = 1 : i64, tpu.core_type = #tpu.core_type<tc>, window_params = [{transform_indices = @transform_0, window_bounds = array<i64: 4, 8, 128>}, {transform_indices = @transform_1, window_bounds = array<i64: 4, 1, 8>}, {pipeline_mode = #tpu.pipeline_mode<synchronous>, transform_indices = @transform_2, window_bounds = array<i64: 1, 128>}, {pipeline_mode = #tpu.pipeline_mode<synchronous>, transform_indices = @transform_3, window_bounds = array<i64: 1, 128>}, {transform_indices = @transform_4, window_bounds = array<i64: 1, 128, 384>}, {transform_indices = @transform_5, window_bounds = array<i64: 1, 1, 384>}, {transform_indices = @transform_6, window_bounds = array<i64: 1, 128, 128>}, {transform_indices = @transform_7, window_bounds = array<i64: 1, 1, 128>}, {transform_indices = @transform_8, window_bounds = array<i64: 1, 1, 128>}, {transform_indices = @transform_9, window_bounds = array<i64: 1, 1, 128>}, {transform_indices = @transform_10, window_bounds = array<i64: 1, 128, 256>}, {transform_indices = @transform_11, window_bounds = array<i64: 1, 1, 256>}, {transform_indices = @transform_12, window_bounds = array<i64: 1, 256, 128>}, {transform_indices = @transform_13, window_bounds = array<i64: 1, 1, 128>}, {transform_indices = @transform_14, window_bounds = array<i64: 1, 1, 128>}, {transform_indices = @transform_15, window_bounds = array<i64: 1, 1, 128>}, {transform_indices = @transform_16, window_bounds = array<i64: 1, 4, 8, 128>}]} {
    %c0_i32 = arith.constant 0 : i32
    %0 = arith.cmpi eq, %arg1, %c0_i32 : i32
    %1 = arith.extui %0 : i1 to i32
    %c0_i32_0 = arith.constant 0 : i32
    %2 = arith.cmpi ne, %1, %c0_i32_0 : i32
    scf.if %2 {
      %c0_85 = arith.constant 0 : index
      %c0_86 = arith.constant 0 : index
      %c0_87 = arith.constant 0 : index
      %225 = vector.load %arg2[%c0_85, %c0_86, %c0_87] : memref<4x8x128xf32, #tpu.memory_space<vmem>>, vector<4x8x128xf32>
      %226 = vector.shape_cast %225 : vector<4x8x128xf32> to vector<32x128xf32>
      %c0_88 = arith.constant 0 : index
      %c0_89 = arith.constant 0 : index
      %227 = vector.load %arg4[%c0_88, %c0_89] : memref<1x128xf32, #tpu.memory_space<vmem>>, vector<1x128xf32>
      %c0_90 = arith.constant 0 : index
      %c0_91 = arith.constant 0 : index
      %228 = vector.load %arg5[%c0_90, %c0_91] : memref<1x128xf32, #tpu.memory_space<vmem>>, vector<1x128xf32>
      %cst_92 = arith.constant dense<0.000000e+00> : vector<32xf32>
      %229 = vector.multi_reduction <add>, %226, %cst_92 [1] : vector<32x128xf32> to vector<32xf32>
      %230 = vector.shape_cast %229 : vector<32xf32> to vector<32x1xf32>
      %cst_93 = arith.constant 1.280000e+02 : f32
      %231 = vector.broadcast %cst_93 : f32 to vector<32x1xf32>
      %232 = arith.divf %230, %231 : vector<32x1xf32>
      %233 = vector.broadcast %232 : vector<32x1xf32> to vector<32x128xf32>
      %234 = arith.subf %226, %233 : vector<32x128xf32>
      %235 = arith.mulf %234, %234 : vector<32x128xf32>
      %cst_94 = arith.constant dense<0.000000e+00> : vector<32xf32>
      %236 = vector.multi_reduction <add>, %235, %cst_94 [1] : vector<32x128xf32> to vector<32xf32>
      %237 = vector.shape_cast %236 : vector<32xf32> to vector<32x1xf32>
      %cst_95 = arith.constant 1.280000e+02 : f32
      %238 = vector.broadcast %cst_95 : f32 to vector<32x1xf32>
      %239 = arith.divf %237, %238 : vector<32x1xf32>
      %240 = vector.broadcast %232 : vector<32x1xf32> to vector<32x128xf32>
      %241 = arith.subf %226, %240 : vector<32x128xf32>
      %cst_96 = arith.constant 9.99999996E-13 : f32
      %242 = vector.broadcast %cst_96 : f32 to vector<32x1xf32>
      %243 = arith.addf %239, %242 : vector<32x1xf32>
      %244 = math.rsqrt %243 : vector<32x1xf32>
      %245 = vector.broadcast %244 : vector<32x1xf32> to vector<32x128xf32>
      %246 = arith.mulf %241, %245 : vector<32x128xf32>
      %247 = vector.broadcast %227 : vector<1x128xf32> to vector<32x128xf32>
      %248 = arith.mulf %246, %247 : vector<32x128xf32>
      %249 = vector.broadcast %228 : vector<1x128xf32> to vector<32x128xf32>
      %250 = arith.addf %248, %249 : vector<32x128xf32>
      %c0_97 = arith.constant 0 : index
      %c0_98 = arith.constant 0 : index
      %251 = vector.load %arg19[%c0_97, %c0_98] : memref<32x128xf32, #tpu.memory_space<vmem>>, vector<32x128xf32>
      tpu.vector_store %arg19[%c0_97, %c0_98], %250 {strides = array<i32>} : memref<32x128xf32, #tpu.memory_space<vmem>>, vector<32x128xf32>,
    } else {
    }
    %c0 = arith.constant 0 : index
    %c0_1 = arith.constant 0 : index
    %3 = vector.load %arg19[%c0, %c0_1] : memref<32x128xf32, #tpu.memory_space<vmem>>, vector<32x128xf32>
    %4 = arith.truncf %3 : vector<32x128xf32> to vector<32x128xbf16>
    %c0_2 = arith.constant 0 : index
    %c0_3 = arith.constant 0 : index
    %c0_4 = arith.constant 0 : index
    %5 = vector.load %arg6[%c0_2, %c0_3, %c0_4] : memref<1x128x384xbf16, #tpu.memory_space<vmem>>, vector<1x128x384xbf16>
    %6 = vector.shape_cast %5 : vector<1x128x384xbf16> to vector<128x384xbf16>
    %cst = arith.constant dense<0.000000e+00> : vector<32x384xf32>
    %7 = tpu.matmul %4, %6, %cst {dimension_numbers = #tpu.dot_dimension_numbers<[1], [0], [0], [1], [0, 0, 1, 1], [], []>} : vector<32x128xbf16>, vector<128x384xbf16>, vector<32x384xf32> -> vector<32x384xf32>
    %c0_5 = arith.constant 0 : index
    %c0_6 = arith.constant 0 : index
    %c0_7 = arith.constant 0 : index
    %8 = vector.load %arg7[%c0_5, %c0_6, %c0_7] : memref<1x1x384xf32, #tpu.memory_space<vmem>>, vector<1x1x384xf32>
    %9 = vector.shape_cast %8 : vector<1x1x384xf32> to vector<1x384xf32>
    %10 = vector.broadcast %9 : vector<1x384xf32> to vector<32x384xf32>
    %11 = arith.addf %7, %10 : vector<32x384xf32>
    %12 = vector.shape_cast %11 : vector<32x384xf32> to vector<4x8x384xf32>
    %13 = vector.extract_strided_slice %12 {offsets = [0, 0, 0], sizes = [4, 8, 128], strides = [1, 1, 1]} : vector<4x8x384xf32> to vector<4x8x128xf32>
    %14 = vector.extract_strided_slice %12 {offsets = [0, 0, 128], sizes = [4, 8, 128], strides = [1, 1, 1]} : vector<4x8x384xf32> to vector<4x8x128xf32>
    %15 = vector.extract_strided_slice %12 {offsets = [0, 0, 256], sizes = [4, 8, 128], strides = [1, 1, 1]} : vector<4x8x384xf32> to vector<4x8x128xf32>
    %c0_8 = arith.constant 0 : index
    %c0_9 = arith.constant 0 : index
    %c0_10 = arith.constant 0 : index
    %16 = vector.load %arg3[%c0_8, %c0_9, %c0_10] : memref<4x1x8xf32, #tpu.memory_space<vmem>>, vector<4x1x8xf32>
    %17 = tpu.iota {dimensions = array<i32: 2>} : vector<1x1x128xi32>
    %c0_i32_11 = arith.constant 0 : i32
    %18 = vector.broadcast %c0_i32_11 : i32 to vector<1x1x128xi32>
    %19 = arith.cmpi sge, %17, %18 : vector<1x1x128xi32>
    %c32_i32 = arith.constant 32 : i32
    %20 = vector.broadcast %c32_i32 : i32 to vector<1x1x128xi32>
    %21 = arith.cmpi slt, %17, %20 : vector<1x1x128xi32>
    %22 = arith.andi %19, %21 : vector<1x1x128xi1>
    %23 = arith.extui %22 : vector<1x1x128xi1> to vector<1x1x128xi32>
    %24 = arith.sitofp %23 : vector<1x1x128xi32> to vector<1x1x128xf32>
    %25 = vector.broadcast %24 : vector<1x1x128xf32> to vector<4x8x128xf32>
    %26 = arith.mulf %13, %25 : vector<4x8x128xf32>
    %27 = vector.broadcast %24 : vector<1x1x128xf32> to vector<4x8x128xf32>
    %28 = arith.mulf %15, %27 : vector<4x8x128xf32>
    "tpu.trace_start"() <{level = 10 : i32, message = "bqd,bkd->bqk"}> : () -> ()
    %cst_12 = arith.constant dense<0.000000e+00> : vector<4x8x8xf32>
    %29 = tpu.matmul %26, %14, %cst_12 {dimension_numbers = #tpu.dot_dimension_numbers<[2], [2], [1], [1], [0, 0, 0, 1, 1, 1], [0], [0]>} : vector<4x8x128xf32>, vector<4x8x128xf32>, vector<4x8x8xf32> -> vector<4x8x8xf32>
    "tpu.trace_stop"() : () -> ()
    %cst_13 = arith.constant 0.176776692 : f32
    %30 = vector.broadcast %cst_13 : f32 to vector<4x8x8xf32>
    %31 = arith.mulf %29, %30 : vector<4x8x8xf32>
    %32 = vector.broadcast %16 : vector<4x1x8xf32> to vector<4x8x8xf32>
    %33 = arith.addf %31, %32 : vector<4x8x8xf32>
    %cst_14 = arith.constant dense<0xFF800000> : vector<4x8xf32>
    %34 = vector.multi_reduction <maximumf>, %33, %cst_14 [2] : vector<4x8x8xf32> to vector<4x8xf32>
    %35 = vector.shape_cast %34 : vector<4x8xf32> to vector<4x8x1xf32>
    %36 = vector.broadcast %35 : vector<4x8x1xf32> to vector<4x8x8xf32>
    %37 = arith.subf %33, %36 : vector<4x8x8xf32>
    %38 = math.exp %37 : vector<4x8x8xf32>
    %cst_15 = arith.constant dense<0.000000e+00> : vector<4x8xf32>
    %39 = vector.multi_reduction <add>, %38, %cst_15 [2] : vector<4x8x8xf32> to vector<4x8xf32>
    %40 = vector.shape_cast %39 : vector<4x8xf32> to vector<4x8x1xf32>
    %41 = tpu.reciprocal %40 {approx = true} : vector<4x8x1xf32> -> vector<4x8x1xf32>
    %42 = vector.broadcast %41 : vector<4x8x1xf32> to vector<4x8x8xf32>
    %43 = arith.mulf %38, %42 : vector<4x8x8xf32>
    "tpu.trace_start"() <{level = 10 : i32, message = "bqk,bkd->bqd"}> : () -> ()
    %cst_16 = arith.constant dense<0.000000e+00> : vector<4x8x128xf32>
    %44 = tpu.matmul %43, %28, %cst_16 {dimension_numbers = #tpu.dot_dimension_numbers<[2], [1], [1], [2], [0, 0, 0, 1, 1, 2], [0], [0]>} : vector<4x8x8xf32>, vector<4x8x128xf32>, vector<4x8x128xf32> -> vector<4x8x128xf32>
    %c32_i32_17 = arith.constant 32 : i32
    "tpu.trace_stop"() : () -> ()
    %45 = vector.broadcast %c32_i32_17 : i32 to vector<1x1x128xi32>
    %46 = arith.cmpi sge, %17, %45 : vector<1x1x128xi32>
    %c64_i32 = arith.constant 64 : i32
    %47 = vector.broadcast %c64_i32 : i32 to vector<1x1x128xi32>
    %48 = arith.cmpi slt, %17, %47 : vector<1x1x128xi32>
    %49 = arith.andi %46, %48 : vector<1x1x128xi1>
    %50 = arith.extui %49 : vector<1x1x128xi1> to vector<1x1x128xi32>
    %51 = arith.sitofp %50 : vector<1x1x128xi32> to vector<1x1x128xf32>
    %52 = vector.broadcast %51 : vector<1x1x128xf32> to vector<4x8x128xf32>
    %53 = arith.mulf %13, %52 : vector<4x8x128xf32>
    %54 = vector.broadcast %51 : vector<1x1x128xf32> to vector<4x8x128xf32>
    %55 = arith.mulf %15, %54 : vector<4x8x128xf32>
    "tpu.trace_start"() <{level = 10 : i32, message = "bqd,bkd->bqk"}> : () -> ()
    %cst_18 = arith.constant dense<0.000000e+00> : vector<4x8x8xf32>
    %56 = tpu.matmul %53, %14, %cst_18 {dimension_numbers = #tpu.dot_dimension_numbers<[2], [2], [1], [1], [0, 0, 0, 1, 1, 1], [0], [0]>} : vector<4x8x128xf32>, vector<4x8x128xf32>, vector<4x8x8xf32> -> vector<4x8x8xf32>
    "tpu.trace_stop"() : () -> ()
    %cst_19 = arith.constant 0.176776692 : f32
    %57 = vector.broadcast %cst_19 : f32 to vector<4x8x8xf32>
    %58 = arith.mulf %56, %57 : vector<4x8x8xf32>
    %59 = vector.broadcast %16 : vector<4x1x8xf32> to vector<4x8x8xf32>
    %60 = arith.addf %58, %59 : vector<4x8x8xf32>
    %cst_20 = arith.constant dense<0xFF800000> : vector<4x8xf32>
    %61 = vector.multi_reduction <maximumf>, %60, %cst_20 [2] : vector<4x8x8xf32> to vector<4x8xf32>
    %62 = vector.shape_cast %61 : vector<4x8xf32> to vector<4x8x1xf32>
    %63 = vector.broadcast %62 : vector<4x8x1xf32> to vector<4x8x8xf32>
    %64 = arith.subf %60, %63 : vector<4x8x8xf32>
    %65 = math.exp %64 : vector<4x8x8xf32>
    %cst_21 = arith.constant dense<0.000000e+00> : vector<4x8xf32>
    %66 = vector.multi_reduction <add>, %65, %cst_21 [2] : vector<4x8x8xf32> to vector<4x8xf32>
    %67 = vector.shape_cast %66 : vector<4x8xf32> to vector<4x8x1xf32>
    %68 = tpu.reciprocal %67 {approx = true} : vector<4x8x1xf32> -> vector<4x8x1xf32>
    %69 = vector.broadcast %68 : vector<4x8x1xf32> to vector<4x8x8xf32>
    %70 = arith.mulf %65, %69 : vector<4x8x8xf32>
    "tpu.trace_start"() <{level = 10 : i32, message = "bqk,bkd->bqd"}> : () -> ()
    %cst_22 = arith.constant dense<0.000000e+00> : vector<4x8x128xf32>
    %71 = tpu.matmul %70, %55, %cst_22 {dimension_numbers = #tpu.dot_dimension_numbers<[2], [1], [1], [2], [0, 0, 0, 1, 1, 2], [0], [0]>} : vector<4x8x8xf32>, vector<4x8x128xf32>, vector<4x8x128xf32> -> vector<4x8x128xf32>
    "tpu.trace_stop"() : () -> ()
    %72 = arith.addf %44, %71 : vector<4x8x128xf32>
    %c64_i32_23 = arith.constant 64 : i32
    %73 = vector.broadcast %c64_i32_23 : i32 to vector<1x1x128xi32>
    %74 = arith.cmpi sge, %17, %73 : vector<1x1x128xi32>
    %c96_i32 = arith.constant 96 : i32
    %75 = vector.broadcast %c96_i32 : i32 to vector<1x1x128xi32>
    %76 = arith.cmpi slt, %17, %75 : vector<1x1x128xi32>
    %77 = arith.andi %74, %76 : vector<1x1x128xi1>
    %78 = arith.extui %77 : vector<1x1x128xi1> to vector<1x1x128xi32>
    %79 = arith.sitofp %78 : vector<1x1x128xi32> to vector<1x1x128xf32>
    %80 = vector.broadcast %79 : vector<1x1x128xf32> to vector<4x8x128xf32>
    %81 = arith.mulf %13, %80 : vector<4x8x128xf32>
    %82 = vector.broadcast %79 : vector<1x1x128xf32> to vector<4x8x128xf32>
    %83 = arith.mulf %15, %82 : vector<4x8x128xf32>
    "tpu.trace_start"() <{level = 10 : i32, message = "bqd,bkd->bqk"}> : () -> ()
    %cst_24 = arith.constant dense<0.000000e+00> : vector<4x8x8xf32>
    %84 = tpu.matmul %81, %14, %cst_24 {dimension_numbers = #tpu.dot_dimension_numbers<[2], [2], [1], [1], [0, 0, 0, 1, 1, 1], [0], [0]>} : vector<4x8x128xf32>, vector<4x8x128xf32>, vector<4x8x8xf32> -> vector<4x8x8xf32>
    "tpu.trace_stop"() : () -> ()
    %cst_25 = arith.constant 0.176776692 : f32
    %85 = vector.broadcast %cst_25 : f32 to vector<4x8x8xf32>
    %86 = arith.mulf %84, %85 : vector<4x8x8xf32>
    %87 = vector.broadcast %16 : vector<4x1x8xf32> to vector<4x8x8xf32>
    %88 = arith.addf %86, %87 : vector<4x8x8xf32>
    %cst_26 = arith.constant dense<0xFF800000> : vector<4x8xf32>
    %89 = vector.multi_reduction <maximumf>, %88, %cst_26 [2] : vector<4x8x8xf32> to vector<4x8xf32>
    %90 = vector.shape_cast %89 : vector<4x8xf32> to vector<4x8x1xf32>
    %91 = vector.broadcast %90 : vector<4x8x1xf32> to vector<4x8x8xf32>
    %92 = arith.subf %88, %91 : vector<4x8x8xf32>
    %93 = math.exp %92 : vector<4x8x8xf32>
    %cst_27 = arith.constant dense<0.000000e+00> : vector<4x8xf32>
    %94 = vector.multi_reduction <add>, %93, %cst_27 [2] : vector<4x8x8xf32> to vector<4x8xf32>
    %95 = vector.shape_cast %94 : vector<4x8xf32> to vector<4x8x1xf32>
    %96 = tpu.reciprocal %95 {approx = true} : vector<4x8x1xf32> -> vector<4x8x1xf32>
    %97 = vector.broadcast %96 : vector<4x8x1xf32> to vector<4x8x8xf32>
    %98 = arith.mulf %93, %97 : vector<4x8x8xf32>
    "tpu.trace_start"() <{level = 10 : i32, message = "bqk,bkd->bqd"}> : () -> ()
    %cst_28 = arith.constant dense<0.000000e+00> : vector<4x8x128xf32>
    %99 = tpu.matmul %98, %83, %cst_28 {dimension_numbers = #tpu.dot_dimension_numbers<[2], [1], [1], [2], [0, 0, 0, 1, 1, 2], [0], [0]>} : vector<4x8x8xf32>, vector<4x8x128xf32>, vector<4x8x128xf32> -> vector<4x8x128xf32>
    "tpu.trace_stop"() : () -> ()
    %100 = arith.addf %72, %99 : vector<4x8x128xf32>
    %c96_i32_29 = arith.constant 96 : i32
    %101 = vector.broadcast %c96_i32_29 : i32 to vector<1x1x128xi32>
    %102 = arith.cmpi sge, %17, %101 : vector<1x1x128xi32>
    %c128_i32 = arith.constant 128 : i32
    %103 = vector.broadcast %c128_i32 : i32 to vector<1x1x128xi32>
    %104 = arith.cmpi slt, %17, %103 : vector<1x1x128xi32>
    %105 = arith.andi %102, %104 : vector<1x1x128xi1>
    %106 = arith.extui %105 : vector<1x1x128xi1> to vector<1x1x128xi32>
    %107 = arith.sitofp %106 : vector<1x1x128xi32> to vector<1x1x128xf32>
    %108 = vector.broadcast %107 : vector<1x1x128xf32> to vector<4x8x128xf32>
    %109 = arith.mulf %13, %108 : vector<4x8x128xf32>
    %110 = vector.broadcast %107 : vector<1x1x128xf32> to vector<4x8x128xf32>
    %111 = arith.mulf %15, %110 : vector<4x8x128xf32>
    "tpu.trace_start"() <{level = 10 : i32, message = "bqd,bkd->bqk"}> : () -> ()
    %cst_30 = arith.constant dense<0.000000e+00> : vector<4x8x8xf32>
    %112 = tpu.matmul %109, %14, %cst_30 {dimension_numbers = #tpu.dot_dimension_numbers<[2], [2], [1], [1], [0, 0, 0, 1, 1, 1], [0], [0]>} : vector<4x8x128xf32>, vector<4x8x128xf32>, vector<4x8x8xf32> -> vector<4x8x8xf32>
    "tpu.trace_stop"() : () -> ()
    %cst_31 = arith.constant 0.176776692 : f32
    %113 = vector.broadcast %cst_31 : f32 to vector<4x8x8xf32>
    %114 = arith.mulf %112, %113 : vector<4x8x8xf32>
    %115 = vector.broadcast %16 : vector<4x1x8xf32> to vector<4x8x8xf32>
    %116 = arith.addf %114, %115 : vector<4x8x8xf32>
    %cst_32 = arith.constant dense<0xFF800000> : vector<4x8xf32>
    %117 = vector.multi_reduction <maximumf>, %116, %cst_32 [2] : vector<4x8x8xf32> to vector<4x8xf32>
    %118 = vector.shape_cast %117 : vector<4x8xf32> to vector<4x8x1xf32>
    %119 = vector.broadcast %118 : vector<4x8x1xf32> to vector<4x8x8xf32>
    %120 = arith.subf %116, %119 : vector<4x8x8xf32>
    %121 = math.exp %120 : vector<4x8x8xf32>
    %cst_33 = arith.constant dense<0.000000e+00> : vector<4x8xf32>
    %122 = vector.multi_reduction <add>, %121, %cst_33 [2] : vector<4x8x8xf32> to vector<4x8xf32>
    %123 = vector.shape_cast %122 : vector<4x8xf32> to vector<4x8x1xf32>
    %124 = tpu.reciprocal %123 {approx = true} : vector<4x8x1xf32> -> vector<4x8x1xf32>
    %125 = vector.broadcast %124 : vector<4x8x1xf32> to vector<4x8x8xf32>
    %126 = arith.mulf %121, %125 : vector<4x8x8xf32>
    "tpu.trace_start"() <{level = 10 : i32, message = "bqk,bkd->bqd"}> : () -> ()
    %cst_34 = arith.constant dense<0.000000e+00> : vector<4x8x128xf32>
    %127 = tpu.matmul %126, %111, %cst_34 {dimension_numbers = #tpu.dot_dimension_numbers<[2], [1], [1], [2], [0, 0, 0, 1, 1, 2], [0], [0]>} : vector<4x8x8xf32>, vector<4x8x128xf32>, vector<4x8x128xf32> -> vector<4x8x128xf32>
    "tpu.trace_stop"() : () -> ()
    %128 = arith.addf %100, %127 : vector<4x8x128xf32>
    %129 = vector.shape_cast %128 : vector<4x8x128xf32> to vector<32x128xf32>
    %130 = arith.truncf %129 : vector<32x128xf32> to vector<32x128xbf16>
    %c0_35 = arith.constant 0 : index
    %c0_36 = arith.constant 0 : index
    %c0_37 = arith.constant 0 : index
    %131 = vector.load %arg8[%c0_35, %c0_36, %c0_37] : memref<1x128x128xbf16, #tpu.memory_space<vmem>>, vector<1x128x128xbf16>
    %132 = vector.shape_cast %131 : vector<1x128x128xbf16> to vector<128x128xbf16>
    %cst_38 = arith.constant dense<0.000000e+00> : vector<32x128xf32>
    %133 = tpu.matmul %130, %132, %cst_38 {dimension_numbers = #tpu.dot_dimension_numbers<[1], [0], [0], [1], [0, 0, 1, 1], [], []>} : vector<32x128xbf16>, vector<128x128xbf16>, vector<32x128xf32> -> vector<32x128xf32>
    %c0_39 = arith.constant 0 : index
    %c0_40 = arith.constant 0 : index
    %c0_41 = arith.constant 0 : index
    %134 = vector.load %arg9[%c0_39, %c0_40, %c0_41] : memref<1x1x128xf32, #tpu.memory_space<vmem>>, vector<1x1x128xf32>
    %135 = vector.shape_cast %134 : vector<1x1x128xf32> to vector<1x128xf32>
    %136 = vector.broadcast %135 : vector<1x128xf32> to vector<32x128xf32>
    %137 = arith.addf %133, %136 : vector<32x128xf32>
    %138 = arith.addf %137, %3 : vector<32x128xf32>
    %c0_42 = arith.constant 0 : index
    %c0_43 = arith.constant 0 : index
    %c0_44 = arith.constant 0 : index
    %139 = vector.load %arg10[%c0_42, %c0_43, %c0_44] : memref<1x1x128xf32, #tpu.memory_space<vmem>>, vector<1x1x128xf32>
    %140 = vector.shape_cast %139 : vector<1x1x128xf32> to vector<1x128xf32>
    %c0_45 = arith.constant 0 : index
    %c0_46 = arith.constant 0 : index
    %c0_47 = arith.constant 0 : index
    %141 = vector.load %arg11[%c0_45, %c0_46, %c0_47] : memref<1x1x128xf32, #tpu.memory_space<vmem>>, vector<1x1x128xf32>
    %142 = vector.shape_cast %141 : vector<1x1x128xf32> to vector<1x128xf32>
    %cst_48 = arith.constant dense<0.000000e+00> : vector<32xf32>
    %143 = vector.multi_reduction <add>, %138, %cst_48 [1] : vector<32x128xf32> to vector<32xf32>
    %144 = vector.shape_cast %143 : vector<32xf32> to vector<32x1xf32>
    %cst_49 = arith.constant 1.280000e+02 : f32
    %145 = vector.broadcast %cst_49 : f32 to vector<32x1xf32>
    %146 = arith.divf %144, %145 : vector<32x1xf32>
    %147 = vector.broadcast %146 : vector<32x1xf32> to vector<32x128xf32>
    %148 = arith.subf %138, %147 : vector<32x128xf32>
    %149 = arith.mulf %148, %148 : vector<32x128xf32>
    %cst_50 = arith.constant dense<0.000000e+00> : vector<32xf32>
    %150 = vector.multi_reduction <add>, %149, %cst_50 [1] : vector<32x128xf32> to vector<32xf32>
    %151 = vector.shape_cast %150 : vector<32xf32> to vector<32x1xf32>
    %cst_51 = arith.constant 1.280000e+02 : f32
    %152 = vector.broadcast %cst_51 : f32 to vector<32x1xf32>
    %153 = arith.divf %151, %152 : vector<32x1xf32>
    %154 = vector.broadcast %146 : vector<32x1xf32> to vector<32x128xf32>
    %155 = arith.subf %138, %154 : vector<32x128xf32>
    %cst_52 = arith.constant 9.99999996E-13 : f32
    %156 = vector.broadcast %cst_52 : f32 to vector<32x1xf32>
    %157 = arith.addf %153, %156 : vector<32x1xf32>
    %158 = math.rsqrt %157 : vector<32x1xf32>
    %159 = vector.broadcast %158 : vector<32x1xf32> to vector<32x128xf32>
    %160 = arith.mulf %155, %159 : vector<32x128xf32>
    %161 = vector.broadcast %140 : vector<1x128xf32> to vector<32x128xf32>
    %162 = arith.mulf %160, %161 : vector<32x128xf32>
    %163 = vector.broadcast %142 : vector<1x128xf32> to vector<32x128xf32>
    %164 = arith.addf %162, %163 : vector<32x128xf32>
    %165 = arith.truncf %164 : vector<32x128xf32> to vector<32x128xbf16>
    %c0_53 = arith.constant 0 : index
    %c0_54 = arith.constant 0 : index
    %c0_55 = arith.constant 0 : index
    %166 = vector.load %arg12[%c0_53, %c0_54, %c0_55] : memref<1x128x256xbf16, #tpu.memory_space<vmem>>, vector<1x128x256xbf16>
    %167 = vector.shape_cast %166 : vector<1x128x256xbf16> to vector<128x256xbf16>
    %cst_56 = arith.constant dense<0.000000e+00> : vector<32x256xf32>
    %168 = tpu.matmul %165, %167, %cst_56 {dimension_numbers = #tpu.dot_dimension_numbers<[1], [0], [0], [1], [0, 0, 1, 1], [], []>} : vector<32x128xbf16>, vector<128x256xbf16>, vector<32x256xf32> -> vector<32x256xf32>
    %c0_57 = arith.constant 0 : index
    %c0_58 = arith.constant 0 : index
    %c0_59 = arith.constant 0 : index
    %169 = vector.load %arg13[%c0_57, %c0_58, %c0_59] : memref<1x1x256xf32, #tpu.memory_space<vmem>>, vector<1x1x256xf32>
    %170 = vector.shape_cast %169 : vector<1x1x256xf32> to vector<1x256xf32>
    %171 = vector.broadcast %170 : vector<1x256xf32> to vector<32x256xf32>
    %172 = arith.addf %168, %171 : vector<32x256xf32>
    %173 = arith.mulf %172, %172 : vector<32x256xf32>
    %174 = arith.mulf %172, %173 : vector<32x256xf32>
    %cst_60 = arith.constant 4.471500e-02 : f32
    %175 = vector.broadcast %cst_60 : f32 to vector<32x256xf32>
    %176 = arith.mulf %175, %174 : vector<32x256xf32>
    %177 = arith.addf %172, %176 : vector<32x256xf32>
    %cst_61 = arith.constant 0.797884583 : f32
    %178 = vector.broadcast %cst_61 : f32 to vector<32x256xf32>
    %179 = arith.mulf %178, %177 : vector<32x256xf32>
    %180 = math.tanh %179 : vector<32x256xf32>
    %cst_62 = arith.constant 1.000000e+00 : f32
    %181 = vector.broadcast %cst_62 : f32 to vector<32x256xf32>
    %182 = arith.addf %181, %180 : vector<32x256xf32>
    %cst_63 = arith.constant 5.000000e-01 : f32
    %183 = vector.broadcast %cst_63 : f32 to vector<32x256xf32>
    %184 = arith.mulf %183, %182 : vector<32x256xf32>
    %185 = arith.mulf %172, %184 : vector<32x256xf32>
    %186 = arith.truncf %185 : vector<32x256xf32> to vector<32x256xbf16>
    %c0_64 = arith.constant 0 : index
    %c0_65 = arith.constant 0 : index
    %c0_66 = arith.constant 0 : index
    %187 = vector.load %arg14[%c0_64, %c0_65, %c0_66] : memref<1x256x128xbf16, #tpu.memory_space<vmem>>, vector<1x256x128xbf16>
    %188 = vector.shape_cast %187 : vector<1x256x128xbf16> to vector<256x128xbf16>
    %cst_67 = arith.constant dense<0.000000e+00> : vector<32x128xf32>
    %189 = tpu.matmul %186, %188, %cst_67 {dimension_numbers = #tpu.dot_dimension_numbers<[1], [0], [0], [1], [0, 0, 1, 1], [], []>} : vector<32x256xbf16>, vector<256x128xbf16>, vector<32x128xf32> -> vector<32x128xf32>
    %c0_68 = arith.constant 0 : index
    %c0_69 = arith.constant 0 : index
    %c0_70 = arith.constant 0 : index
    %190 = vector.load %arg15[%c0_68, %c0_69, %c0_70] : memref<1x1x128xf32, #tpu.memory_space<vmem>>, vector<1x1x128xf32>
    %191 = vector.shape_cast %190 : vector<1x1x128xf32> to vector<1x128xf32>
    %192 = vector.broadcast %191 : vector<1x128xf32> to vector<32x128xf32>
    %193 = arith.addf %189, %192 : vector<32x128xf32>
    %194 = arith.addf %193, %164 : vector<32x128xf32>
    %c0_71 = arith.constant 0 : index
    %c0_72 = arith.constant 0 : index
    %c0_73 = arith.constant 0 : index
    %195 = vector.load %arg16[%c0_71, %c0_72, %c0_73] : memref<1x1x128xf32, #tpu.memory_space<vmem>>, vector<1x1x128xf32>
    %196 = vector.shape_cast %195 : vector<1x1x128xf32> to vector<1x128xf32>
    %c0_74 = arith.constant 0 : index
    %c0_75 = arith.constant 0 : index
    %c0_76 = arith.constant 0 : index
    %197 = vector.load %arg17[%c0_74, %c0_75, %c0_76] : memref<1x1x128xf32, #tpu.memory_space<vmem>>, vector<1x1x128xf32>
    %198 = vector.shape_cast %197 : vector<1x1x128xf32> to vector<1x128xf32>
    %cst_77 = arith.constant dense<0.000000e+00> : vector<32xf32>
    %199 = vector.multi_reduction <add>, %194, %cst_77 [1] : vector<32x128xf32> to vector<32xf32>
    %200 = vector.shape_cast %199 : vector<32xf32> to vector<32x1xf32>
    %cst_78 = arith.constant 1.280000e+02 : f32
    %201 = vector.broadcast %cst_78 : f32 to vector<32x1xf32>
    %202 = arith.divf %200, %201 : vector<32x1xf32>
    %203 = vector.broadcast %202 : vector<32x1xf32> to vector<32x128xf32>
    %204 = arith.subf %194, %203 : vector<32x128xf32>
    %205 = arith.mulf %204, %204 : vector<32x128xf32>
    %cst_79 = arith.constant dense<0.000000e+00> : vector<32xf32>
    %206 = vector.multi_reduction <add>, %205, %cst_79 [1] : vector<32x128xf32> to vector<32xf32>
    %207 = vector.shape_cast %206 : vector<32xf32> to vector<32x1xf32>
    %cst_80 = arith.constant 1.280000e+02 : f32
    %208 = vector.broadcast %cst_80 : f32 to vector<32x1xf32>
    %209 = arith.divf %207, %208 : vector<32x1xf32>
    %210 = vector.broadcast %202 : vector<32x1xf32> to vector<32x128xf32>
    %211 = arith.subf %194, %210 : vector<32x128xf32>
    %cst_81 = arith.constant 9.99999996E-13 : f32
    %212 = vector.broadcast %cst_81 : f32 to vector<32x1xf32>
    %213 = arith.addf %209, %212 : vector<32x1xf32>
    %214 = math.rsqrt %213 : vector<32x1xf32>
    %215 = vector.broadcast %214 : vector<32x1xf32> to vector<32x128xf32>
    %216 = arith.mulf %211, %215 : vector<32x128xf32>
    %217 = vector.broadcast %196 : vector<1x128xf32> to vector<32x128xf32>
    %218 = arith.mulf %216, %217 : vector<32x128xf32>
    %219 = vector.broadcast %198 : vector<1x128xf32> to vector<32x128xf32>
    %220 = arith.addf %218, %219 : vector<32x128xf32>
    %c0_82 = arith.constant 0 : index
    %c0_83 = arith.constant 0 : index
    %221 = vector.load %arg19[%c0_82, %c0_83] : memref<32x128xf32, #tpu.memory_space<vmem>>, vector<32x128xf32>
    tpu.vector_store %arg19[%c0_82, %c0_83], %220 {strides = array<i32>} : memref<32x128xf32, #tpu.memory_space<vmem>>, vector<32x128xf32>,
    %c1_i32 = arith.constant 1 : i32
    %222 = arith.cmpi eq, %arg1, %c1_i32 : i32
    %223 = arith.extui %222 : i1 to i32
    %c0_i32_84 = arith.constant 0 : i32
    %224 = arith.cmpi ne, %223, %c0_i32_84 : i32
    scf.if %224 {
      %225 = vector.shape_cast %220 : vector<32x128xf32> to vector<1x4x8x128xf32>
      %c0_85 = arith.constant 0 : index
      %c0_86 = arith.constant 0 : index
      %c0_87 = arith.constant 0 : index
      %c0_88 = arith.constant 0 : index
      %226 = vector.load %arg18[%c0_85, %c0_86, %c0_87, %c0_88] : memref<1x4x8x128xf32, #tpu.memory_space<vmem>>, vector<1x4x8x128xf32>
      tpu.vector_store %arg18[%c0_85, %c0_86, %c0_87, %c0_88], %225 {strides = array<i32>} : memref<1x4x8x128xf32, #tpu.memory_space<vmem>>, vector<1x4x8x128xf32>,
    } else {
    }
    return
  }
  func.func @transform_0(%arg0: i32, %arg1: i32) -> (i32, i32, i32) {
    %c0_i32 = arith.constant 0 : i32
    %c0_i32_0 = arith.constant 0 : i32
    %c0_i32_1 = arith.constant 0 : i32
    return %arg0, %c0_i32, %c0_i32_0 : i32, i32, i32
  }
  func.func @transform_1(%arg0: i32, %arg1: i32) -> (i32, i32, i32) {
    %c0_i32 = arith.constant 0 : i32
    %c0_i32_0 = arith.constant 0 : i32
    %c0_i32_1 = arith.constant 0 : i32
    return %arg0, %c0_i32, %c0_i32_0 : i32, i32, i32
  }
  func.func @transform_2(%arg0: i32, %arg1: i32) -> (i32, i32) {
    %c0_i32 = arith.constant 0 : i32
    %c0_i32_0 = arith.constant 0 : i32
    %c0_i32_1 = arith.constant 0 : i32
    return %c0_i32, %c0_i32_0 : i32, i32
  }
  func.func @transform_3(%arg0: i32, %arg1: i32) -> (i32, i32) {
    %c0_i32 = arith.constant 0 : i32
    %c0_i32_0 = arith.constant 0 : i32
    %c0_i32_1 = arith.constant 0 : i32
    return %c0_i32, %c0_i32_0 : i32, i32
  }
  func.func @transform_4(%arg0: i32, %arg1: i32) -> (i32, i32, i32) {
    %c0_i32 = arith.constant 0 : i32
    %c0_i32_0 = arith.constant 0 : i32
    %c0_i32_1 = arith.constant 0 : i32
    return %arg1, %c0_i32, %c0_i32_0 : i32, i32, i32
  }
  func.func @transform_5(%arg0: i32, %arg1: i32) -> (i32, i32, i32) {
    %c0_i32 = arith.constant 0 : i32
    %c0_i32_0 = arith.constant 0 : i32
    %c0_i32_1 = arith.constant 0 : i32
    return %arg1, %c0_i32, %c0_i32_0 : i32, i32, i32
  }
  func.func @transform_6(%arg0: i32, %arg1: i32) -> (i32, i32, i32) {
    %c0_i32 = arith.constant 0 : i32
    %c0_i32_0 = arith.constant 0 : i32
    %c0_i32_1 = arith.constant 0 : i32
    return %arg1, %c0_i32, %c0_i32_0 : i32, i32, i32
  }
  func.func @transform_7(%arg0: i32, %arg1: i32) -> (i32, i32, i32) {
    %c0_i32 = arith.constant 0 : i32
    %c0_i32_0 = arith.constant 0 : i32
    %c0_i32_1 = arith.constant 0 : i32
    return %arg1, %c0_i32, %c0_i32_0 : i32, i32, i32
  }
  func.func @transform_8(%arg0: i32, %arg1: i32) -> (i32, i32, i32) {
    %c0_i32 = arith.constant 0 : i32
    %c0_i32_0 = arith.constant 0 : i32
    %c0_i32_1 = arith.constant 0 : i32
    return %arg1, %c0_i32, %c0_i32_0 : i32, i32, i32
  }
  func.func @transform_9(%arg0: i32, %arg1: i32) -> (i32, i32, i32) {
    %c0_i32 = arith.constant 0 : i32
    %c0_i32_0 = arith.constant 0 : i32
    %c0_i32_1 = arith.constant 0 : i32
    return %arg1, %c0_i32, %c0_i32_0 : i32, i32, i32
  }
  func.func @transform_10(%arg0: i32, %arg1: i32) -> (i32, i32, i32) {
    %c0_i32 = arith.constant 0 : i32
    %c0_i32_0 = arith.constant 0 : i32
    %c0_i32_1 = arith.constant 0 : i32
    return %arg1, %c0_i32, %c0_i32_0 : i32, i32, i32
  }
  func.func @transform_11(%arg0: i32, %arg1: i32) -> (i32, i32, i32) {
    %c0_i32 = arith.constant 0 : i32
    %c0_i32_0 = arith.constant 0 : i32
    %c0_i32_1 = arith.constant 0 : i32
    return %arg1, %c0_i32, %c0_i32_0 : i32, i32, i32
  }
  func.func @transform_12(%arg0: i32, %arg1: i32) -> (i32, i32, i32) {
    %c0_i32 = arith.constant 0 : i32
    %c0_i32_0 = arith.constant 0 : i32
    %c0_i32_1 = arith.constant 0 : i32
    return %arg1, %c0_i32, %c0_i32_0 : i32, i32, i32
  }
  func.func @transform_13(%arg0: i32, %arg1: i32) -> (i32, i32, i32) {
    %c0_i32 = arith.constant 0 : i32
    %c0_i32_0 = arith.constant 0 : i32
    %c0_i32_1 = arith.constant 0 : i32
    return %arg1, %c0_i32, %c0_i32_0 : i32, i32, i32
  }
  func.func @transform_14(%arg0: i32, %arg1: i32) -> (i32, i32, i32) {
    %c0_i32 = arith.constant 0 : i32
    %c0_i32_0 = arith.constant 0 : i32
    %c0_i32_1 = arith.constant 0 : i32
    return %arg1, %c0_i32, %c0_i32_0 : i32, i32, i32
  }
  func.func @transform_15(%arg0: i32, %arg1: i32) -> (i32, i32, i32) {
    %c0_i32 = arith.constant 0 : i32
    %c0_i32_0 = arith.constant 0 : i32
    %c0_i32_1 = arith.constant 0 : i32
    return %arg1, %c0_i32, %c0_i32_0 : i32, i32, i32
  }
  func.func @transform_16(%arg0: i32, %arg1: i32) -> (i32, i32, i32, i32) {
    %c0_i32 = arith.constant 0 : i32
    %c0_i32_0 = arith.constant 0 : i32
    %c0_i32_1 = arith.constant 0 : i32
    %c0_i32_2 = arith.constant 0 : i32
    return %arg0, %c0_i32, %c0_i32_0, %c0_i32_1 : i32, i32, i32, i32
  }
}

</mosaic_0001>

<bundles_post_ra>
// kernel: aspect_link_forward.3
= control target key start
LH: loop header
LB: loop body
LE: loop exit
PB: predicated region body
PF: predicated region fallthrough
CT: control target
= control target key end

     0   :  { %vm33_vm0 = vcmask 523264   ;;  %s277_s1 = inlined_call_operand.vmem [shape: f32[64,128], index: 1, kind: input, shape index: {}]   ;;  %s278_s0 = inlined_call_operand.vmem [shape: f32[32,64], index: 0, kind: input, shape index: {}]   ;;  %s279_s2 = inlined_call_operand.vmem [shape: f32[1,128], index: 2, kind: input, shape index: {}]   ;;  %s280_s3 = inlined_call_operand.vmem [shape: f32[32,128], index: 3, kind: output, shape index: {}]  }
   0x1   :  { %v18_v0 = vld [vmem:[%s277_s1] sm:$0xff]  ;;  %v19_v1 = vld [vmem:[%s277_s1 + $0x8] sm:$0xff]  ;;  %v20_v2 = vld [vmem:[%s277_s1 + $0x10] sm:$0xff] }
   0x2   :  { %v178_v3 = vpack.c.bf16 %v19_v1, %v18_v0  ;;  %v21_v4 = vld [vmem:[%s277_s1 + $0x18] sm:$0xff]  ;;  %v22_v6 = vld [vmem:[%s277_s1 + $0x20] sm:$0xff]  ;;  %v23_v7 = vld [vmem:[%s277_s1 + $0x28] sm:$0xff] }
   0x3   :  { %v182_v5 = vpack.c.bf16 %v21_v4, %v20_v2  ;;  %v14_v8 = vld [vmem:[%s278_s0] sm:$0xff]  ;;  %v16_v9 = vld [vmem:[%s278_s0 + $0x10] sm:$0xff]  ;;  %v186_v10 = vpack.c.bf16 %v23_v7, %v22_v6  ;;  %v25_v12 = vld [vmem:[%s277_s1 + $0x38] sm:$0xff] }
   0x4   :  { %179 = vmatprep.subr.bf16.mxu0 %v178_v3  ;;  %194 = vmatprep.subr.bf16.mxu1 %v178_v3  ;;  %v24_v11 = vld [vmem:[%s277_s1 + $0x30] sm:$0xff]  ;;  %v15_v14 = vld [vmem:[%s278_s0 + $0x8] sm:$0xff]  ;;  %v17_v15 = vld [vmem:[%s278_s0 + $0x18] sm:$0xff] }
   0x5   :  { %181 = vmatpush3.bf16.msra.mxu0 %v178_v3  ;;  %198 = vmatpush3.bf16.msra.mxu1 %v178_v3  ;;  %v190_v13 = vpack.c.bf16 %v25_v12, %v24_v11  ;;  %v139_v16 = vld [vmem:[%s279_s2] ss:$0 sm:$0xff] }
   0x6   :  { %183 = vmatprep.subr.bf16.mxu0 %v182_v5  ;;  %195 = vmatprep.subr.bf16.mxu1 %v182_v5 }
   0x7   :  { %172 = vmatprep.mubr.msk.f32.mxu0 %vm33_vm0, %v14_v8  ;;  %175 = vmatprep.mubr.msk.f32.mxu1 %vm33_vm0, %v16_v9 }
   0x9   :  { %185 = vmatpush3.bf16.msra.mxu0 %v182_v5  ;;  %199 = vmatpush3.bf16.msra.mxu1 %v182_v5 }
   0xa   :  { %187 = vmatprep.subr.bf16.mxu0 %v186_v10  ;;  %196 = vmatprep.subr.bf16.mxu1 %v186_v10 }
   0xd   :  { %189 = vmatpush3.bf16.msra.mxu0 %v186_v10  ;;  %200 = vmatpush3.bf16.msra.mxu1 %v186_v10 }
   0xe   :  { %191 = vmatprep.subr.bf16.mxu0 %v190_v13  ;;  %197 = vmatprep.subr.bf16.mxu1 %v190_v13 }
  0x11   :  { %193 = vmatpush3.bf16.msra.mxu0 %v190_v13  ;;  %201 = vmatpush3.bf16.msra.mxu1 %v190_v13 }
  0x14   :  { %173 = vmatmul.mubr.msk.f32.vlgmr.msra.gmra.mrb[0].mxu0 %vm33_vm0, %v15_v14  ;;  %176 = vmatmul.mubr.msk.f32.vlgmr.msra.gmra.mrb[0].mxu1 %vm33_vm0, %v17_v15 }
  0xe7   :  { %v174_v17 = vpop.f32.mrb[0].mxu0  ;;  %v177_v18 = vpop.f32.mrb[0].mxu1 }
  0xe8   :  { %v118_v19 = vadd.f32 %v174_v17, %v139_v16  ;;  %v128_v20 = vadd.f32 %v177_v18, %v139_v16  ;;  %v112_v21 = vpop.f32.mrb[1].mxu0  ;;  %v122_v22 = vpop.f32.mrb[1].mxu1 }
  0xe9   :  { %v113_v23 = vadd.f32 %v139_v16, %v112_v21  ;;  %v123_v24 = vadd.f32 %v139_v16, %v122_v22 }
  0xea   :  { %132 = vst [vmem:[%s280_s3 + $0x8] sm:$0xff] %v118_v19  ;;  %134 = vst [vmem:[%s280_s3 + $0x18] sm:$0xff] %v128_v20 }
  0xeb   :  { %131 = vst [vmem:[%s280_s3] sm:$0xff] %v113_v23  ;;  %133 = vst [vmem:[%s280_s3 + $0x10] sm:$0xff] %v123_v24 }

// kernel: aspect_link_forward.5
= control target key start
LH: loop header
LB: loop body
LE: loop exit
PB: predicated region body
PF: predicated region fallthrough
CT: control target
= control target key end

     0   :  { %vm65_vm0 = vcmask 1041408   ;;  %vm114_vm1 = vcmask 74752   ;;  %vm128_vm2 = vcmask 1024   ;;  %s242_s0 = inlined_call_operand.vmem [shape: f32[4,2,128], index: 0, kind: input, shape index: {}]   ;;  %s243_s2 = inlined_call_operand.vmem [shape: f32[1,128], index: 2, kind: input, shape index: {}]   ;;  %s244_s3 = inlined_call_operand.vmem [shape: f32[1,128], index: 3, kind: input, shape index: {}]   ;;  %s245_s5 = inlined_call_operand.vmem [shape: f32[1,128], index: 5, kind: input, shape index: {}]   ;;  %s246_s6 = inlined_call_operand.vmem [shape: f32[1,128], index: 6, kind: input, shape index: {}]   ;;  %s247_s1 = inlined_call_operand.vmem [shape: f32[2,10], index: 1, kind: input, shape index: {}]   ;;  %s248_s4 = inlined_call_operand.<no memory space> [shape: f32[1,1], index: 4, kind: input, shape index: {}]   ;;  %s249_s8 = inlined_call_operand.vmem [shape: f32[1,10], index: 8, kind: input, shape index: {}]   ;;  %s250_s7 = inlined_call_operand.<no memory space> [shape: f32[1,1], index: 7, kind: input, shape index: {}]   ;;  %s251_s9 = inlined_call_operand.<no memory space> [shape: f32[1,1], index: 9, kind: input, shape index: {}]   ;;  %s252_s10 = inlined_call_operand.vmem [shape: f32[2,1], index: 10, kind: output, shape index: {}]  }
   0x1   :  { %v41_v0 = vld [vmem:[%s242_s0] sm:$0x3]  ;;  %v134_v1 = vld [vmem:[%s242_s0 + $0x2] sm:$0x3]  ;;  %v15_v3 = vstv %s248_s4  ;;  %v135_v6 = vld [vmem:[%s242_s0 + $0x4] sm:$0x3] }
   0x2   :  { %v137_v2 = vld [vmem:[%s243_s2] ss:$0 sm:$0xff]  ;;  %v136_v7 = vld [vmem:[%s242_s0 + $0x6] sm:$0x3]  ;;  %16 = vst [vmem:[#allocation2] sm:$0x1] %v15_v3  ;;  %v17_v21 = vstv %s250_s7  ;;  %v19_v22 = vstv %s251_s9 }
   0x3   :  { %v55_v4 = vmul.f32 %v137_v2, %v41_v0  ;;  %v138_v5 = vld [vmem:[%s244_s3] ss:$0 sm:$0xff]  ;;  %18 = vst [vmem:[#allocation3] sm:$0x1] %v17_v21  ;;  %20 = vst [vmem:[#allocation4] sm:$0x1] %v19_v22 }
   0x4   :  { %v63_v8 = vmul.f32 %v138_v5, %v134_v1  ;;  %v140_v9 = vld [vmem:[%s245_s5] ss:$0 sm:$0xff] }
   0x5   :  { %v141_v10 = vld [vmem:[%s246_s6] ss:$0 sm:$0xff]  ;;  %v84_v12 = vmul.f32 %v140_v9, %v135_v6 }
   0x6   :  { %v105_v11 = vld [vmem:[%s247_s1] sm:$0x3]  ;;  %v92_v13 = vmul.f32 %v141_v10, %v136_v7  ;;  %v64_v15 = vadd.f32 %v63_v8, %v55_v4 }
   0x7   :  { %v143_v14 = vld [vmem:[%s249_s8] ss:$0 sm:$0xff] }
   0x8   :  { %v113_v16 = vmul.f32 %v143_v14, %v105_v11  ;;  %v93_v17 = vadd.f32 %v92_v13, %v84_v12  ;;  %v66_v18 = vsel %vm65_vm0, %v64_v15, 0.0 }
   0x9   :  { %67 = vadd.xlane.f32.xlu0 %v66_v18  ;;  %v139_v24 = vld [vmem:[#allocation2] ss:$0 sm:$0xff] }
   0xa   :  { %v115_v19 = vsel %vm114_vm1, %v113_v16, 0.0  ;;  %v94_v20 = vsel %vm65_vm0, %v93_v17, 0.0  ;;  %v142_v25 = vld [vmem:[#allocation3] ss:$0 sm:$0xff]  ;;  %v144_v26 = vld [vmem:[#allocation4] ss:$0 sm:$0xff] }
   0xb   :  { %116 = vadd.xlane.f32.xlu1 %v115_v19 }
   0xd   :  { %95 = vadd.xlane.f32.xlu0 %v94_v20 }
  0x96   :  { %v68_v23 = vpop.xlane.xlu0 %67 }
  0x97   :  { %v76_v29 = vadd.f32 %v139_v24, %v68_v23 }
  0x98   :  { %v117_v27 = vpop.xlane.xlu1 %116 }
  0x99   :  { %v125_v31 = vadd.f32 %v144_v26, %v117_v27 }
  0x9a   :  { %v96_v28 = vpop.xlane.xlu0 %95 }
  0x9b   :  { %v104_v30 = vadd.f32 %v142_v25, %v96_v28 }
  0x9d   :  { %v126_v32 = vadd.f32 %v104_v30, %v76_v29 }
  0x9f   :  { %v127_v33 = vadd.f32 %v126_v32, %v125_v31 }
  0xa1   :  { %129 = vst.msk [vmem:[%s252_s10] sm:$0x3] %vm128_vm2, %v127_v33 }

// kernel: aspect_link_forward.4
= control target key start
LH: loop header
LB: loop body
LE: loop exit
PB: predicated region body
PF: predicated region fallthrough
CT: control target
= control target key end

     0   :  { %s7064_s0 = inlined_call_operand.vmem [shape: f32[8,8,128], index: 0, kind: input, shape index: {}]   ;;  %s7065_s1 = inlined_call_operand.vmem [shape: f32[8,1,8], index: 1, kind: input, shape index: {}]   ;;  %s7066_s2 = inlined_call_operand.hbm [shape: f32[1,128], index: 2, kind: input, shape index: {}]   ;;  %s7067_s3 = inlined_call_operand.hbm [shape: f32[1,128], index: 3, kind: input, shape index: {}]   ;;  %s7068_s4 = inlined_call_operand.vmem [shape: bf16[2,128,384], index: 4, kind: input, shape index: {}]   ;;  %s7069_s5 = inlined_call_operand.hbm [shape: f32[2,1,384], index: 5, kind: input, shape index: {}]   ;;  %s7070_s6 = inlined_call_operand.vmem [shape: bf16[2,128,128], index: 6, kind: input, shape index: {}]   ;;  %s7071_s7 = inlined_call_operand.hbm [shape: f32[2,1,128], index: 7, kind: input, shape index: {}]   ;;  %s7072_s8 = inlined_call_operand.hbm [shape: f32[2,1,128], index: 8, kind: input, shape index: {}]   ;;  %s7073_s9 = inlined_call_operand.hbm [shape: f32[2,1,128], index: 9, kind: input, shape index: {}]   ;;  %s7074_s10 = inlined_call_operand.vmem [shape: bf16[2,128,256], index: 10, kind: input, shape index: {}]   ;;  %s7075_s11 = inlined_call_operand.vmem [shape: f32[2,1,256], index: 11, kind: input, shape index: {}]   ;;  %s7076_s12 = inlined_call_operand.hbm [shape: bf16[2,256,128], index: 12, kind: input, shape index: {}]   ;;  %s7077_s13 = inlined_call_operand.hbm [shape: f32[2,1,128], index: 13, kind: input, shape index: {}]   ;;  %s7078_s14 = inlined_call_operand.hbm [shape: f32[2,1,128], index: 14, kind: input, shape index: {}]   ;;  %s7079_s15 = inlined_call_operand.hbm [shape: f32[2,1,128], index: 15, kind: input, shape index: {}]   ;;  %s7080_s16 = inlined_call_operand.vmem [shape: f32[2,4,8,128], index: 16, kind: output, shape index: {}]  }
   0x1   :  { %7102 = sst [smem:[#allocation26_spill]] %s7064_s0 }
   0x2   :  { %7103 = sst [smem:[#allocation27_spill]] %s7065_s1 }
   0x3   :  { %7104 = sst [smem:[#allocation28_spill]] %s7066_s2 }
   0x4   :  { %7105 = sst [smem:[#allocation29_spill]] %s7067_s3 }
   0x5   :  { %7106 = sst [smem:[#allocation30_spill]] %s7068_s4 }
   0x6   :  { %7107 = sst [smem:[#allocation31_spill]] %s7069_s5 }
   0x7   :  { %7108 = sst [smem:[#allocation32_spill]] %s7070_s6 }
   0x8   :  { %7109 = sst [smem:[#allocation33_spill]] %s7071_s7 }
   0x9   :  { %7110 = sst [smem:[#allocation34_spill]] %s7072_s8 }
   0xa   :  { %7111 = sst [smem:[#allocation35_spill]] %s7073_s9 }
   0xb   :  { %7112 = sst [smem:[#allocation36_spill]] %s7074_s10 }
   0xc   :  { %7113 = sst [smem:[#allocation37_spill]] %s7075_s11 }
   0xd   :  { %7114 = sst [smem:[#allocation38_spill]] %s7076_s12 }
   0xe   :  { %7115 = sst [smem:[#allocation39_spill]] %s7077_s13 }
   0xf   :  { %7116 = sst [smem:[#allocation40_spill]] %s7078_s14 }
  0x10   :  { %7117 = sst [smem:[#allocation41_spill]] %s7079_s15 }
  0x11   :  { %7118 = sst [smem:[#allocation42_spill]] %s7080_s16 }
  0x12   :  { %21 = vsyncpa [#allocation4], 0 }
  0x13   :  { %22 = vsyncpa [#allocation6], 0  ;;  %s6137_s21 = smov 0   ;;  %s6139_s22 = smov 0  }
  0x14   :  { %s6141_s23 = smov 0   ;;  %s6143_s24 = smov 0  }
  0x15   :  { %s6145_s25 = smov 0   ;;  %s6147_s26 = smov 0  }
  0x16   :  { %s6149_s27 = smov 0   ;;  %s6151_s28 = smov 0  }
  0x17 LB: > { %7119 = sst [smem:[#allocation18_spill]] %s6019_s24  ;;  %s7081_s29 = sadd.s32 4294967295, %s6035_s28   ;;  %s6035_s28 = sphi %s6151_s28, %s28_s28   ;;  %s6031_s27 = sphi %s6149_s27, %s7173_s27   ;;  %s6027_s26 = sphi %s6147_s26, %s7172_s26   ;;  %s6023_s25 = sphi %s6145_s25, %s7171_s25   ;;  %s6019_s24 = sphi %s6143_s24, %s7170_s24   ;;  %s6015_s23 = sphi %s6141_s23, %s7176_s23   ;;  %s6011_s22 = sphi %s6139_s22, %s7175_s22   ;;  %s6007_s21 = sphi %s6137_s21, %s7174_s21  }
  0x18   : > { %7120 = sst [smem:[#allocation19_spill]] %s6023_s25  ;;  %p174_p0 = scmp.ne.s32.totalorder %s6015_s23, %s6011_s22 }
  0x19   : > { %7121 = sst [smem:[#allocation20_spill]] %s6027_s26  ;;  %p175_p1 = scmp.eq.s32.totalorder %s6035_s28, 0 }
  0x1a   : > { %7122 = sst [smem:[#allocation21_spill]] %s6031_s27  ;;  %p180_p2 = scmp.ne.s32.totalorder %s6011_s22, %s6007_s21 }
  0x1b   : > { %p6183_p3 = scmp.eq.s32.totalorder %s7081_s29, 0  ;;  %p176_p4 = por %p175_p1, %p174_p0 }
  0x1c   : > { %p4856_p5 = scmp.ge.s32.totalorder %s6035_s28, 1  ;;  %p477_p7 = scmp.lt.s32.totalorder %s6035_s28, 5 }
  0x1d   : > { %s7123_s0 = scalar_select %p6183_p3, 1, 0 }
  0x1e   : > { %p6190_p6 = por %p6183_p3, %p180_p2  ;;  %p6195_p8 = pnand %p4856_p5, %p477_p7 }
  0x1f   : > { %s6037_s19 = smov [#allocation3]   ;;  %p5403_p10 = scmp.lt.s32.totalorder %s6035_s28, 4 }
  0x20   : > { %s7124_s17 = scalar_select %p6190_p6, 1, 0 }
  0x21   : > { %s7126_s18 = scalar_select %p6195_p8, 1, 0 }
  0x22   : > { %7125 = sst [smem:[#allocation22_spill]] %s7124_s17  ;;  %s490_s20 = sshll.u32 %s6037_s19, 4  ;;  %s491_s20 = int_to_ptr.vmem [resolvable:$true] %s490_s20 }
  0x23   : > { %p5369_p9 = pneg %p6195_p8  ;;  %s6203_s21 = sand.u32 1, %s6015_s23  }
  0x24   : > { %p6211_p12 = pnand %p5403_p10, %p176_p4  ;;  %s7129_s2 = sld [smem:[#allocation28_spill]] }
  0x25   : > { %p6207_p11 = pnand %p5369_p9, %p6183_p3 }
  0x26   : > { %s7128_s30 = scalar_select %p6211_p12, 1, 0 }
  0x27   : > { %s7127_s29 = scalar_select %p6207_p11, 1, 0 }
  0x28   : > { %p7093_p0 = pneg %p6207_p11 }
  0x2a   : > { %s5665_s19 = scalar_lea.hbm %s7129_s2, 16 }
  0x2b   : > { %p5666_p13 = scmp.ne.s32.totalorder %s7129_s2, %s5665_s19  ;;  %p5672_p4 = scmp.lt.u32.totalorder %s5665_s19, %s7129_s2 }
  0x2d   : > { %p5668_p1 = pnand %p7093_p0, %p5666_p13 }
  0x2f   : > { %p5669_p2 = pneg %p5668_p1 }
  0x31   : > { %p5674_p5 = pnand %p5672_p4, %p5669_p2 }
  0x33   : > { %5677 = shalt.err (!%p5674_p5)
}
  0x34   : > { %s5678_s24 = scalar_lea.vmem %s491_s20, 16  ;;  %s5685_s6 = scalar_lea.vmem %s491_s20, 32 }
  0x35   : > { %p5679_p7 = scmp.ne.s32.totalorder %s491_s20, %s5678_s24  ;;  %p5686_p6 = scmp.lt.s32.totalorder %s491_s20, %s491_s20 }
  0x36   : > { %p5687_p3 = scmp.lt.s32.totalorder %s5685_s6, %s5678_s24 }
  0x37   : > { %p5681_p9 = pnand %p5679_p7, %p7093_p0 }
  0x38   : > { %p5688_p8 = por %p5687_p3, %p5686_p6 }
  0x39   : > { %p5682_p10 = pneg %p5681_p9 }
  0x3b   : > { %p5689_p12 = pnand %p5688_p8, %p5682_p10 }
  0x3d   : > { %5692 = shalt.err (!%p5689_p12)
}
  0x3e   : > { %5372 = dma.hbm_to_vmem [thread:$0]  (!%p6207_p11), %s7129_s2, 16, %s491_s20, [#allocation4]  }
  0x3f   : > { %s37_s4 = sadd.s32 1, %s6027_s26  ;;  %s40_s11 = sadd.s32 1, %s6031_s27 }
  0x40   : > { %p38_p13 = scmp.ge.s32.totalorder %s37_s4, 2  ;;  %s537_s16 = sand.u32 1, %s6035_s28  }
  0x41   : > { %s5341_s24 = smul.u32 3, %s6203_s21  ;;  %s7132_s10 = sadd.s32 1, %s6015_s23 }
  0x42   : > { %s7178_s4 = smov (%p38_p13, %s37_s4), 0  ;;  %s7180_s11 = smov (!%p38_p13, %s40_s11), %s6031_s27 }
  0x43   : > { %7130 = sst [smem:[#allocation23_spill]] %s7178_s4  ;;  %s164_s19 = ssub.s32 %s6027_s26, %s7178_s4 }
  0x44   : > { %p42_p3 = scmp.ge.s32.totalorder %s7180_s11, 2  ;;  %p165_p6 = scmp.eq.s32.totalorder %s164_s19, 0 }
  0x45   : > { %s5342_s6 = smul.u32 48, %s6027_s26  ;;  %s7134_s5 = sld [smem:[#allocation31_spill]] }
  0x46   : > { %s7182_s11 = smov (%p42_p3, %s7180_s11), 0  ;;  %s541_s17 = scalar_lea.vmem [#allocation7], %s5341_s24 }
  0x47   : > { %7131 = sst [smem:[#allocation24_spill]] %s7182_s11  ;;  %s549_s27 = sshll.u32 %s541_s17, 4  ;;  %s6259_s27 = int_to_ptr.vmem [resolvable:$true] %s549_s27 }
  0x48   : > { %s6252_s1 = scalar_select %p165_p6, %s6015_s23, %s7132_s10  }
  0x49   : > { %s6261_s19 = scalar_lea.sflag [#allocation4], %s537_s16  ;;  %p7135_p12 = scmp.ne.s32.totalorder %s7128_s30, 0 }
  0x4a   : > { %7133 = sst [smem:[#allocation25_spill]] %s6252_s1 }
  0x4b   : > { %s6257_s25 = scalar_lea.hbm %s7134_s5, %s5342_s6  ;;  %p6267_p1 = pneg %p7135_p12 }
  0x4c   : > { %s5693_s4 = scalar_lea.hbm %s6257_s25, 48  ;;  %s5698_s24 = scalar_lea.hbm %s7134_s5, 96 }
  0x4d   : > { %p5694_p8 = scmp.ne.s32.totalorder %s6257_s25, %s5693_s4  ;;  %p5699_p5 = scmp.lt.u32.totalorder %s6257_s25, %s7134_s5 }
  0x4e   : > { %s7136_s10 = scalar_select %p6267_p1, 1, 0 }
  0x4f   : > { %p5696_p2 = pnand %p6267_p1, %p5694_p8  ;;  %p5700_p7 = scmp.lt.u32.totalorder %s5698_s24, %s5693_s4 }
  0x50   : > { %p5702_p10 = scmp.lt.u32.totalorder %s5693_s4, %s6257_s25 }
  0x51   : > { %p5697_p4 = pneg %p5696_p2  ;;  %p5701_p9 = por %p5700_p7, %p5699_p5 }
  0x53   : > { %p5703_p13 = por %p5702_p10, %p5701_p9 }
  0x55   : > { %p5704_p3 = pnand %p5703_p13, %p5697_p4 }
  0x57   : > { %5707 = shalt.err (!%p5704_p3)
}
  0x58   : > { %s5708_s16 = scalar_lea.vmem %s6259_s27, 48  ;;  %s6038_s2 = smov [#allocation7]  }
  0x59   : > { %p5709_p6 = scmp.ne.s32.totalorder %s6259_s27, %s5708_s16  ;;  %s5713_s6 = sshll.u32 %s6038_s2, 4  ;;  %s5714_s6 = int_to_ptr.vmem [resolvable:$false] %s5713_s6 }
  0x5a   : > { %s5715_s17 = scalar_lea.vmem %s5714_s6, 96  ;;  %p5716_p0 = scmp.lt.s32.totalorder %s6259_s27, %s5714_s6 }
  0x5b   : > { %p5711_p8 = pnand %p5709_p6, %p6267_p1  ;;  %p5717_p11 = scmp.lt.s32.totalorder %s5715_s17, %s5708_s16 }
  0x5d   : > { %p5712_p2 = pneg %p5711_p8  ;;  %p5718_p5 = por %p5717_p11, %p5716_p0 }
  0x5f   : > { %p5719_p7 = pnand %p5718_p5, %p5712_p2 }
  0x61   : > { %5722 = shalt.err (!%p5719_p7)
}
  0x62   : > { %5379 = dma.hbm_to_vmem [thread:$0]  (!%p7135_p12), %s6257_s25, 48, %s6259_s27, %s6261_s19  }
  0x63   : > { %s6292_s4 = sshll.u32 %s6027_s26, 4  ;;  %s567_s24 = scalar_lea.vmem [#allocation8], %s6203_s21 }
  0x64   : > { %s574_s20 = sshll.u32 %s567_s24, 4  ;;  %s7137_s7 = sld [smem:[#allocation33_spill]]  ;;  %s575_s20 = int_to_ptr.vmem [resolvable:$true] %s574_s20 }
  0x6a   : > { %s572_s16 = scalar_lea.hbm %s7137_s7, %s6292_s4  ;;  %s5728_s1 = scalar_lea.hbm %s7137_s7, 32 }
  0x6b   : > { %s5723_s17 = scalar_lea.hbm %s572_s16, 16  ;;  %p5729_p9 = scmp.lt.u32.totalorder %s572_s16, %s7137_s7 }
  0x6c   : > { %p5724_p11 = scmp.ne.s32.totalorder %s572_s16, %s5723_s17  ;;  %p5730_p10 = scmp.lt.u32.totalorder %s5728_s1, %s5723_s17 }
  0x6d   : > { %p5732_p3 = scmp.lt.u32.totalorder %s5723_s17, %s572_s16 }
  0x6e   : > { %p5726_p0 = pnand %p5724_p11, %p6267_p1  ;;  %p5731_p13 = por %p5730_p10, %p5729_p9 }
  0x70   : > { %p5727_p4 = pneg %p5726_p0  ;;  %p5733_p6 = por %p5732_p3, %p5731_p13 }
  0x72   : > { %p5734_p8 = pnand %p5733_p6, %p5727_p4 }
  0x74   : > { %5737 = shalt.err (!%p5734_p8)
}
  0x75   : > { %s5738_s24 = scalar_lea.vmem %s575_s20, 16  ;;  %s6039_s2 = smov [#allocation8]  }
  0x76   : > { %p5739_p2 = scmp.ne.s32.totalorder %s575_s20, %s5738_s24  ;;  %s5743_s6 = sshll.u32 %s6039_s2, 4  ;;  %s5744_s6 = int_to_ptr.vmem [resolvable:$false] %s5743_s6 }
  0x77   : > { %s5745_s5 = scalar_lea.vmem %s5744_s6, 32  ;;  %p5746_p11 = scmp.lt.s32.totalorder %s575_s20, %s5744_s6 }
  0x78   : > { %p5741_p5 = pnand %p5739_p2, %p6267_p1  ;;  %p5747_p0 = scmp.lt.s32.totalorder %s5745_s5, %s5738_s24 }
  0x7a   : > { %p5742_p7 = pneg %p5741_p5  ;;  %p5748_p12 = por %p5747_p0, %p5746_p11 }
  0x7c   : > { %p5749_p9 = pnand %p5748_p12, %p5742_p7 }
  0x7e   : > { %5752 = shalt.err (!%p5749_p9)
}
  0x7f   : > { %p7138_p10 = scmp.ne.s32.totalorder %s7128_s30, 0  ;;  %s7139_s8 = sld [smem:[#allocation34_spill]] }
  0x80   : > { %s584_s25 = scalar_lea.vmem [#allocation9], %s6203_s21  ;;  %s7140_s9 = sld [smem:[#allocation35_spill]] }
  0x81   : > { %5382 = dma.hbm_to_vmem [thread:$0]  (!%p7138_p10), %s572_s16, 16, %s575_s20, %s6261_s19  }
  0x82   : > { %s591_s27 = sshll.u32 %s584_s25, 4  ;;  %s592_s27 = int_to_ptr.vmem [resolvable:$true] %s591_s27 }
  0x85   : > { %s6316_s17 = scalar_lea.hbm %s7139_s8, %s6292_s4  ;;  %s5758_s11 = scalar_lea.hbm %s7139_s8, 32 }
  0x86   : > { %s6323_s6 = scalar_lea.hbm %s7140_s9, %s6292_s4  ;;  %s5753_s5 = scalar_lea.hbm %s6316_s17, 16 }
  0x87   : > { %p5754_p12 = scmp.ne.s32.totalorder %s6316_s17, %s5753_s5  ;;  %p5759_p3 = scmp.lt.u32.totalorder %s6316_s17, %s7139_s8 }
  0x88   : > { %p5760_p6 = scmp.lt.u32.totalorder %s5758_s11, %s5753_s5  ;;  %p5762_p2 = scmp.lt.u32.totalorder %s5753_s5, %s6316_s17 }
  0x89   : > { %p5756_p4 = pnand %p5754_p12, %p6267_p1 }
  0x8a   : > { %p5761_p8 = por %p5760_p6, %p5759_p3 }
  0x8b   : > { %p5757_p13 = pneg %p5756_p4 }
  0x8c   : > { %p5763_p5 = por %p5762_p2, %p5761_p8 }
  0x8e   : > { %p5764_p7 = pnand %p5763_p5, %p5757_p13 }
  0x90   : > { %5767 = shalt.err (!%p5764_p7)
}
  0x91   : > { %s5768_s25 = scalar_lea.vmem %s592_s27, 16  ;;  %s6040_s24 = smov [#allocation9]  }
  0x92   : > { %p5769_p11 = scmp.ne.s32.totalorder %s592_s27, %s5768_s25  ;;  %s5773_s2 = sshll.u32 %s6040_s24, 4  ;;  %s5774_s2 = int_to_ptr.vmem [resolvable:$false] %s5773_s2 }
  0x93   : > { %s5775_s20 = scalar_lea.vmem %s5774_s2, 32  ;;  %p5776_p12 = scmp.lt.s32.totalorder %s592_s27, %s5774_s2 }
  0x94   : > { %p5771_p0 = pnand %p5769_p11, %p6267_p1  ;;  %p5777_p4 = scmp.lt.s32.totalorder %s5775_s20, %s5768_s25 }
  0x96   : > { %p5772_p9 = pneg %p5771_p0  ;;  %p5778_p10 = por %p5777_p4, %p5776_p12 }
  0x98   : > { %p5779_p3 = pnand %p5778_p10, %p5772_p9 }
  0x9a   : > { %5782 = shalt.err (!%p5779_p3)
}
  0x9b   : > { %p7141_p6 = scmp.ne.s32.totalorder %s7128_s30, 0  ;;  %s601_s7 = scalar_lea.vmem [#allocation10], %s6203_s21 }
  0x9c   : > { %s608_s5 = sshll.u32 %s601_s7, 4  ;;  %s4864_s16 = sshll.u32 %s6203_s21, 7  ;;  %s609_s5 = int_to_ptr.vmem [resolvable:$true] %s608_s5 }
  0x9d   : > { %5385 = dma.hbm_to_vmem [thread:$0]  (!%p7141_p6), %s6316_s17, 16, %s592_s27, %s6261_s19  }
  0x9e   : > { %s5783_s11 = scalar_lea.hbm %s6323_s6, 16  ;;  %s5788_s24 = scalar_lea.hbm %s7140_s9, 32 }
  0x9f   : > { %p5784_p13 = scmp.ne.s32.totalorder %s6323_s6, %s5783_s11  ;;  %p5789_p2 = scmp.lt.u32.totalorder %s6323_s6, %s7140_s9 }
  0xa0   : > { %p5790_p5 = scmp.lt.u32.totalorder %s5788_s24, %s5783_s11  ;;  %p5792_p11 = scmp.lt.u32.totalorder %s5783_s11, %s6323_s6 }
  0xa1   : > { %p5786_p10 = pnand %p5784_p13, %p6267_p1 }
  0xa2   : > { %p5791_p7 = por %p5790_p5, %p5789_p2 }
  0xa3   : > { %p5787_p8 = pneg %p5786_p10 }
  0xa4   : > { %p5793_p0 = por %p5792_p11, %p5791_p7 }
  0xa6   : > { %p5794_p9 = pnand %p5793_p0, %p5787_p8 }
  0xa8   : > { %5797 = shalt.err (!%p5794_p9)
}
  0xa9   : > { %s5798_s17 = scalar_lea.vmem %s609_s5, 16  ;;  %s6041_s27 = smov [#allocation10]  }
  0xaa   : > { %p5799_p12 = scmp.ne.s32.totalorder %s609_s5, %s5798_s17  ;;  %s5803_s7 = sshll.u32 %s6041_s27, 4  ;;  %s5804_s7 = int_to_ptr.vmem [resolvable:$false] %s5803_s7 }
  0xab   : > { %s5805_s1 = scalar_lea.vmem %s5804_s7, 32  ;;  %p5806_p13 = scmp.lt.s32.totalorder %s609_s5, %s5804_s7 }
  0xac   : > { %p5801_p4 = pnand %p5799_p12, %p6267_p1  ;;  %p5807_p10 = scmp.lt.s32.totalorder %s5805_s1, %s5798_s17 }
  0xae   : > { %p5802_p3 = pneg %p5801_p4  ;;  %p5808_p6 = por %p5807_p10, %p5806_p13 }
  0xb0   : > { %p5809_p2 = pnand %p5808_p6, %p5802_p3 }
  0xb2   : > { %5812 = shalt.err (!%p5809_p2)
}
  0xb3   : > { %p7142_p5 = scmp.ne.s32.totalorder %s7128_s30, 0  ;;  %s4985_s11 = sshll.u32 %s6027_s26, 11 }
  0xb4   : > { %s634_s25 = scalar_lea.vmem [#allocation11], %s4864_s16  ;;  %s7143_s12 = sld [smem:[#allocation38_spill]] }
  0xb5   : > { %5388 = dma.hbm_to_vmem [thread:$0]  (!%p7142_p5), %s6323_s6, 16, %s609_s5, %s6261_s19  }
  0xb6   : > { %s641_s24 = sshll.u32 %s634_s25, 4  ;;  %s6371_s24 = int_to_ptr.vmem [resolvable:$true] %s641_s24 }
  0xba   : > { %s6369_s27 = scalar_lea.hbm %s7143_s12, %s4985_s11  ;;  %s5818_s16 = scalar_lea.hbm %s7143_s12, 4096 }
  0xbb   : > { %s5813_s17 = scalar_lea.hbm %s6369_s27, 2048  ;;  %p5819_p11 = scmp.lt.u32.totalorder %s6369_s27, %s7143_s12 }
  0xbc   : > { %p5814_p6 = scmp.ne.s32.totalorder %s6369_s27, %s5813_s17  ;;  %p5820_p0 = scmp.lt.u32.totalorder %s5818_s16, %s5813_s17 }
  0xbd   : > { %p5822_p12 = scmp.lt.u32.totalorder %s5813_s17, %s6369_s27 }
  0xbe   : > { %p5816_p8 = pnand %p5814_p6, %p6267_p1  ;;  %p5821_p9 = por %p5820_p0, %p5819_p11 }
  0xc0   : > { %p5817_p7 = pneg %p5816_p8  ;;  %p5823_p4 = por %p5822_p12, %p5821_p9 }
  0xc2   : > { %p5824_p3 = pnand %p5823_p4, %p5817_p7 }
  0xc4   : > { %5827 = shalt.err (!%p5824_p3)
}
  0xc5   : > { %s5828_s11 = scalar_lea.vmem %s6371_s24, 2048  ;;  %s6042_s25 = smov [#allocation11]  }
  0xc6   : > { %p5829_p13 = scmp.ne.s32.totalorder %s6371_s24, %s5828_s11  ;;  %s5833_s2 = sshll.u32 %s6042_s25, 4  ;;  %s5834_s2 = int_to_ptr.vmem [resolvable:$false] %s5833_s2 }
  0xc7   : > { %s5835_s20 = scalar_lea.vmem %s5834_s2, 4096  ;;  %p5836_p6 = scmp.lt.s32.totalorder %s6371_s24, %s5834_s2 }
  0xc8   : > { %p5831_p10 = pnand %p5829_p13, %p6267_p1  ;;  %p5837_p8 = scmp.lt.s32.totalorder %s5835_s20, %s5828_s11 }
  0xca   : > { %p5832_p2 = pneg %p5831_p10  ;;  %p5838_p11 = por %p5837_p8, %p5836_p6 }
  0xcc   : > { %p5839_p0 = pnand %p5838_p11, %p5832_p2 }
  0xce   : > { %5842 = shalt.err (!%p5839_p0)
}
  0xcf   : > { %s6043_s17 = smov 64   ;;  %s6044_s6 = smov 4  }
  0xd0   : > { %5391 = dma.hbm_to_vmem [thread:$0]  (!%p7142_p5), %s6369_s27, 2048, %s6371_s24, %s6261_s19, %s6043_s17, %s6043_s17, %s6044_s6  }
  0xd1   : > { %s7144_s13 = sld [smem:[#allocation39_spill]]  ;;  %s654_s1 = scalar_lea.vmem [#allocation12], %s6203_s21 }
  0xd2   : > { %s661_s11 = sshll.u32 %s654_s1, 4  ;;  %s7145_s14 = sld [smem:[#allocation40_spill]]  ;;  %s662_s11 = int_to_ptr.vmem [resolvable:$true] %s661_s11 }
  0xd7   : > { %s6399_s7 = scalar_lea.hbm %s7144_s13, %s6292_s4  ;;  %s5848_s17 = scalar_lea.hbm %s7144_s13, 32 }
  0xd8   : > { %s6406_s20 = scalar_lea.hbm %s7145_s14, %s6292_s4  ;;  %s5843_s8 = scalar_lea.hbm %s6399_s7, 16 }
  0xd9   : > { %p5844_p7 = scmp.ne.s32.totalorder %s6399_s7, %s5843_s8  ;;  %p5849_p4 = scmp.lt.u32.totalorder %s6399_s7, %s7144_s13 }
  0xda   : > { %p5850_p3 = scmp.lt.u32.totalorder %s5848_s17, %s5843_s8  ;;  %p5852_p10 = scmp.lt.u32.totalorder %s5843_s8, %s6399_s7 }
  0xdb   : > { %p5846_p9 = pnand %p5844_p7, %p6267_p1 }
  0xdc   : > { %p5851_p13 = por %p5850_p3, %p5849_p4 }
  0xdd   : > { %p5847_p12 = pneg %p5846_p9 }
  0xde   : > { %p5853_p2 = por %p5852_p10, %p5851_p13 }
  0xe0   : > { %p5854_p6 = pnand %p5853_p2, %p5847_p12 }
  0xe2   : > { %5857 = shalt.err (!%p5854_p6)
}
  0xe3   : > { %s5858_s16 = scalar_lea.vmem %s662_s11, 16  ;;  %s6045_s1 = smov [#allocation12]  }
  0xe4   : > { %p5859_p8 = scmp.ne.s32.totalorder %s662_s11, %s5858_s16  ;;  %s5863_s25 = sshll.u32 %s6045_s1, 4  ;;  %s5864_s25 = int_to_ptr.vmem [resolvable:$false] %s5863_s25 }
  0xe5   : > { %s5865_s2 = scalar_lea.vmem %s5864_s25, 32  ;;  %p5866_p7 = scmp.lt.s32.totalorder %s662_s11, %s5864_s25 }
  0xe6   : > { %p5861_p11 = pnand %p5859_p8, %p6267_p1  ;;  %p5867_p9 = scmp.lt.s32.totalorder %s5865_s2, %s5858_s16 }
  0xe8   : > { %p5862_p0 = pneg %p5861_p11  ;;  %p5868_p5 = por %p5867_p9, %p5866_p7 }
  0xea   : > { %p5869_p3 = pnand %p5868_p5, %p5862_p0 }
  0xec   : > { %5872 = shalt.err (!%p5869_p3)
}
  0xed   : > { %p7146_p4 = scmp.ne.s32.totalorder %s7128_s30, 0  ;;  %s671_s8 = scalar_lea.vmem [#allocation13], %s6203_s21 }
  0xee   : > { %s678_s24 = sshll.u32 %s671_s8, 4  ;;  %s6046_s27 = smov [#allocation5]   ;;  %s6427_s24 = int_to_ptr.vmem [resolvable:$true] %s678_s24 }
  0xef   : > { %5394 = dma.hbm_to_vmem [thread:$0]  (!%p7146_p4), %s6399_s7, 16, %s662_s11, %s6261_s19  }
  0xf0   : > { %s501_s17 = sshll.u32 %s6046_s27, 4  ;;  %s5873_s6 = scalar_lea.hbm %s6406_s20, 16  ;;  %s502_s17 = int_to_ptr.vmem [resolvable:$true] %s501_s17 }
  0xf1   : > { %p5874_p5 = scmp.ne.s32.totalorder %s6406_s20, %s5873_s6  ;;  %s5878_s1 = scalar_lea.hbm %s7145_s14, 32 }
  0xf2   : > { %p5879_p10 = scmp.lt.u32.totalorder %s6406_s20, %s7145_s14  ;;  %p5880_p2 = scmp.lt.u32.totalorder %s5878_s1, %s5873_s6 }
  0xf3   : > { %p5876_p12 = pnand %p5874_p5, %p6267_p1  ;;  %p5882_p8 = scmp.lt.u32.totalorder %s5873_s6, %s6406_s20 }
  0xf4   : > { %p5881_p6 = por %p5880_p2, %p5879_p10 }
  0xf5   : > { %p5877_p13 = pneg %p5876_p12 }
  0xf6   : > { %p5883_p11 = por %p5882_p8, %p5881_p6 }
  0xf8   : > { %p5884_p0 = pnand %p5883_p11, %p5877_p13 }
  0xfa   : > { %5887 = shalt.err (!%p5884_p0)
}
  0xfb   : > { %s5888_s7 = scalar_lea.vmem %s6427_s24, 16  ;;  %s6047_s11 = smov [#allocation13]  }
  0xfc   : > { %p5889_p7 = scmp.ne.s32.totalorder %s6427_s24, %s5888_s7  ;;  %s5893_s8 = sshll.u32 %s6047_s11, 4  ;;  %s5894_s8 = int_to_ptr.vmem [resolvable:$false] %s5893_s8 }
  0xfd   : > { %s5895_s27 = scalar_lea.vmem %s5894_s8, 32  ;;  %p5896_p5 = scmp.lt.s32.totalorder %s6427_s24, %s5894_s8 }
  0xfe   : > { %p5891_p9 = pnand %p5889_p7, %p6267_p1  ;;  %p5897_p12 = scmp.lt.s32.totalorder %s5895_s27, %s5888_s7 }
 0x100   : > { %p5892_p3 = pneg %p5891_p9  ;;  %p5898_p10 = por %p5897_p12, %p5896_p5 }
 0x102   : > { %p5899_p2 = pnand %p5898_p10, %p5892_p3 }
 0x104   : > { %5902 = shalt.err (!%p5899_p2)
}
 0x105   : > { %5397 = dma.hbm_to_vmem [thread:$0]  (!%p7146_p4), %s6406_s20, 16, %s6427_s24, %s6261_s19  }
 0x106   : > { %s7147_s3 = sld [smem:[#allocation29_spill]]  ;;  %p7148_p6 = scmp.ne.s32.totalorder %s7127_s29, 0 }
 0x108   : > { %p7149_p8 = pneg %p7148_p6 }
 0x10c   : > { %s5903_s16 = scalar_lea.hbm %s7147_s3, 16 }
 0x10d   : > { %p5904_p13 = scmp.ne.s32.totalorder %s7147_s3, %s5903_s16  ;;  %p5910_p7 = scmp.lt.u32.totalorder %s5903_s16, %s7147_s3 }
 0x10f   : > { %p5906_p11 = pnand %p5904_p13, %p7149_p8 }
 0x111   : > { %p5907_p0 = pneg %p5906_p11 }
 0x113   : > { %p5912_p9 = pnand %p5910_p7, %p5907_p0 }
 0x115   : > { %5915 = shalt.err (!%p5912_p9)
}
 0x116   : > { %s5916_s20 = scalar_lea.vmem %s502_s17, 16  ;;  %p7150_p5 = pmov %p7149_p8 }
 0x117   : > { %p5917_p3 = scmp.ne.s32.totalorder %s502_s17, %s5916_s20  ;;  %s5923_s24 = scalar_lea.vmem %s502_s17, 32 }
 0x118   : > { %p5924_p2 = scmp.lt.s32.totalorder %s502_s17, %s502_s17  ;;  %p5925_p4 = scmp.lt.s32.totalorder %s5923_s24, %s5916_s20 }
 0x119   : > { %p5919_p12 = pnand %p5917_p3, %p7150_p5 }
 0x11a   : > { %p5926_p1 = por %p5925_p4, %p5924_p2 }
 0x11b   : > { %p5920_p10 = pneg %p5919_p12 }
 0x11d   : > { %p5927_p8 = pnand %p5926_p1, %p5920_p10 }
 0x11f   : > { %5930 = shalt.err (!%p5927_p8)
}
 0x120   : > { %5375 = dma.hbm_to_vmem [thread:$0]  (!%p7148_p6), %s7147_s3, 16, %s502_s17, [#allocation6]  }
 0x121   : > { %s7151_s15 = sld [smem:[#allocation41_spill]]  ;;  %s688_s16 = scalar_lea.vmem [#allocation14], %s6203_s21 }
 0x122   : > { %s695_s1 = sshll.u32 %s688_s16, 4  ;;  %p7152_p4 = scmp.ne.s32.totalorder %s7136_s10, 0  ;;  %s696_s1 = int_to_ptr.vmem [resolvable:$true] %s695_s1 }
 0x127   : > { %s6475_s5 = scalar_lea.hbm %s7151_s15, %s6292_s4  ;;  %s5936_s17 = scalar_lea.hbm %s7151_s15, 32 }
 0x128   : > { %s5931_s29 = scalar_lea.hbm %s6475_s5, 16  ;;  %p5937_p6 = scmp.lt.u32.totalorder %s6475_s5, %s7151_s15 }
 0x129   : > { %p5932_p1 = scmp.ne.s32.totalorder %s6475_s5, %s5931_s29  ;;  %p5938_p0 = scmp.lt.u32.totalorder %s5936_s17, %s5931_s29 }
 0x12a   : > { %p5940_p9 = scmp.lt.u32.totalorder %s5931_s29, %s6475_s5 }
 0x12b   : > { %p5934_p13 = pnand %p5932_p1, %p7152_p4  ;;  %p5939_p7 = por %p5938_p0, %p5937_p6 }
 0x12d   : > { %p5935_p11 = pneg %p5934_p13  ;;  %p5941_p3 = por %p5940_p9, %p5939_p7 }
 0x12f   : > { %p5942_p5 = pnand %p5941_p3, %p5935_p11 }
 0x131   : > { %5945 = shalt.err (!%p5942_p5)
}
 0x132   : > { %s5946_s21 = scalar_lea.vmem %s696_s1, 16  ;;  %s6048_s4 = smov [#allocation14]  }
 0x133   : > { %p5947_p12 = scmp.ne.s32.totalorder %s696_s1, %s5946_s21  ;;  %s5951_s24 = sshll.u32 %s6048_s4, 4  ;;  %s5952_s24 = int_to_ptr.vmem [resolvable:$false] %s5951_s24 }
 0x134   : > { %s5953_s11 = scalar_lea.vmem %s5952_s24, 32  ;;  %p5954_p8 = scmp.lt.s32.totalorder %s696_s1, %s5952_s24 }
 0x135   : > { %p5949_p10 = pnand %p5947_p12, %p7152_p4  ;;  %p5955_p1 = scmp.lt.s32.totalorder %s5953_s11, %s5946_s21 }
 0x137   : > { %p5950_p2 = pneg %p5949_p10  ;;  %p5956_p13 = por %p5955_p1, %p5954_p8 }
 0x139   : > { %p5957_p0 = pnand %p5956_p13, %p5950_p2 }
 0x13b   : > { %5960 = shalt.err (!%p5957_p0)
}
 0x13c   : > { %p7153_p6 = scmp.ne.s32.totalorder %s7128_s30, 0  ;;  %p7154_p11 = scmp.ne.s32.totalorder %s7126_s18, 0 }
 0x13d   : > { %p7155_p4 = scmp.ne.s32.totalorder (!%p7154_p11), %s7123_s0, 0 }
 0x13e   : > { %5400 = dma.hbm_to_vmem [thread:$0]  (!%p7153_p6), %s6475_s5, 16, %s696_s1, %s6261_s19  }
 0x13f   : > { %704 = sbr.rel (%p7154_p11) target bundleno = 4105 (0x1009), region = 84 }
 0x146   : > { %5994 = dma.done.wait (%p7155_p4), [#allocation4], 16  }
 0x147   : > { %5996 = vsyncadd (%p7155_p4), [#allocation4], 4294967280 }
 0x148   : > { %5998 = dma.done.wait (%p7155_p4), [#allocation6], 16  }
 0x149   : > { %6000 = vsyncadd (%p7155_p4), [#allocation6], 4294967280  ;;  %s7156_s30 = sadd.s32 4294967295, %s6035_s28   ;;  %s7157_s10 = sld [smem:[#allocation22_spill]] }
 0x14a   : > { %s714_s19 = sand.u32 1, %s7156_s30   ;;  %s6509_s8 = sand.u32 1, %s6011_s22  }
 0x14b   : > { %s5343_s18 = smul.u32 3, %s6509_s8  ;;  %s715_s27 = scalar_lea.sflag [#allocation4], %s714_s19 }
 0x14d   : > { %s6512_s6 = scalar_lea.vmem [#allocation7], %s5343_s18 }
 0x14f   : > { %p7158_p7 = scmp.ne.s32.totalorder %s7157_s10, 0 }
 0x151   : > { %6002 = dma.done.wait (%p7158_p7), %s715_s27, 2192  }
 0x152   : > { %6004 = vsyncadd (%p7158_p7), %s715_s27, 4294965104  ;;  %s7159_s0 = sld [smem:[#allocation19_spill]]  ;;  %s7160_s5 = sld [smem:[#allocation18_spill]] }
 0x153   : > { %s4873_s16 = sshll.u32 %s6509_s8, 7  ;;  %s7161_s21 = sld [smem:[#allocation27_spill]] }
 0x154   : > { %s7162_s30 = sld [smem:[#allocation26_spill]]  ;;  %s7163_s27 = sld [smem:[#allocation30_spill]] }
 0x155   : > { %s7164_s13 = sld [smem:[#allocation32_spill]]  ;;  %s7167_s9 = sld [smem:[#allocation42_spill]] }
 0x156   : > { %s6562_s20 = scalar_lea.vmem [#allocation11], %s4873_s16 }
 0x158   : > { %s4874_s1 = sshll.u32 %s7159_s0, 2  ;;  %p892_p9 = scmp.lt.s32.totalorder %s7160_s5, 1 }
 0x159   : > { %p882_p3 = scmp.lt.s32.totalorder %s4874_s1, 7  ;;  %p911_p5 = scmp.lt.s32.totalorder %s7159_s0, 1 }
 0x15a   : > { %s893_s29 = scalar_select %p892_p9, %s7160_s5, 1 }
 0x15b   : > { %s7184_s1 = smov (!%p882_p3, %s4874_s1), 7  ;;  %s7186_s0 = smov (!%p911_p5, %s7159_s0), 1 }
 0x15c   : > { %s5344_s25 = smul.u32 192, %s893_s29  ;;  %s4986_s2 = sshll.u32 %s893_s29, 6 }
 0x15d   : > { %s4875_s17 = sshll.u32 %s7184_s1, 3  ;;  %s6526_s4 = scalar_lea.vmem %s7161_s21, %s7184_s1 }
 0x15e   : > { %s885_s10 = scalar_lea.vmem %s7162_s30, %s4875_s17  ;;  %s6534_s3 = scalar_lea.vmem %s7163_s27, %s5344_s25 }
 0x15f   : > { %s6539_s14 = scalar_lea.vmem %s7164_s13, %s4986_s2  ;;  %s4987_s7 = sshll.u32 %s893_s29, 7 }
 0x160   : > { %s7165_s21 = sld [smem:[#allocation36_spill]]  ;;  %s4882_s24 = sshll.u32 %s893_s29, 1 }
 0x161   : > { %s7166_s30 = sld [smem:[#allocation37_spill]]  ;;  %s4988_s25 = sshll.u32 %s7186_s0, 5 }
 0x162   : > { %s6557_s12 = scalar_lea.vmem %s7167_s9, %s4988_s25  ;;  %s726_s13 = scalar_lea.vmem [#allocation8], %s6509_s8 }
 0x163   : > { %s734_s2 = scalar_lea.vmem [#allocation9], %s6509_s8  ;;  %s742_s27 = scalar_lea.vmem [#allocation10], %s6509_s8 }
 0x164   : > { %s767_s29 = scalar_lea.vmem [#allocation13], %s6509_s8  ;;  %s775_s1 = scalar_lea.vmem [#allocation14], %s6509_s8 }
 0x165   : > { %p4885_p12 = scmp.ne.s32.totalorder %s7160_s5, 0 }
 0x166   : > { %s6544_s15 = scalar_lea.vmem %s7165_s21, %s4987_s7  ;;  %s759_s7 = scalar_lea.vmem [#allocation12], %s6509_s8  ;;  %v921_v0 = vld [vmem:[%s885_s10] sm:$0xff] (!%p4885_p12)  ;;  %v923_v1 = vld [vmem:[%s885_s10 + $0x10] sm:$0xff] (!%p4885_p12)  ;;  %v922_v2 = vld [vmem:[%s885_s10 + $0x8] sm:$0xff] (!%p4885_p12) }
 0x167   : > { %s6549_s26 = scalar_lea.vmem %s7166_s30, %s4882_s24  ;;  %920 = sbr.rel (%p4885_p12) target bundleno = 679 (0x2a7), region = 128  ;;  %927 = vadd.xlane.f32.xlu0 (!%p4885_p12), %v921_v0  ;;  %931 = vadd.xlane.f32.xlu1 (!%p4885_p12), %v923_v1  ;;  %v924_v3 = vld [vmem:[%s885_s10 + $0x18] sm:$0xff] (!%p4885_p12)  ;;  %v4886_v33 = vld [vmem:[#allocation3] ss:$0 sm:$0xff] (!%p4885_p12)  ;;  %v4887_v35 = vld [vmem:[#allocation5] ss:$0 sm:$0xff] (!%p4885_p12) }
 0x16b   : > { %929 = vadd.xlane.f32.xlu0 (!%p4885_p12), %v922_v2  ;;  %933 = vadd.xlane.f32.xlu1 (!%p4885_p12), %v924_v3 }
 0x1f4   : > { %v928_v4 = vpop.xlane.xlu0 %927  ;;  %v932_v5 = vpop.xlane.xlu1 %931 }
 0x1f5   : > { %v936_v6 = vmul.f32 0.0078125, %v928_v4  ;;  %v938_v7 = vmul.f32 0.0078125, %v932_v5 }
 0x1f7   : > { %v940_v8 = vsub.f32 %v921_v0, %v936_v6  ;;  %v942_v9 = vsub.f32 %v923_v1, %v938_v7 }
 0x1f8   : > { %v930_v10 = vpop.xlane.xlu0 %929  ;;  %v934_v11 = vpop.xlane.xlu1 %933 }
 0x1f9   : > { %v937_v12 = vmul.f32 0.0078125, %v930_v10  ;;  %v944_v13 = vmul.f32 %v940_v8, %v940_v8  ;;  %v939_v14 = vmul.f32 0.0078125, %v934_v11  ;;  %v946_v17 = vmul.f32 %v942_v9, %v942_v9 }
 0x1fb   : > { %v941_v15 = vsub.f32 %v922_v2, %v937_v12  ;;  %948 = vadd.xlane.f32.xlu0 %v944_v13  ;;  %v943_v16 = vsub.f32 %v924_v3, %v939_v14 }
 0x1fd   : > { %v945_v18 = vmul.f32 %v941_v15, %v941_v15  ;;  %v947_v19 = vmul.f32 %v943_v16, %v943_v16 }
 0x1ff   : > { %952 = vadd.xlane.f32.xlu0 %v946_v17  ;;  %950 = vadd.xlane.f32.xlu1 %v945_v18 }
 0x203   : > { %954 = vadd.xlane.f32.xlu1 %v947_v19 }
 0x288   : > { %v949_v20 = vpop.xlane.xlu0 %948 }
 0x289   : > { %v956_v21 = vmul.f32 0.0078125, %v949_v20 }
 0x28b   : > { %v960_v22 = vadd.f32 1e-12, %v956_v21 }
 0x28c   : > { %v951_v23 = vpop.xlane.xlu1 %950  ;;  %v953_v24 = vpop.xlane.xlu0 %952 }
 0x28d   : > { %5477 = vrsqrt.f32 %v960_v22  ;;  %v957_v25 = vmul.f32 0.0078125, %v951_v23  ;;  %v958_v26 = vmul.f32 0.0078125, %v953_v24 }
 0x28f   : > { %v961_v27 = vadd.f32 1e-12, %v957_v25  ;;  %v962_v28 = vadd.f32 1e-12, %v958_v26 }
 0x290   : > { %v955_v29 = vpop.xlane.xlu1 %954 }
 0x291   : > { %5479 = vrsqrt.f32 %v961_v27  ;;  %v959_v30 = vmul.f32 0.0078125, %v955_v29 }
 0x292   : > { %5481 = vrsqrt.f32 %v962_v28 }
 0x293   : > { %v963_v31 = vadd.f32 1e-12, %v959_v30 }
 0x295   : > { %5483 = vrsqrt.f32 %v963_v31 }
 0x297   : > { %v5478_v32 = vpop.eup %5477 }
 0x298   : > { %v968_v34 = vmul.f32 %v5478_v32, %v940_v8 }
 0x29a   : > { %v978_v36 = vmul.f32 %v4886_v33, %v968_v34 }
 0x29b   : > { %v5480_v37 = vpop.eup %5479 }
 0x29c   : > { %v5482_v38 = vpop.eup %5481  ;;  %v988_v39 = vadd.f32 %v4887_v35, %v978_v36  ;;  %v969_v40 = vmul.f32 %v5480_v37, %v941_v15 }
 0x29d   : > { %v970_v41 = vmul.f32 %v5482_v38, %v942_v9 }
 0x29e   : > { %992 = vst [vmem:[#allocation2] sm:$0xff] %v988_v39  ;;  %v979_v42 = vmul.f32 %v4886_v33, %v969_v40 }
 0x29f   : > { %v5484_v43 = vpop.eup %5483  ;;  %v980_v44 = vmul.f32 %v4886_v33, %v970_v41 }
 0x2a0   : > { %v989_v45 = vadd.f32 %v4887_v35, %v979_v42  ;;  %v971_v46 = vmul.f32 %v5484_v43, %v943_v16 }
 0x2a1   : > { %v990_v47 = vadd.f32 %v4887_v35, %v980_v44 }
 0x2a2   : > { %993 = vst [vmem:[#allocation2 + $0x8] sm:$0xff] %v989_v45  ;;  %v981_v48 = vmul.f32 %v4886_v33, %v971_v46 }
 0x2a3   : > { %994 = vst [vmem:[#allocation2 + $0x10] sm:$0xff] %v990_v47 }
 0x2a4   : > { %v991_v49 = vadd.f32 %v4887_v35, %v981_v48 }
 0x2a6   : > { %995 = vst [vmem:[#allocation2 + $0x18] sm:$0xff] %v991_v49 }
 0x2a7 PF: > { %v5485_v50 = vld [vmem:[%s6534_s3 + $0x4] ss:$12 sps:$4 sm:$0xff]   ;;  %v5487_v51 = vld [vmem:[%s6534_s3] ss:$12 sps:$4 sm:$0xff]   ;;  %v6049_v52 = vmov 0   ;;  %v6050_v17 = vmov 0.0   ;;  %v1036_v18 = vlaneseq }
 0x2a8   : > { %1211 = vmatprep.mubr.bf16.mxu0 %v6049_v52  ;;  %1179 = vmatprep.subr.bf16.mxu0 %v5485_v50  ;;  %v5488_v53 = vld [vmem:[%s6534_s3 + $0x1c] ss:$12 sps:$4 sm:$0xff]   ;;  %v5490_v54 = vld [vmem:[%s6534_s3 + $0x18] ss:$12 sps:$4 sm:$0xff]   ;;  %v5491_v55 = vld [vmem:[%s6534_s3 + $0x34] ss:$12 sps:$4 sm:$0xff]  }
 0x2a9   : > { %1180 = vmatpush1.bf16.msra.mxu0 %v5487_v51  ;;  %v5493_v56 = vld [vmem:[%s6534_s3 + $0x30] ss:$12 sps:$4 sm:$0xff]   ;;  %v5494_v57 = vld [vmem:[%s6534_s3 + $0x4c] ss:$12 sps:$4 sm:$0xff]   ;;  %v996_v58 = vld [vmem:[#allocation2] sm:$0xff]  ;;  %vm6051_vm0 = vmmov 0  }
 0x2aa   : > { %1181 = vmatprep.subr.bf16.mxu0 %v5488_v53  ;;  %v5496_v59 = vld [vmem:[%s6534_s3 + $0x48] ss:$12 sps:$4 sm:$0xff]   ;;  %v5497_v60 = vld [vmem:[%s6534_s3 + $0x64] ss:$12 sps:$4 sm:$0xff]   ;;  %v5510_v0 = vld [vmem:[%s6534_s3 + $0x20] ss:$12 sps:$4 sm:$0xff]  }
 0x2ab   : > { %v997_v61 = vld [vmem:[#allocation2 + $0x8] sm:$0xff]  ;;  %v5511_v3 = vld [vmem:[%s6534_s3 + $0x38] ss:$12 sps:$4 sm:$0xff]   ;;  %v5503_v5 = vld [vmem:[%s6534_s3 + $0x94] ss:$12 sps:$4 sm:$0xff]   ;;  %v6600_v19 = vshrl.u32 %v1036_v18, 7 }
 0x2ac   : > { %v1000_v62 = vpack.c.bf16 %v997_v61, %v996_v58  ;;  %v5509_v63 = vld [vmem:[%s6534_s3 + $0x8] ss:$12 sps:$4 sm:$0xff]   ;;  %v5499_v1 = vld [vmem:[%s6534_s3 + $0x60] ss:$12 sps:$4 sm:$0xff]   ;;  %v5502_v4 = vld [vmem:[%s6534_s3 + $0x78] ss:$12 sps:$4 sm:$0xff]  }
 0x2ad   : > { %1182 = vmatpush1.bf16.msra.mxu0 %v5490_v54  ;;  %5101 = vmatprep.subr.bf16.mxu1 %v5509_v63  ;;  %v5500_v2 = vld [vmem:[%s6534_s3 + $0x7c] ss:$12 sps:$4 sm:$0xff]   ;;  %v5506_v8 = vld [vmem:[%s6534_s3 + $0xac] ss:$12 sps:$4 sm:$0xff]   ;;  %v998_v13 = vld [vmem:[#allocation2 + $0x10] sm:$0xff]  ;;  %v1038_v20 = vsub.s32 0, %v6600_v19 }
 0x2ae   : > { %1183 = vmatprep.subr.bf16.mxu0 %v5491_v55  ;;  %5117 = vmatprep.mubr.bf16.mxu1 %v1000_v62  ;;  %v5512_v6 = vld [vmem:[%s6534_s3 + $0x50] ss:$12 sps:$4 sm:$0xff]   ;;  %v5513_v9 = vld [vmem:[%s6534_s3 + $0x68] ss:$12 sps:$4 sm:$0xff]   ;;  %v5514_v11 = vld [vmem:[%s6534_s3 + $0x80] ss:$12 sps:$4 sm:$0xff]  }
 0x2af   : > { %5102 = vmatpush3.bf16.msra.mxu1 %v5509_v63  ;;  %v5505_v7 = vld [vmem:[%s6534_s3 + $0x90] ss:$12 sps:$4 sm:$0xff]   ;;  %v5508_v10 = vld [vmem:[%s6534_s3 + $0xa8] ss:$12 sps:$4 sm:$0xff]   ;;  %v5515_v12 = vld [vmem:[%s6534_s3 + $0x98] ss:$12 sps:$4 sm:$0xff]  }
 0x2b0   : > { %5103 = vmatprep.subr.bf16.mxu1 %v5510_v0  ;;  %v999_v14 = vld [vmem:[#allocation2 + $0x18] sm:$0xff]  ;;  %v1034_v21 = vld [vmem:[%s6512_s6] sm:$0x7]  ;;  %v1042_v22 = vsub.s32 1, %v6600_v19  ;;  %v6605_v23 = vand.u32 127, %v1036_v18  ;;  %v1046_v35 = vsub.s32 2, %v6600_v19 }
 0x2b1   : > { %1184 = vmatpush1.bf16.msra.mxu0 %v5493_v56  ;;  %v5516_v15 = vld [vmem:[%s6534_s3 + $0xb0] ss:$12 sps:$4 sm:$0xff]   ;;  %v1001_v16 = vpack.c.bf16 %v999_v14, %v998_v13  ;;  %v1039_v24 = vrot.slane %v1034_v21, %v1038_v20  ;;  %v6700_v13 = vld [vmem:[%s6526_s4] ss:$0 sm:$0xff]  ;;  %vm1612_vm5 = vcmask 64512   ;;  %s7168_s3 = sld [smem:[#allocation18_spill]] }
 0x2b2   : > { %1185 = vmatprep.subr.bf16.mxu0 %v5494_v57  ;;  %v1043_v25 = vrot.slane %v1034_v21, %v1042_v22  ;;  %vm1288_vm1 = vcmp.lt.s32.totalorder %v6605_v23, 32  ;;  %vm1657_vm2 = vcmp.ge.s32.totalorder %v6605_v23, 32  ;;  %vm1658_vm3 = vcmp.lt.s32.totalorder %v6605_v23, 64 }
 0x2b3   : > { %5104 = vmatpush3.bf16.msra.mxu1 %v5510_v0  ;;  %v6617_v31 = vsel %vm1288_vm1, 1.0, %v6050_v17  ;;  %v1047_v41 = vrot.slane %v1034_v21, %v1046_v35  ;;  %vm1659_vm4 = vmand %vm1657_vm2, %vm1658_vm3  ;;  %vm2586_vm6 = vcmp.ge.s32.totalorder %v6605_v23, 64  ;;  %vm2587_vm7 = vcmp.lt.s32.totalorder %v6605_v23, 96 }
 0x2b4   : > { %5105 = vmatprep.subr.bf16.mxu1 %v5511_v3  ;;  %v6654_v51 = vsel %vm1659_vm4, 1.0, %v6050_v17  ;;  %vm2588_vm8 = vmand %vm2586_vm6, %vm2587_vm7  ;;  %vm3227_vm9 = vcmp.ge.s32.totalorder %v6605_v23, 96 }
 0x2b5   : > { %1186 = vmatpush1.bf16.msra.mxu0 %v5496_v59 }
 0x2b6   : > { %1187 = vmatprep.subr.bf16.mxu0 %v5497_v60 }
 0x2b7   : > { %5106 = vmatpush3.bf16.msra.mxu1 %v5511_v3  ;;  %p4982_p10 = scmp.ne.s32.totalorder %s7168_s3, 1 }
 0x2b8   : > { %5107 = vmatprep.subr.bf16.mxu1 %v5512_v6 }
 0x2b9   : > { %1188 = vmatpush1.bf16.msra.mxu0 %v5499_v1 }
 0x2ba   : > { %1189 = vmatprep.subr.bf16.mxu0 %v5500_v2 }
 0x2bb   : > { %5108 = vmatpush3.bf16.msra.mxu1 %v5512_v6 }
 0x2bc   : > { %5109 = vmatprep.subr.bf16.mxu1 %v5513_v9 }
 0x2bd   : > { %1190 = vmatpush1.bf16.msra.mxu0 %v5502_v4 }
 0x2be   : > { %1191 = vmatprep.subr.bf16.mxu0 %v5503_v5 }
 0x2bf   : > { %5110 = vmatpush3.bf16.msra.mxu1 %v5513_v9 }
 0x2c0   : > { %5111 = vmatprep.subr.bf16.mxu1 %v5514_v11 }
 0x2c1   : > { %1192 = vmatpush1.bf16.msra.mxu0 %v5505_v7 }
 0x2c2   : > { %1193 = vmatprep.subr.bf16.mxu0 %v5506_v8 }
 0x2c3   : > { %5112 = vmatpush3.bf16.msra.mxu1 %v5514_v11 }
 0x2c4   : > { %5113 = vmatprep.subr.bf16.mxu1 %v5515_v12 }
 0x2c5   : > { %1194 = vmatpush1.bf16.msra.mxu0 %v5508_v10 }
 0x2c6   : > { %5131 = vmatprep.subr.mxu0 %v6050_v17 }
 0x2c7   : > { %5114 = vmatpush3.bf16.msra.mxu1 %v5515_v12 }
 0x2c8   : > { %1212 = vmatmul.mubr.bf16.vlgmr.msra.gmra.mrb[0].mxu0 %v1000_v62  ;;  %5115 = vmatprep.subr.bf16.mxu1 %v5516_v15 }
 0x2c9   : > { %1221 = vmatprep.mubr.bf16.mxu0 %v6049_v52 }
 0x2cb   : > { %5116 = vmatpush3.bf16.msra.mxu1 %v5516_v15 }
 0x2cc   : > { %5121 = vmatprep.subr.mxu1 %v6050_v17 }
 0x2ce   : > { %5118 = vmatmul.mubr.bf16.vlgmr.msra.gmra.mrb[0].mxu1 %v1001_v16 }
 0x2cf   : > { %5123 = vmatprep.mubr.msk.f32.mxu1 %vm6051_vm0, %v6050_v17 }
 0x2d0   : > { %1222 = vmatmul.mubr.bf16.gmra.mrb[4].mxu0 %v1001_v16 }
 0x2d1   : > { %5133 = vmatprep.mubr.msk.f32.mxu0 %vm6051_vm0, %v6050_v17 }
 0x39b   : > { %v1213_v26 = vpop.f32.mrb[0].mxu0 }
 0x39c   : > { %v6612_v27 = vadd.f32 %v1213_v26, %v1039_v24  ;;  %v1215_v28 = vpop.f32.mrb[1].mxu0 }
 0x39d   : > { %v6614_v29 = vadd.f32 %v1215_v28, %v1043_v25  ;;  %v1217_v30 = vpop.f32.mrb[2].mxu0 }
 0x39e   : > { %v1219_v32 = vpop.f32.mrb[3].mxu0  ;;  %v6620_v33 = vadd.f32 %v1217_v30, %v1039_v24  ;;  %v1292_v34 = vmul.f32 %v6617_v31, %v6612_v27  ;;  %v1662_v57 = vmul.f32 %v6654_v51, %v6612_v27 }
 0x39f   : > { %5122 = vmatpush3.xpose.msra.mxu1 %v6614_v29  ;;  %v6626_v36 = vadd.f32 %v1219_v32, %v1043_v25 }
 0x3a0   : > { %5126 = vmatprep.subr.mxu1 %v6050_v17  ;;  %v1293_v40 = vmul.f32 %v6617_v31, %v6620_v33  ;;  %v1663_v58 = vmul.f32 %v6654_v51, %v6620_v33 }
 0x3a1   : > { %v5119_v47 = vpop.f32.mrb[0].mxu1 }
 0x3a2   : > { %5124 = vmatmul.mubr.f32.vlgmr.msra.gmra.mrb[4].mxu1 %v1292_v34  ;;  %v6650_v49 = vadd.f32 %v5119_v47, %v1047_v41  ;;  %v1266_v50 = vpop.f32.mrb[1].mxu1  ;;  %v6709_v34 = vld [vmem:[%s6526_s4 + $0x2] ss:$0 sm:$0xff] }
 0x3a3   : > { %v1223_v37 = vpop.f32.mrb[4].mxu0  ;;  %5127 = vmatpush3.xpose.msra.mxu1 %v6626_v36  ;;  %5128 = vmatprep.mubr.msk.f32.mxu1 %vm6051_vm0, %v6050_v17  ;;  %v5120_v53 = vpop.f32.mrb[2].mxu1  ;;  %v6689_v61 = vadd.f32 %v1266_v50, %v1047_v41 }
 0x3a4   : > { %v6633_v38 = vadd.f32 %v1223_v37, %v1039_v24  ;;  %v1225_v39 = vpop.f32.mrb[5].mxu0  ;;  %5136 = vmatprep.subr.mxu1 %v6050_v17  ;;  %v6659_v55 = vadd.f32 %v5120_v53, %v1047_v41  ;;  %v1269_v56 = vpop.f32.mrb[3].mxu1 }
 0x3a5   : > { %v6638_v42 = vadd.f32 %v1225_v39, %v1043_v25  ;;  %v1227_v43 = vpop.f32.mrb[6].mxu0  ;;  %v6691_v62 = vadd.f32 %v1269_v56, %v1047_v41  ;;  %v1666_v63 = vmul.f32 %v6654_v51, %v6689_v61 }
 0x3a6   : > { %v6640_v44 = vadd.f32 %v1227_v43, %v1039_v24  ;;  %v1229_v45 = vpop.f32.mrb[7].mxu0  ;;  %5129 = vmatmul.mubr.f32.vlgmr.msra.gmra.mrb[6].mxu1 %v1293_v40  ;;  %v1294_v48 = vmul.f32 %v6617_v31, %v6633_v38  ;;  %v1664_v59 = vmul.f32 %v6654_v51, %v6633_v38  ;;  %v6704_v24 = vld [vmem:[%s6526_s4 + $0x1] ss:$0 sm:$0xff]  ;;  %v6714_v43 = vld [vmem:[%s6526_s4 + $0x3] ss:$0 sm:$0xff] }
 0x3a7   : > { %v6642_v46 = vadd.f32 %v1229_v45, %v1043_v25  ;;  %5132 = vmatpush3.xpose.msra.mxu0 %v6638_v42  ;;  %5138 = vmatprep.mubr.msk.f32.mxu1 %vm6051_vm0, %v6050_v17  ;;  %v1667_v0 = vmul.f32 %v6654_v51, %v6691_v62 }
 0x3a8   : > { %5141 = vmatprep.subr.mxu0 %v6050_v17  ;;  %v1295_v54 = vmul.f32 %v6617_v31, %v6640_v44  ;;  %v1665_v60 = vmul.f32 %v6654_v51, %v6640_v44 }
 0x3a9   : > { %5137 = vmatpush3.xpose.msra.mxu1 %v6642_v46 }
 0x3aa   : > { %5134 = vmatmul.mubr.f32.vlgmr.msra.gmra.mrb[8].mxu0 %v1294_v48  ;;  %5146 = vmatprep.subr.mxu1 %v6050_v17 }
 0x3ab   : > { %5142 = vmatpush3.xpose.msra.mxu0 %v6614_v29  ;;  %5143 = vmatprep.mubr.msk.f32.mxu0 %vm6051_vm0, %v6050_v17 }
 0x3ac   : > { %5139 = vmatmul.mubr.f32.vlgmr.msra.gmra.mrb[8].mxu1 %v1295_v54  ;;  %5151 = vmatprep.subr.mxu0 %v6050_v17 }
 0x3ad   : > { %5147 = vmatpush3.xpose.msra.mxu1 %v6626_v36  ;;  %5148 = vmatprep.mubr.msk.f32.mxu1 %vm6051_vm0, %v6050_v17 }
 0x3ae   : > { %5144 = vmatmul.mubr.f32.vlgmr.msra.gmra.mrb[10].mxu0 %v1662_v57  ;;  %5156 = vmatprep.subr.mxu1 %v6050_v17 }
 0x3af   : > { %5152 = vmatpush3.xpose.msra.mxu0 %v6638_v42  ;;  %5153 = vmatprep.mubr.msk.f32.mxu0 %vm6051_vm0, %v6050_v17 }
 0x3b0   : > { %5149 = vmatmul.mubr.f32.vlgmr.msra.gmra.mrb[10].mxu1 %v1663_v58  ;;  %5161 = vmatprep.subr.mxu0 %v6050_v17 }
 0x3b1   : > { %5157 = vmatpush3.xpose.msra.mxu1 %v6642_v46  ;;  %5158 = vmatprep.mubr.msk.f32.mxu1 %vm6051_vm0, %v6050_v17 }
 0x3b2   : > { %5154 = vmatmul.mubr.f32.vlgmr.msra.gmra.mrb[12].mxu0 %v1664_v59  ;;  %5166 = vmatprep.subr.mxu1 %v6050_v17 }
 0x3b3   : > { %5163 = vmatprep.mubr.msk.f32.mxu0 %vm6051_vm0, %v6050_v17  ;;  %5162 = vmatpush3.msra.mxu0 %v1666_v63 }
 0x3b4   : > { %5159 = vmatmul.mubr.f32.vlgmr.msra.gmra.mrb[12].mxu1 %v1665_v60  ;;  %5171 = vmatprep.subr.mxu0 %v6050_v17 }
 0x3b5   : > { %5168 = vmatprep.mubr.msk.f32.mxu1 %vm6051_vm0, %v6050_v17  ;;  %5167 = vmatpush3.msra.mxu1 %v1667_v0 }
 0x3b6   : > { %5176 = vmatprep.subr.mxu1 %v6050_v17 }
 0x475   : > { %v1366_v1 = vpop.f32.mrb[4].mxu1 }
 0x476   : > { %v5125_v2 = vpop.f32.mrb[5].mxu1  ;;  %v1580_v18 = vmul.f32 0.17677669, %v1366_v1 }
 0x478   : > { %v1608_v41 = vadd.f32 %v6700_v13, %v1580_v18 }
 0x479   : > { %v1436_v3 = vpop.f32.mrb[6].mxu1 }
 0x47a   : > { %v5130_v4 = vpop.f32.mrb[7].mxu1  ;;  %v1581_v40 = vmul.f32 0.17677669, %v1436_v3  ;;  %v1613_v53 = vsel %vm1612_vm5, %v1608_v41, -inf }
 0x47c   : > { %v1609_v58 = vadd.f32 %v6704_v24, %v1581_v40 }
 0x47d   : > { %v1506_v5 = vpop.f32.mrb[8].mxu0 }
 0x47e   : > { %v5135_v6 = vpop.f32.mrb[9].mxu0  ;;  %v1582_v45 = vmul.f32 0.17677669, %v1506_v5  ;;  %v1616_v60 = vsel %vm1612_vm5, %v1609_v58, -inf }
 0x47f   : > { %v1576_v7 = vpop.f32.mrb[8].mxu1 }
 0x480   : > { %v5140_v8 = vpop.f32.mrb[9].mxu1  ;;  %v1583_v54 = vmul.f32 0.17677669, %v1576_v7  ;;  %v1610_v57 = vadd.f32 %v6709_v34, %v1582_v45 }
 0x481   : > { %v1736_v9 = vpop.f32.mrb[10].mxu0 }
 0x482   : > { %v1950_v10 = vmul.f32 0.17677669, %v1736_v9  ;;  %v5145_v11 = vpop.f32.mrb[11].mxu0  ;;  %v1619_v59 = vsel %vm1612_vm5, %v1610_v57, -inf  ;;  %v1611_v63 = vadd.f32 %v6714_v43, %v1583_v54 }
 0x483   : > { %v1806_v12 = vpop.f32.mrb[10].mxu1 }
 0x484   : > { %v1951_v14 = vmul.f32 0.17677669, %v1806_v12  ;;  %v5150_v15 = vpop.f32.mrb[11].mxu1  ;;  %v1954_v16 = vadd.f32 %v6700_v13, %v1950_v10  ;;  %v1622_v0 = vsel %vm1612_vm5, %v1611_v63, -inf }
 0x485   : > { %v1876_v21 = vpop.f32.mrb[12].mxu0 }
 0x486   : > { %v1952_v25 = vmul.f32 0.17677669, %v1876_v21  ;;  %v5155_v26 = vpop.f32.mrb[13].mxu0  ;;  %v1958_v28 = vsel %vm1612_vm5, %v1954_v16, -inf  ;;  %v1955_v30 = vadd.f32 %v6704_v24, %v1951_v14 }
 0x487   : > { %1959 = vmax.xlane.f32.xlu0 %v1958_v28  ;;  %v1946_v32 = vpop.f32.mrb[12].mxu1 }
 0x488   : > { %v1953_v35 = vmul.f32 0.17677669, %v1946_v32  ;;  %v5160_v37 = vpop.f32.mrb[13].mxu1  ;;  %v1956_v39 = vadd.f32 %v6709_v34, %v1952_v25  ;;  %v1961_v48 = vsel %vm1612_vm5, %v1955_v30, -inf }
 0x48a   : > { %v1964_v47 = vsel %vm1612_vm5, %v1956_v39, -inf  ;;  %v1957_v50 = vadd.f32 %v6714_v43, %v1953_v35 }
 0x48b   : > { %1965 = vmax.xlane.f32.xlu1 %v1964_v47  ;;  %1962 = vmax.xlane.f32.xlu0 %v1961_v48 }
 0x48c   : > { %v1967_v56 = vsel %vm1612_vm5, %v1957_v50, -inf }
 0x48f   : > { %1614 = vmax.xlane.f32.xlu0 %v1613_v53  ;;  %1968 = vmax.xlane.f32.xlu1 %v1967_v56 }
 0x493   : > { %1620 = vmax.xlane.f32.xlu0 %v1619_v59  ;;  %1617 = vmax.xlane.f32.xlu1 %v1616_v60 }
 0x497   : > { %1623 = vmax.xlane.f32.xlu1 %v1622_v0 }
 0x514   : > { %v1960_v1 = vpop.xlane.xlu0 %1959 }
 0x515   : > { %v1970_v2 = vsub.f32 %v1954_v16, %v1960_v1 }
 0x517   : > { %v1974_v3 = vmul.f32 1.442695, %v1970_v2 }
 0x518   : > { %v1966_v4 = vpop.xlane.xlu1 %1965  ;;  %v1963_v5 = vpop.xlane.xlu0 %1962 }
 0x519   : > { %5565 = vpow2.f32 %v1974_v3  ;;  %v1972_v6 = vsub.f32 %v1956_v39, %v1966_v4  ;;  %v1971_v7 = vsub.f32 %v1955_v30, %v1963_v5 }
 0x51b   : > { %v1978_v8 = vmul.f32 1.442695, %v1972_v6  ;;  %v1976_v9 = vmul.f32 1.442695, %v1971_v7 }
 0x51c   : > { %v1615_v10 = vpop.xlane.xlu0 %1614  ;;  %v1969_v11 = vpop.xlane.xlu1 %1968 }
 0x51d   : > { %5567 = vpow2.f32 %v1978_v8  ;;  %v1625_v12 = vsub.f32 %v1608_v41, %v1615_v10  ;;  %v1973_v14 = vsub.f32 %v1957_v50, %v1969_v11  ;;  %v1668_v10 = vmul.f32 %v6654_v51, %v6650_v49 }
 0x51e   : > { %5569 = vpow2.f32 %v1976_v9 }
 0x51f   : > { %v1629_v15 = vmul.f32 1.442695, %v1625_v12  ;;  %v1980_v18 = vmul.f32 1.442695, %v1973_v14 }
 0x520   : > { %v1621_v21 = vpop.xlane.xlu0 %1620  ;;  %v1618_v25 = vpop.xlane.xlu1 %1617 }
 0x521   : > { %5571 = vpow2.f32 %v1629_v15  ;;  %v1627_v16 = vsub.f32 %v1610_v57, %v1621_v21  ;;  %v1626_v26 = vsub.f32 %v1609_v58, %v1618_v25  ;;  %v1296_v21 = vmul.f32 %v6617_v31, %v6689_v61 }
 0x522   : > { %5573 = vpow2.f32 %v1980_v18  ;;  %v1669_v25 = vmul.f32 %v6654_v51, %v6659_v55  ;;  %v1297_v51 = vmul.f32 %v6617_v31, %v6691_v62 }
 0x523   : > { %v5566_v28 = vpop.eup %5565  ;;  %v1633_v32 = vmul.f32 1.442695, %v1627_v16  ;;  %v1631_v35 = vmul.f32 1.442695, %v1626_v26 }
 0x524   : > { %v1624_v30 = vpop.xlane.xlu1 %1623  ;;  %v1982_v37 = vsel %vm1612_vm5, %v5566_v28, 0.0 }
 0x525   : > { %5575 = vpow2.f32 %v1633_v32  ;;  %v1628_v39 = vsub.f32 %v1611_v63, %v1624_v30  ;;  %1983 = vadd.xlane.f32.xlu0 %v1982_v37 }
 0x526   : > { %5577 = vpow2.f32 %v1631_v35  ;;  %v1298_v35 = vmul.f32 %v6617_v31, %v6650_v49 }
 0x527   : > { %v5568_v40 = vpop.eup %5567  ;;  %v1635_v41 = vmul.f32 1.442695, %v1628_v39 }
 0x528   : > { %v5570_v45 = vpop.eup %5569  ;;  %v1988_v47 = vsel %vm1612_vm5, %v5568_v40, 0.0 }
 0x529   : > { %5579 = vpow2.f32 %v1635_v41  ;;  %1989 = vadd.xlane.f32.xlu0 %v1988_v47  ;;  %v1985_v48 = vsel %vm1612_vm5, %v5570_v45, 0.0  ;;  %v1299_v41 = vmul.f32 %v6617_v31, %v6659_v55  ;;  %v6779_v47 = vsel %vm2588_vm8, 1.0, %v6050_v17 }
 0x52a   : > { %1986 = vadd.xlane.f32.xlu1 %v1985_v48  ;;  %v2591_v31 = vmul.f32 %v6779_v47, %v6612_v27 }
 0x52b   : > { %v5572_v50 = vpop.eup %5571 }
 0x52c   : > { %v5574_v53 = vpop.eup %5573  ;;  %v1637_v54 = vsel %vm1612_vm5, %v5572_v50, 0.0 }
 0x52d   : > { %1638 = vadd.xlane.f32.xlu0 %v1637_v54  ;;  %v1991_v56 = vsel %vm1612_vm5, %v5574_v53, 0.0  ;;  %v2595_v54 = vmul.f32 %v6779_v47, %v6689_v61 }
 0x52e   : > { %1992 = vadd.xlane.f32.xlu1 %v1991_v56  ;;  %v2594_v56 = vmul.f32 %v6779_v47, %v6640_v44 }
 0x52f   : > { %v5576_v57 = vpop.eup %5575 }
 0x530   : > { %v5578_v58 = vpop.eup %5577  ;;  %v1643_v59 = vsel %vm1612_vm5, %v5576_v57, 0.0 }
 0x531   : > { %1644 = vadd.xlane.f32.xlu0 %v1643_v59  ;;  %v1640_v60 = vsel %vm1612_vm5, %v5578_v58, 0.0 }
 0x532   : > { %1641 = vadd.xlane.f32.xlu1 %v1640_v60 }
 0x533   : > { %v6734_v63 = vpop.eup %5579 }
 0x534   : > { %v1646_v0 = vsel %vm1612_vm5, %v6734_v63, 0.0 }
 0x536   : > { %1647 = vadd.xlane.f32.xlu1 %v1646_v0 }
 0x5b2   : > { %v1984_v1 = vpop.xlane.xlu0 %1983 }
 0x5b3   : > { %5581 = vrcp.f32 %v1984_v1 }
 0x5b6   : > { %v1990_v2 = vpop.xlane.xlu0 %1989 }
 0x5b7   : > { %5583 = vrcp.f32 %v1990_v2  ;;  %v1987_v3 = vpop.xlane.xlu1 %1986 }
 0x5b8   : > { %5585 = vrcp.f32 %v1987_v3 }
 0x5ba   : > { %v1639_v4 = vpop.xlane.xlu0 %1638 }
 0x5bb   : > { %5587 = vrcp.f32 %v1639_v4  ;;  %v1993_v5 = vpop.xlane.xlu1 %1992 }
 0x5bc   : > { %5589 = vrcp.f32 %v1993_v5 }
 0x5bd   : > { %v5582_v6 = vpop.eup %5581 }
 0x5be   : > { %v1998_v7 = vmul.f32 %v5582_v6, %v5566_v28  ;;  %v1645_v8 = vpop.xlane.xlu0 %1644 }
 0x5bf   : > { %5591 = vrcp.f32 %v1645_v8  ;;  %v1642_v9 = vpop.xlane.xlu1 %1641 }
 0x5c0   : > { %5593 = vrcp.f32 %v1642_v9  ;;  %5164 = vmatmul.mubr.msk.f32.vlgmr.msra.gmra.mrb[14].mxu0 %vm1612_vm5, %v1998_v7 }
 0x5c1   : > { %v5584_v11 = vpop.eup %5583  ;;  %5172 = vmatpush3.msra.mxu0 %v1668_v10  ;;  %5173 = vmatprep.mubr.msk.f32.mxu0 %vm6051_vm0, %v6050_v17 }
 0x5c2   : > { %v5586_v12 = vpop.eup %5585  ;;  %v2000_v14 = vmul.f32 %v5584_v11, %v5568_v40  ;;  %5181 = vmatprep.subr.mxu0 %v6050_v17 }
 0x5c3   : > { %v1999_v15 = vmul.f32 %v5586_v12, %v5570_v45  ;;  %v1648_v18 = vpop.xlane.xlu1 %1647 }
 0x5c4   : > { %5595 = vrcp.f32 %v1648_v18  ;;  %5174 = vmatmul.mubr.msk.f32.vlgmr.msra.gmra.mrb[16].mxu0 %vm1612_vm5, %v2000_v14 }
 0x5c5   : > { %v5588_v16 = vpop.eup %5587  ;;  %5169 = vmatmul.mubr.msk.f32.vlgmr.msra.gmra.mrb[14].mxu1 %vm1612_vm5, %v1999_v15  ;;  %5182 = vmatpush3.msra.mxu0 %v1296_v21 }
 0x5c6   : > { %v5590_v26 = vpop.eup %5589  ;;  %v1653_v28 = vmul.f32 %v5588_v16, %v5572_v50  ;;  %5177 = vmatpush3.msra.mxu1 %v1669_v25  ;;  %5178 = vmatprep.mubr.msk.f32.mxu1 %vm6051_vm0, %v6050_v17  ;;  %v2593_v50 = vmul.f32 %v6779_v47, %v6633_v38 }
 0x5c7   : > { %v2001_v32 = vmul.f32 %v5590_v26, %v5574_v53  ;;  %5183 = vmatprep.mubr.msk.f32.mxu0 %vm6051_vm0, %v6050_v17  ;;  %5186 = vmatprep.subr.mxu1 %v6050_v17  ;;  %v2592_v53 = vmul.f32 %v6779_v47, %v6620_v33 }
 0x5c8   : > { %5191 = vmatprep.subr.mxu0 %v6050_v17  ;;  %5184 = vmatmul.mubr.msk.f32.vlgmr.msra.gmra.mrb[14].mxu0 %vm1612_vm5, %v1653_v28 }
 0x5c9   : > { %v5592_v30 = vpop.eup %5591  ;;  %5179 = vmatmul.mubr.msk.f32.vlgmr.msra.gmra.mrb[16].mxu1 %vm1612_vm5, %v2001_v32  ;;  %5192 = vmatpush3.msra.mxu0 %v1298_v35 }
 0x5ca   : > { %v5594_v37 = vpop.eup %5593  ;;  %v1655_v39 = vmul.f32 %v5592_v30, %v5576_v57  ;;  %5187 = vmatpush3.msra.mxu1 %v1297_v51  ;;  %5188 = vmatprep.mubr.msk.f32.mxu1 %vm6051_vm0, %v6050_v17  ;;  %v2596_v57 = vmul.f32 %v6779_v47, %v6691_v62 }
 0x5cb   : > { %v1654_v40 = vmul.f32 %v5594_v37, %v5578_v58  ;;  %5193 = vmatprep.mubr.msk.f32.mxu0 %vm6051_vm0, %v6050_v17  ;;  %5196 = vmatprep.subr.mxu1 %v6050_v17 }
 0x5cc   : > { %5194 = vmatmul.mubr.msk.f32.vlgmr.msra.gmra.mrb[16].mxu0 %vm1612_vm5, %v1655_v39  ;;  %5201 = vmatprep.subr.mxu0 %v6050_v17 }
 0x5cd   : > { %5189 = vmatmul.mubr.msk.f32.vlgmr.msra.gmra.mrb[14].mxu1 %vm1612_vm5, %v1654_v40  ;;  %5203 = vmatprep.mubr.msk.f32.mxu0 %vm6051_vm0, %v6050_v17 }
 0x5ce   : > { %v5596_v45 = vpop.eup %5595  ;;  %5197 = vmatpush3.msra.mxu1 %v1299_v41  ;;  %5198 = vmatprep.mubr.msk.f32.mxu1 %vm6051_vm0, %v6050_v17 }
 0x5cf   : > { %v1656_v48 = vmul.f32 %v5596_v45, %v6734_v63  ;;  %5206 = vmatprep.subr.mxu1 %v6050_v17 }
 0x5d0   : > { %5202 = vmatpush3.xpose.msra.mxu0 %v6614_v29 }
 0x5d1   : > { %5199 = vmatmul.mubr.msk.f32.vlgmr.msra.gmra.mrb[16].mxu1 %vm1612_vm5, %v1656_v48  ;;  %5211 = vmatprep.subr.mxu0 %v6050_v17 }
 0x5d2   : > { %5208 = vmatprep.mubr.msk.f32.mxu1 %vm6051_vm0, %v6050_v17 }
 0x5d3   : > { %5204 = vmatmul.mubr.f32.vlgmr.msra.gmra.mrb[18].mxu0 %v2591_v31 }
 0x5d4   : > { %5212 = vmatpush3.xpose.msra.mxu0 %v6638_v42  ;;  %5213 = vmatprep.mubr.msk.f32.mxu0 %vm6051_vm0, %v6050_v17 }
 0x5d5   : > { %5207 = vmatpush3.xpose.msra.mxu1 %v6626_v36  ;;  %5221 = vmatprep.subr.mxu0 %v6050_v17 }
 0x5d6   : > { %5216 = vmatprep.subr.mxu1 %v6050_v17 }
 0x5d7   : > { %5214 = vmatmul.mubr.f32.vlgmr.msra.gmra.mrb[20].mxu0 %v2593_v50 }
 0x5d8   : > { %5209 = vmatmul.mubr.f32.vlgmr.msra.gmra.mrb[18].mxu1 %v2592_v53  ;;  %5222 = vmatpush3.msra.mxu0 %v2595_v54 }
 0x5d9   : > { %5217 = vmatpush3.xpose.msra.mxu1 %v6642_v46  ;;  %5218 = vmatprep.mubr.msk.f32.mxu1 %vm6051_vm0, %v6050_v17 }
 0x5da   : > { %5226 = vmatprep.subr.mxu1 %v6050_v17  ;;  %5223 = vmatprep.mubr.msk.f32.mxu0 %vm6051_vm0, %v6050_v17 }
 0x5db   : > { %5231 = vmatprep.subr.mxu0 %v6050_v17 }
 0x5dc   : > { %5219 = vmatmul.mubr.f32.vlgmr.msra.gmra.mrb[20].mxu1 %v2594_v56 }
 0x5dd   : > { %5227 = vmatpush3.msra.mxu1 %v2596_v57  ;;  %5228 = vmatprep.mubr.msk.f32.mxu1 %vm6051_vm0, %v6050_v17 }
 0x5de   : > { %5236 = vmatprep.subr.mxu1 %v6050_v17 }
 0x6a6   : > { %v2665_v58 = vpop.f32.mrb[18].mxu0 }
 0x6a7   : > { %v2879_v59 = vmul.f32 0.17677669, %v2665_v58  ;;  %v5205_v60 = vpop.f32.mrb[19].mxu0 }
 0x6a9   : > { %v2883_v63 = vadd.f32 %v6700_v13, %v2879_v59 }
 0x6aa   : > { %v2805_v0 = vpop.f32.mrb[20].mxu0 }
 0x6ab   : > { %v2735_v1 = vpop.f32.mrb[18].mxu1  ;;  %v2881_v2 = vmul.f32 0.17677669, %v2805_v0  ;;  %v5215_v3 = vpop.f32.mrb[21].mxu0  ;;  %v2887_v4 = vsel %vm1612_vm5, %v2883_v63, -inf }
 0x6ac   : > { %v2880_v5 = vmul.f32 0.17677669, %v2735_v1  ;;  %v5210_v6 = vpop.f32.mrb[19].mxu1  ;;  %2888 = vmax.xlane.f32.xlu0 %v2887_v4  ;;  %v2597_v1 = vmul.f32 %v6779_v47, %v6650_v49 }
 0x6ad   : > { %v2885_v7 = vadd.f32 %v6709_v34, %v2881_v2  ;;  %v2598_v6 = vmul.f32 %v6779_v47, %v6659_v55 }
 0x6ae   : > { %v2884_v8 = vadd.f32 %v6704_v24, %v2880_v5 }
 0x6af   : > { %v2875_v9 = vpop.f32.mrb[20].mxu1  ;;  %v2893_v10 = vsel %vm1612_vm5, %v2885_v7, -inf }
 0x6b0   : > { %v2882_v11 = vmul.f32 0.17677669, %v2875_v9  ;;  %v5220_v12 = vpop.f32.mrb[21].mxu1  ;;  %2894 = vmax.xlane.f32.xlu0 %v2893_v10  ;;  %v2890_v14 = vsel %vm1612_vm5, %v2884_v8, -inf }
 0x6b1   : > { %2891 = vmax.xlane.f32.xlu1 %v2890_v14 }
 0x6b2   : > { %v2886_v15 = vadd.f32 %v6714_v43, %v2882_v11 }
 0x6b4   : > { %v2896_v18 = vsel %vm1612_vm5, %v2886_v15, -inf }
 0x6b5   : > { %2897 = vmax.xlane.f32.xlu1 %v2896_v18 }
 0x739   : > { %v2889_v21 = vpop.xlane.xlu0 %2888 }
 0x73a   : > { %v2899_v25 = vsub.f32 %v2883_v63, %v2889_v21 }
 0x73c   : > { %v2903_v16 = vmul.f32 1.442695, %v2899_v25 }
 0x73d   : > { %v2895_v26 = vpop.xlane.xlu0 %2894 }
 0x73e   : > { %5597 = vpow2.f32 %v2903_v16  ;;  %v2901_v28 = vsub.f32 %v2885_v7, %v2895_v26  ;;  %v2892_v32 = vpop.xlane.xlu1 %2891 }
 0x73f   : > { %v2900_v35 = vsub.f32 %v2884_v8, %v2892_v32  ;;  %v6844_v8 = vsel %vm3227_vm9, 1.0, %v6050_v17 }
 0x740   : > { %v2907_v51 = vmul.f32 1.442695, %v2901_v28  ;;  %v3232_v23 = vmul.f32 %v6844_v8, %v6612_v27  ;;  %v3233_v27 = vmul.f32 %v6844_v8, %v6620_v33  ;;  %v3236_v47 = vmul.f32 %v6844_v8, %v6689_v61 }
 0x741   : > { %v2905_v30 = vmul.f32 1.442695, %v2900_v35  ;;  %v3237_v33 = vmul.f32 %v6844_v8, %v6691_v62 }
 0x742   : > { %5599 = vpow2.f32 %v2907_v51  ;;  %v2898_v37 = vpop.xlane.xlu1 %2897 }
 0x743   : > { %5601 = vpow2.f32 %v2905_v30  ;;  %v2902_v39 = vsub.f32 %v2886_v15, %v2898_v37 }
 0x745   : > { %v2909_v40 = vmul.f32 1.442695, %v2902_v39 }
 0x747   : > { %5603 = vpow2.f32 %v2909_v40 }
 0x748   : > { %v5598_v41 = vpop.eup %5597 }
 0x749   : > { %v2911_v45 = vsel %vm1612_vm5, %v5598_v41, 0.0 }
 0x74a   : > { %2912 = vadd.xlane.f32.xlu0 %v2911_v45 }
 0x74c   : > { %v5600_v48 = vpop.eup %5599 }
 0x74d   : > { %v5602_v31 = vpop.eup %5601  ;;  %v2917_v50 = vsel %vm1612_vm5, %v5600_v48, 0.0 }
 0x74e   : > { %2918 = vadd.xlane.f32.xlu0 %v2917_v50  ;;  %v2914_v53 = vsel %vm1612_vm5, %v5602_v31, 0.0 }
 0x74f   : > { %2915 = vadd.xlane.f32.xlu1 %v2914_v53 }
 0x751   : > { %v5604_v54 = vpop.eup %5603 }
 0x752   : > { %v2920_v56 = vsel %vm1612_vm5, %v5604_v54, 0.0 }
 0x753   : > { %2921 = vadd.xlane.f32.xlu1 %v2920_v56 }
 0x7d7   : > { %v2913_v57 = vpop.xlane.xlu0 %2912 }
 0x7d8   : > { %5605 = vrcp.f32 %v2913_v57 }
 0x7db   : > { %v2919_v58 = vpop.xlane.xlu0 %2918 }
 0x7dc   : > { %5607 = vrcp.f32 %v2919_v58  ;;  %v2916_v59 = vpop.xlane.xlu1 %2915 }
 0x7dd   : > { %5609 = vrcp.f32 %v2916_v59 }
 0x7e0   : > { %v2922_v60 = vpop.xlane.xlu1 %2921 }
 0x7e1   : > { %5611 = vrcp.f32 %v2922_v60 }
 0x7e2   : > { %v5606_v63 = vpop.eup %5605 }
 0x7e3   : > { %v2927_v0 = vmul.f32 %v5606_v63, %v5598_v41 }
 0x7e5   : > { %5224 = vmatmul.mubr.msk.f32.vlgmr.msra.gmra.mrb[14].mxu0 %vm1612_vm5, %v2927_v0 }
 0x7e6   : > { %v5608_v2 = vpop.eup %5607  ;;  %5232 = vmatpush3.msra.mxu0 %v2597_v1  ;;  %5233 = vmatprep.mubr.msk.f32.mxu0 %vm6051_vm0, %v6050_v17 }
 0x7e7   : > { %v5610_v3 = vpop.eup %5609  ;;  %v2929_v4 = vmul.f32 %v5608_v2, %v5600_v48  ;;  %5241 = vmatprep.subr.mxu0 %v6050_v17 }
 0x7e8   : > { %v2928_v5 = vmul.f32 %v5610_v3, %v5602_v31 }
 0x7e9   : > { %5234 = vmatmul.mubr.msk.f32.vlgmr.msra.gmra.mrb[16].mxu0 %vm1612_vm5, %v2929_v4 }
 0x7ea   : > { %5229 = vmatmul.mubr.msk.f32.vlgmr.msra.gmra.mrb[14].mxu1 %vm1612_vm5, %v2928_v5  ;;  %5243 = vmatprep.mubr.msk.f32.mxu0 %vm6051_vm0, %v6050_v17  ;;  %v5517_v5 = vld [vmem:[%s6539_s14] sm:$0xff]  }
 0x7eb   : > { %v5612_v7 = vpop.eup %5611  ;;  %5237 = vmatpush3.msra.mxu1 %v2598_v6  ;;  %5238 = vmatprep.mubr.msk.f32.mxu1 %vm6051_vm0, %v6050_v17  ;;  %v3238_v6 = vmul.f32 %v6844_v8, %v6650_v49 }
 0x7ec   : > { %v2930_v9 = vmul.f32 %v5612_v7, %v5604_v54  ;;  %5246 = vmatprep.subr.mxu1 %v6050_v17 }
 0x7ed   : > { %5242 = vmatpush3.xpose.msra.mxu0 %v6614_v29  ;;  %v3234_v29 = vmul.f32 %v6844_v8, %v6633_v38 }
 0x7ee   : > { %5239 = vmatmul.mubr.msk.f32.vlgmr.msra.gmra.mrb[16].mxu1 %vm1612_vm5, %v2930_v9  ;;  %5251 = vmatprep.subr.mxu0 %v6050_v17 }
 0x7ef   : > { %5248 = vmatprep.mubr.msk.f32.mxu1 %vm6051_vm0, %v6050_v17 }
 0x7f0   : > { %5244 = vmatmul.mubr.f32.vlgmr.msra.gmra.mrb[22].mxu0 %v3232_v23 }
 0x7f1   : > { %5252 = vmatpush3.xpose.msra.mxu0 %v6638_v42  ;;  %5253 = vmatprep.mubr.msk.f32.mxu0 %vm6051_vm0, %v6050_v17 }
 0x7f2   : > { %5247 = vmatpush3.xpose.msra.mxu1 %v6626_v36  ;;  %5261 = vmatprep.subr.mxu0 %v6050_v17  ;;  %v3235_v36 = vmul.f32 %v6844_v8, %v6640_v44 }
 0x7f3   : > { %5256 = vmatprep.subr.mxu1 %v6050_v17 }
 0x7f4   : > { %5254 = vmatmul.mubr.f32.vlgmr.msra.gmra.mrb[24].mxu0 %v3234_v29 }
 0x7f5   : > { %5249 = vmatmul.mubr.f32.vlgmr.msra.gmra.mrb[22].mxu1 %v3233_v27  ;;  %5262 = vmatpush3.msra.mxu0 %v3236_v47  ;;  %v5518_v27 = vld [vmem:[%s6539_s14 + $0x8] sm:$0xff]   ;;  %v3239_v47 = vmul.f32 %v6844_v8, %v6659_v55  ;;  %v5520_v55 = vld [vmem:[%s6539_s14 + $0x18] sm:$0xff]   ;;  %v5521_v8 = vld [vmem:[%s6539_s14 + $0x20] sm:$0xff]  }
 0x7f6   : > { %5257 = vmatpush3.xpose.msra.mxu1 %v6642_v46  ;;  %5258 = vmatprep.mubr.msk.f32.mxu1 %vm6051_vm0, %v6050_v17 }
 0x7f7   : > { %5266 = vmatprep.subr.mxu1 %v6050_v17  ;;  %5263 = vmatprep.mubr.msk.f32.mxu0 %vm6051_vm0, %v6050_v17 }
 0x7f8   : > { %5271 = vmatprep.subr.mxu0 %v6050_v17 }
 0x7f9   : > { %5259 = vmatmul.mubr.f32.vlgmr.msra.gmra.mrb[24].mxu1 %v3235_v36  ;;  %v5519_v36 = vld [vmem:[%s6539_s14 + $0x10] sm:$0xff]  }
 0x7fa   : > { %5267 = vmatpush3.msra.mxu1 %v3237_v33  ;;  %5268 = vmatprep.mubr.msk.f32.mxu1 %vm6051_vm0, %v6050_v17 }
 0x7fb   : > { %5276 = vmatprep.subr.mxu1 %v6050_v17 }
 0x8c3   : > { %v3306_v38 = vpop.f32.mrb[22].mxu0 }
 0x8c4   : > { %v3520_v42 = vmul.f32 0.17677669, %v3306_v38  ;;  %v5245_v44 = vpop.f32.mrb[23].mxu0  ;;  %v5522_v38 = vld [vmem:[%s6539_s14 + $0x28] sm:$0xff]  }
 0x8c6   : > { %v3524_v46 = vadd.f32 %v6700_v13, %v3520_v42  ;;  %v5524_v42 = vld [vmem:[%s6539_s14 + $0x38] sm:$0xff]  }
 0x8c7   : > { %v3446_v61 = vpop.f32.mrb[24].mxu0 }
 0x8c8   : > { %v3376_v10 = vpop.f32.mrb[22].mxu1  ;;  %v3522_v11 = vmul.f32 0.17677669, %v3446_v61  ;;  %v5255_v12 = vpop.f32.mrb[25].mxu0  ;;  %v3528_v62 = vsel %vm1612_vm5, %v3524_v46, -inf }
 0x8c9   : > { %v3521_v14 = vmul.f32 0.17677669, %v3376_v10  ;;  %v5250_v15 = vpop.f32.mrb[23].mxu1  ;;  %3529 = vmax.xlane.f32.xlu0 %v3528_v62 }
 0x8ca   : > { %v3526_v18 = vadd.f32 %v6709_v34, %v3522_v11 }
 0x8cb   : > { %v3525_v21 = vadd.f32 %v6704_v24, %v3521_v14 }
 0x8cc   : > { %v3516_v25 = vpop.f32.mrb[24].mxu1  ;;  %v3534_v16 = vsel %vm1612_vm5, %v3526_v18, -inf }
 0x8cd   : > { %v3523_v26 = vmul.f32 0.17677669, %v3516_v25  ;;  %v5260_v28 = vpop.f32.mrb[25].mxu1  ;;  %3535 = vmax.xlane.f32.xlu0 %v3534_v16  ;;  %v3531_v13 = vsel %vm1612_vm5, %v3525_v21, -inf }
 0x8ce   : > { %3532 = vmax.xlane.f32.xlu1 %v3531_v13 }
 0x8cf   : > { %v3527_v32 = vadd.f32 %v6714_v43, %v3523_v26 }
 0x8d1   : > { %v3537_v35 = vsel %vm1612_vm5, %v3527_v32, -inf }
 0x8d2   : > { %3538 = vmax.xlane.f32.xlu1 %v3537_v35 }
 0x956   : > { %v3530_v51 = vpop.xlane.xlu0 %3529 }
 0x957   : > { %v3540_v30 = vsub.f32 %v3524_v46, %v3530_v51  ;;  %v5661_v51 = vld [vmem:[#allocation2] sm:$0xff] }
 0x959   : > { %v3544_v37 = vmul.f32 1.442695, %v3540_v30 }
 0x95a   : > { %v3536_v34 = vpop.xlane.xlu0 %3535 }
 0x95b   : > { %5613 = vpow2.f32 %v3544_v37  ;;  %v3542_v24 = vsub.f32 %v3526_v18, %v3536_v34  ;;  %v3533_v39 = vpop.xlane.xlu1 %3532  ;;  %v5662_v34 = vld [vmem:[#allocation2 + $0x8] sm:$0xff] }
 0x95c   : > { %v3541_v40 = vsub.f32 %v3525_v21, %v3533_v39  ;;  %v4936_v21 = vld [vmem:[%s726_s13] ss:$0 sm:$0xff]  ;;  %v5663_v39 = vld [vmem:[#allocation2 + $0x10] sm:$0xff] }
 0x95d   : > { %v3548_v41 = vmul.f32 1.442695, %v3542_v24 }
 0x95e   : > { %v3546_v45 = vmul.f32 1.442695, %v3541_v40 }
 0x95f   : > { %5615 = vpow2.f32 %v3548_v41  ;;  %v3539_v48 = vpop.xlane.xlu1 %3538  ;;  %v5664_v41 = vld [vmem:[#allocation2 + $0x18] sm:$0xff] }
 0x960   : > { %5617 = vpow2.f32 %v3546_v45  ;;  %v3543_v31 = vsub.f32 %v3527_v32, %v3539_v48  ;;  %v5525_v48 = vld [vmem:[%s6544_s15] ss:$8 sps:$4 sm:$0xff]  }
 0x962   : > { %v3550_v50 = vmul.f32 1.442695, %v3543_v31  ;;  %v5527_v31 = vld [vmem:[%s6544_s15 + $0x4] ss:$8 sps:$4 sm:$0xff]  }
 0x964   : > { %5619 = vpow2.f32 %v3550_v50  ;;  %v5530_v50 = vld [vmem:[%s6544_s15 + $0x14] ss:$8 sps:$4 sm:$0xff]  }
 0x965   : > { %v5614_v43 = vpop.eup %5613 }
 0x966   : > { %v3552_v53 = vsel %vm1612_vm5, %v5614_v43, 0.0 }
 0x967   : > { %3553 = vadd.xlane.f32.xlu0 %v3552_v53 }
 0x969   : > { %v5616_v54 = vpop.eup %5615 }
 0x96a   : > { %v5618_v56 = vpop.eup %5617  ;;  %v3558_v57 = vsel %vm1612_vm5, %v5616_v54, 0.0 }
 0x96b   : > { %3559 = vadd.xlane.f32.xlu0 %v3558_v57  ;;  %v3555_v58 = vsel %vm1612_vm5, %v5618_v56, 0.0 }
 0x96c   : > { %3556 = vadd.xlane.f32.xlu1 %v3555_v58 }
 0x96e   : > { %v5620_v59 = vpop.eup %5619 }
 0x96f   : > { %v3561_v60 = vsel %vm1612_vm5, %v5620_v59, 0.0 }
 0x970   : > { %3562 = vadd.xlane.f32.xlu1 %v3561_v60 }
 0x9f4   : > { %v3554_v63 = vpop.xlane.xlu0 %3553 }
 0x9f5   : > { %5621 = vrcp.f32 %v3554_v63 }
 0x9f8   : > { %v3560_v0 = vpop.xlane.xlu0 %3559 }
 0x9f9   : > { %5623 = vrcp.f32 %v3560_v0  ;;  %v3557_v1 = vpop.xlane.xlu1 %3556 }
 0x9fa   : > { %5625 = vrcp.f32 %v3557_v1 }
 0x9fd   : > { %v3563_v2 = vpop.xlane.xlu1 %3562 }
 0x9fe   : > { %5627 = vrcp.f32 %v3563_v2 }
 0x9ff   : > { %v5622_v3 = vpop.eup %5621 }
 0xa00   : > { %v3568_v4 = vmul.f32 %v5622_v3, %v5614_v43  ;;  %v5528_v43 = vld [vmem:[%s6544_s15 + $0x10] ss:$8 sps:$4 sm:$0xff]  }
 0xa02   : > { %5264 = vmatmul.mubr.msk.f32.vlgmr.msra.gmra.mrb[14].mxu0 %vm1612_vm5, %v3568_v4 }
 0xa03   : > { %v5624_v7 = vpop.eup %5623  ;;  %5272 = vmatpush3.msra.mxu0 %v3238_v6  ;;  %5273 = vmatprep.mubr.msk.f32.mxu0 %vm6051_vm0, %v6050_v17 }
 0xa04   : > { %v5626_v9 = vpop.eup %5625  ;;  %v3570_v23 = vmul.f32 %v5624_v7, %v5616_v54  ;;  %5281 = vmatprep.subr.bf16.mxu0 %v5517_v5 }
 0xa05   : > { %v3569_v29 = vmul.f32 %v5626_v9, %v5618_v56  ;;  %v5533_v9 = vld [vmem:[%s6544_s15 + $0x24] ss:$8 sps:$4 sm:$0xff]  }
 0xa06   : > { %5274 = vmatmul.mubr.msk.f32.vlgmr.msra.gmra.mrb[16].mxu0 %vm1612_vm5, %v3570_v23  ;;  %v5531_v23 = vld [vmem:[%s6544_s15 + $0x20] ss:$8 sps:$4 sm:$0xff]  }
 0xa07   : > { %5269 = vmatmul.mubr.msk.f32.vlgmr.msra.gmra.mrb[14].mxu1 %vm1612_vm5, %v3569_v29  ;;  %5282 = vmatpush3.bf16.msra.mxu0 %v5517_v5  ;;  %v5536_v29 = vld [vmem:[%s6544_s15 + $0x34] ss:$8 sps:$4 sm:$0xff]  }
 0xa08   : > { %v5628_v49 = vpop.eup %5627  ;;  %5277 = vmatpush3.msra.mxu1 %v3239_v47  ;;  %5278 = vmatprep.mubr.msk.f32.mxu1 %vm6051_vm0, %v6050_v17  ;;  %v5523_v17 = vld [vmem:[%s6539_s14 + $0x30] sm:$0xff]   ;;  %v5539_v47 = vld [vmem:[%s6544_s15 + $0x44] ss:$8 sps:$4 sm:$0xff]  }
 0xa09   : > { %v3571_v33 = vmul.f32 %v5628_v49, %v5620_v59  ;;  %5283 = vmatprep.subr.bf16.mxu0 %v5518_v27  ;;  %4171 = vmatprep.subr.bf16.mxu1 %v5527_v31  ;;  %v5537_v49 = vld [vmem:[%s6544_s15 + $0x40] ss:$8 sps:$4 sm:$0xff]  }
 0xa0b   : > { %5279 = vmatmul.mubr.msk.f32.vlgmr.msra.gmra.mrb[16].mxu1 %vm1612_vm5, %v3571_v33  ;;  %5284 = vmatpush3.bf16.msra.mxu0 %v5518_v27  ;;  %v5534_v27 = vld [vmem:[%s6544_s15 + $0x30] ss:$8 sps:$4 sm:$0xff]  }
 0xa0c   : > { %5285 = vmatprep.subr.bf16.mxu0 %v5519_v36  ;;  %4203 = vmatprep.mubr.bf16.mxu1 %v6049_v52  ;;  %v5540_v33 = vld [vmem:[%s6544_s15 + $0x50] ss:$8 sps:$4 sm:$0xff]  }
 0xa0d   : > { %4172 = vmatpush1.bf16.msra.mxu1 %v5525_v48 }
 0xa0e   : > { %4173 = vmatprep.subr.bf16.mxu1 %v5530_v50 }
 0xa0f   : > { %5286 = vmatpush3.bf16.msra.mxu0 %v5519_v36  ;;  %v5542_v36 = vld [vmem:[%s6544_s15 + $0x54] ss:$8 sps:$4 sm:$0xff]  }
 0xa10   : > { %5287 = vmatprep.subr.bf16.mxu0 %v5520_v55 }
 0xa11   : > { %4174 = vmatpush1.bf16.msra.mxu1 %v5528_v43 }
 0xa12   : > { %4175 = vmatprep.subr.bf16.mxu1 %v5533_v9 }
 0xa13   : > { %5288 = vmatpush3.bf16.msra.mxu0 %v5520_v55  ;;  %v5545_v55 = vld [vmem:[%s6544_s15 + $0x64] ss:$8 sps:$4 sm:$0xff]  }
 0xa14   : > { %5289 = vmatprep.subr.bf16.mxu0 %v5521_v8 }
 0xa15   : > { %4176 = vmatpush1.bf16.msra.mxu1 %v5531_v23 }
 0xa16   : > { %4177 = vmatprep.subr.bf16.mxu1 %v5536_v29 }
 0xa17   : > { %5290 = vmatpush3.bf16.msra.mxu0 %v5521_v8  ;;  %v5543_v8 = vld [vmem:[%s6544_s15 + $0x60] ss:$8 sps:$4 sm:$0xff]  }
 0xa18   : > { %5291 = vmatprep.subr.bf16.mxu0 %v5522_v38 }
 0xa19   : > { %4178 = vmatpush1.bf16.msra.mxu1 %v5534_v27 }
 0xa1a   : > { %4179 = vmatprep.subr.bf16.mxu1 %v5539_v47 }
 0xa1b   : > { %5292 = vmatpush3.bf16.msra.mxu0 %v5522_v38  ;;  %v5548_v38 = vld [vmem:[%s6544_s15 + $0x74] ss:$8 sps:$4 sm:$0xff]  }
 0xa1c   : > { %5293 = vmatprep.subr.bf16.mxu0 %v5523_v17 }
 0xa1d   : > { %4180 = vmatpush1.bf16.msra.mxu1 %v5537_v49 }
 0xa1e   : > { %4181 = vmatprep.subr.bf16.mxu1 %v5542_v36 }
 0xa1f   : > { %5294 = vmatpush3.bf16.msra.mxu0 %v5523_v17  ;;  %v5546_v17 = vld [vmem:[%s6544_s15 + $0x70] ss:$8 sps:$4 sm:$0xff]  }
 0xa20   : > { %5295 = vmatprep.subr.bf16.mxu0 %v5524_v42 }
 0xa21   : > { %4182 = vmatpush1.bf16.msra.mxu1 %v5540_v33 }
 0xa22   : > { %4183 = vmatprep.subr.bf16.mxu1 %v5545_v55 }
 0xa23   : > { %5296 = vmatpush3.bf16.msra.mxu0 %v5524_v42 }
 0xa25   : > { %4184 = vmatpush1.bf16.msra.mxu1 %v5543_v8 }
 0xa26   : > { %4185 = vmatprep.subr.bf16.mxu1 %v5548_v38 }
 0xa29   : > { %4186 = vmatpush1.bf16.msra.mxu1 %v5546_v17 }
 0xad5   : > { %v3641_v44 = vpop.f32.mrb[14].mxu0 }
 0xad6   : > { %v5265_v46 = vpop.f32.mrb[15].mxu0 }
 0xad9   : > { %v3787_v61 = vpop.f32.mrb[16].mxu0 }
 0xada   : > { %v3714_v10 = vpop.f32.mrb[14].mxu1  ;;  %v5275_v11 = vpop.f32.mrb[17].mxu0 }
 0xadb   : > { %v3868_v12 = vpack.c.bf16 %v3714_v10, %v3641_v44  ;;  %v5270_v62 = vpop.f32.mrb[15].mxu1 }
 0xadd   : > { %5297 = vmatprep.mubr.bf16.mxu0 %v3868_v12 }
 0xade   : > { %v3860_v14 = vpop.f32.mrb[16].mxu1 }
 0xadf   : > { %v3869_v15 = vpack.c.bf16 %v3860_v14, %v3787_v61  ;;  %v5280_v18 = vpop.f32.mrb[17].mxu1 }
 0xae1   : > { %5298 = vmatmul.mubr.bf16.vlgmr.msra.gmra.mrb[28].mxu0 %v3869_v15 }
 0xbb4   : > { %v5299_v25 = vpop.f32.mrb[28].mxu0 }
 0xbb5   : > { %v3975_v16 = vpop.f32.mrb[29].mxu0  ;;  %v3984_v32 = vadd.f32 %v5299_v25, %v4936_v21 }
 0xbb6   : > { %v3976_v26 = vadd.f32 %v4936_v21, %v3975_v16  ;;  %v5300_v28 = vpop.f32.mrb[30].mxu0  ;;  %v4945_v16 = vld [vmem:[%s734_s2] ss:$0 sm:$0xff] }
 0xbb7   : > { %v3978_v13 = vpop.f32.mrb[31].mxu0  ;;  %v3987_v37 = vadd.f32 %v5300_v28, %v4936_v21  ;;  %v3992_v40 = vadd.f32 %v5663_v39, %v3984_v32 }
 0xbb8   : > { %v3979_v35 = vadd.f32 %v4936_v21, %v3978_v13  ;;  %v3990_v30 = vadd.f32 %v5661_v51, %v3976_v26  ;;  %v4946_v51 = vld [vmem:[%s742_s27] ss:$0 sm:$0xff] }
 0xbb9   : > { %v3993_v45 = vadd.f32 %v5664_v41, %v3987_v37 }
 0xbba   : > { %3996 = vadd.xlane.f32.xlu0 %v3990_v30  ;;  %v3991_v24 = vadd.f32 %v5662_v34, %v3979_v35 }
 0xbbc   : > { %3998 = vadd.xlane.f32.xlu1 %v3991_v24 }
 0xbbe   : > { %4000 = vadd.xlane.f32.xlu0 %v3992_v40 }
 0xbc0   : > { %4002 = vadd.xlane.f32.xlu1 %v3993_v45 }
 0xc47   : > { %v3997_v53 = vpop.xlane.xlu0 %3996 }
 0xc48   : > { %v4005_v54 = vmul.f32 0.0078125, %v3997_v53  ;;  %v5549_v53 = vld [vmem:[%s6562_s20 + $0x40] sm:$0xff]  }
 0xc49   : > { %v3999_v56 = vpop.xlane.xlu1 %3998  ;;  %5073 = vmatprep.subr.bf16.mxu0 %v5549_v53  ;;  %5301 = vmatprep.subr.bf16.mxu1 %v5549_v53 }
 0xc4a   : > { %v4009_v57 = vsub.f32 %v3990_v30, %v4005_v54  ;;  %v4006_v58 = vmul.f32 0.0078125, %v3999_v56  ;;  %v5550_v54 = vld [vmem:[%s6562_s20] sm:$0xff]   ;;  %v5551_v56 = vld [vmem:[%s6562_s20 + $0x48] sm:$0xff]  }
 0xc4b   : > { %v4001_v59 = vpop.xlane.xlu0 %4000  ;;  %5074 = vmatpush3.bf16.msra.mxu0 %v5550_v54 }
 0xc4c   : > { %v4010_v60 = vsub.f32 %v3991_v24, %v4006_v58  ;;  %v4007_v63 = vmul.f32 0.0078125, %v4001_v59  ;;  %v4013_v0 = vmul.f32 %v4009_v57, %v4009_v57  ;;  %5075 = vmatprep.subr.bf16.mxu0 %v5551_v56  ;;  %v5554_v58 = vld [vmem:[%s6562_s20 + $0x10] sm:$0xff]   ;;  %v5555_v59 = vld [vmem:[%s6562_s20 + $0x58] sm:$0xff]  }
 0xc4d   : > { %v4003_v1 = vpop.xlane.xlu1 %4002 }
 0xc4e   : > { %v4011_v2 = vsub.f32 %v3992_v40, %v4007_v63  ;;  %v4008_v3 = vmul.f32 0.0078125, %v4003_v1  ;;  %4017 = vadd.xlane.f32.xlu0 %v4013_v0  ;;  %v4014_v4 = vmul.f32 %v4010_v60, %v4010_v60  ;;  %v5557_v63 = vld [vmem:[%s6562_s20 + $0x60] sm:$0xff]   ;;  %v5559_v1 = vld [vmem:[%s6562_s20 + $0x68] sm:$0xff]  }
 0xc4f   : > { %v5558_v0 = vld [vmem:[%s6562_s20 + $0x20] sm:$0xff]  }
 0xc50   : > { %v4012_v5 = vsub.f32 %v3993_v45, %v4008_v3  ;;  %4019 = vadd.xlane.f32.xlu1 %v4014_v4  ;;  %v4015_v6 = vmul.f32 %v4011_v2, %v4011_v2  ;;  %v5561_v3 = vld [vmem:[%s6562_s20 + $0x70] sm:$0xff]  }
 0xc51   : > { %v5562_v4 = vld [vmem:[%s6562_s20 + $0x30] sm:$0xff]  }
 0xc52   : > { %4021 = vadd.xlane.f32.xlu0 %v4015_v6  ;;  %v4016_v7 = vmul.f32 %v4012_v5, %v4012_v5  ;;  %v5564_v6 = vld [vmem:[%s6562_s20 + $0x38] sm:$0xff]  }
 0xc54   : > { %4023 = vadd.xlane.f32.xlu1 %v4016_v7  ;;  %v4079_v7 = vld [vmem:[%s6549_s26] sm:$0x3] }
 0xc55   : > { %v4084_v9 = vrot.slane %v4079_v7, %v1038_v20  ;;  %v4088_v23 = vrot.slane %v4079_v7, %v1042_v22 }
 0xcdb   : > { %v4018_v42 = vpop.xlane.xlu0 %4017 }
 0xcdc   : > { %v4025_v44 = vmul.f32 0.0078125, %v4018_v42 }
 0xcdd   : > { %v4020_v46 = vpop.xlane.xlu1 %4019 }
 0xcde   : > { %v4029_v61 = vadd.f32 1e-12, %v4025_v44  ;;  %v4026_v10 = vmul.f32 0.0078125, %v4020_v46 }
 0xcdf   : > { %v4022_v11 = vpop.xlane.xlu0 %4021 }
 0xce0   : > { %5629 = vrsqrt.f32 %v4029_v61  ;;  %v4030_v12 = vadd.f32 1e-12, %v4026_v10  ;;  %v4027_v62 = vmul.f32 0.0078125, %v4022_v11 }
 0xce1   : > { %v4024_v14 = vpop.xlane.xlu1 %4023 }
 0xce2   : > { %5631 = vrsqrt.f32 %v4030_v12  ;;  %v4031_v15 = vadd.f32 1e-12, %v4027_v62  ;;  %v4028_v18 = vmul.f32 0.0078125, %v4024_v14 }
 0xce4   : > { %5633 = vrsqrt.f32 %v4031_v15  ;;  %v4032_v21 = vadd.f32 1e-12, %v4028_v18 }
 0xce6   : > { %5635 = vrsqrt.f32 %v4032_v21 }
 0xcea   : > { %v5630_v25 = vpop.eup %5629 }
 0xceb   : > { %v4037_v26 = vmul.f32 %v5630_v25, %v4009_v57  ;;  %v5553_v57 = vld [vmem:[%s6562_s20 + $0x50] sm:$0xff]  }
 0xcec   : > { %v5632_v28 = vpop.eup %5631 }
 0xced   : > { %v4038_v13 = vmul.f32 %v5632_v28, %v4010_v60  ;;  %v4047_v32 = vmul.f32 %v4945_v16, %v4037_v26  ;;  %v5556_v60 = vld [vmem:[%s6562_s20 + $0x18] sm:$0xff]  }
 0xcee   : > { %v5634_v35 = vpop.eup %5633 }
 0xcef   : > { %v4048_v30 = vmul.f32 %v4945_v16, %v4038_v13  ;;  %v6935_v34 = vadd.f32 %v4946_v51, %v4047_v32  ;;  %v4039_v39 = vmul.f32 %v5634_v35, %v4011_v2  ;;  %v5560_v2 = vld [vmem:[%s6562_s20 + $0x28] sm:$0xff]  }
 0xcf0   : > { %v5636_v37 = vpop.eup %5635 }
 0xcf1   : > { %v6937_v24 = vadd.f32 %v4946_v51, %v4048_v30  ;;  %v4040_v40 = vmul.f32 %v5636_v37, %v4012_v5  ;;  %v4049_v48 = vmul.f32 %v4945_v16, %v4039_v39  ;;  %v5563_v5 = vld [vmem:[%s6562_s20 + $0x78] sm:$0xff]  }
 0xcf3   : > { %v4061_v41 = vpack.c.bf16 %v6937_v24, %v6935_v34  ;;  %v4050_v45 = vmul.f32 %v4945_v16, %v4040_v40  ;;  %v6944_v50 = vadd.f32 %v4946_v51, %v4049_v48 }
 0xcf5   : > { %4204 = vmatmul.mubr.bf16.vlgmr.msra.gmra.mrb[28].mxu1 %v4061_v41  ;;  %v6942_v31 = vadd.f32 %v4946_v51, %v4050_v45 }
 0xcf6   : > { %4213 = vmatprep.mubr.bf16.mxu1 %v6049_v52  ;;  %5309 = vmatpush3.bf16.msra.mxu1 %v5550_v54  ;;  %v5552_v52 = vld [vmem:[%s6562_s20 + $0x8] sm:$0xff]  }
 0xcf7   : > { %v4062_v43 = vpack.c.bf16 %v6942_v31, %v6944_v50  ;;  %5302 = vmatprep.subr.bf16.mxu1 %v5551_v56  ;;  %5076 = vmatpush3.bf16.msra.mxu0 %v5552_v52 }
 0xcf8   : > { %5077 = vmatprep.subr.bf16.mxu0 %v5553_v57 }
 0xcfa   : > { %5310 = vmatpush3.bf16.msra.mxu1 %v5552_v52 }
 0xcfb   : > { %5303 = vmatprep.subr.bf16.mxu1 %v5553_v57  ;;  %5078 = vmatpush3.bf16.msra.mxu0 %v5554_v58 }
 0xcfc   : > { %5079 = vmatprep.subr.bf16.mxu0 %v5555_v59 }
 0xcfd   : > { %4214 = vmatmul.mubr.bf16.gmra.mrb[32].mxu1 %v4062_v43 }
 0xcfe   : > { %5311 = vmatpush3.bf16.msra.mxu1 %v5554_v58 }
 0xcff   : > { %5304 = vmatprep.subr.bf16.mxu1 %v5555_v59  ;;  %5080 = vmatpush3.bf16.msra.mxu0 %v5556_v60 }
 0xd00   : > { %5081 = vmatprep.subr.bf16.mxu0 %v5557_v63 }
 0xd02   : > { %5312 = vmatpush3.bf16.msra.mxu1 %v5556_v60 }
 0xd03   : > { %5305 = vmatprep.subr.bf16.mxu1 %v5557_v63  ;;  %5082 = vmatpush3.bf16.msra.mxu0 %v5558_v0 }
 0xd04   : > { %5083 = vmatprep.subr.bf16.mxu0 %v5559_v1 }
 0xd06   : > { %5313 = vmatpush3.bf16.msra.mxu1 %v5558_v0 }
 0xd07   : > { %5306 = vmatprep.subr.bf16.mxu1 %v5559_v1  ;;  %5084 = vmatpush3.bf16.msra.mxu0 %v5560_v2 }
 0xd08   : > { %5085 = vmatprep.subr.bf16.mxu0 %v5561_v3 }
 0xd0a   : > { %5314 = vmatpush3.bf16.msra.mxu1 %v5560_v2 }
 0xd0b   : > { %5307 = vmatprep.subr.bf16.mxu1 %v5561_v3  ;;  %5086 = vmatpush3.bf16.msra.mxu0 %v5562_v4 }
 0xd0c   : > { %5087 = vmatprep.subr.bf16.mxu0 %v5563_v5 }
 0xd0e   : > { %5315 = vmatpush3.bf16.msra.mxu1 %v5562_v4 }
 0xd0f   : > { %5308 = vmatprep.subr.bf16.mxu1 %v5563_v5  ;;  %5088 = vmatpush3.bf16.msra.mxu0 %v5564_v6 }
 0xd12   : > { %5316 = vmatpush3.bf16.msra.mxu1 %v5564_v6 }
 0xdc8   : > { %v4205_v29 = vpop.f32.mrb[28].mxu1 }
 0xdc9   : > { %v6969_v27 = vadd.f32 %v4205_v29, %v4084_v9  ;;  %v4207_v47 = vpop.f32.mrb[29].mxu1 }
 0xdca   : > { %v6971_v49 = vadd.f32 %v4207_v47, %v4088_v23  ;;  %v4209_v36 = vpop.f32.mrb[30].mxu1 }
 0xdcb   : > { %v4224_v33 = vmul.f32 %v6969_v27, %v6969_v27  ;;  %v6975_v55 = vadd.f32 %v4209_v36, %v4084_v9  ;;  %v4211_v8 = vpop.f32.mrb[31].mxu1 }
 0xdcc   : > { %v4225_v38 = vmul.f32 %v6971_v49, %v6971_v49  ;;  %v6979_v20 = vadd.f32 %v4211_v8, %v4088_v23 }
 0xdcd   : > { %v4232_v19 = vmul.f32 %v4224_v33, %v6969_v27  ;;  %v4226_v22 = vmul.f32 %v6975_v55, %v6975_v55 }
 0xdce   : > { %v4233_v17 = vmul.f32 %v4225_v38, %v6971_v49  ;;  %v4227_v42 = vmul.f32 %v6979_v20, %v6979_v20 }
 0xdcf   : > { %v4240_v44 = vmul.f32 0.044715, %v4232_v19  ;;  %v4234_v46 = vmul.f32 %v4226_v22, %v6975_v55 }
 0xdd0   : > { %v4241_v61 = vmul.f32 0.044715, %v4233_v17  ;;  %v4235_v10 = vmul.f32 %v4227_v42, %v6979_v20  ;;  %v4215_v11 = vpop.f32.mrb[32].mxu1 }
 0xdd1   : > { %v4248_v12 = vadd.f32 %v4240_v44, %v6969_v27  ;;  %v4242_v62 = vmul.f32 0.044715, %v4234_v46  ;;  %v6990_v14 = vadd.f32 %v4215_v11, %v4084_v9  ;;  %v4217_v15 = vpop.f32.mrb[33].mxu1 }
 0xdd2   : > { %v4249_v18 = vadd.f32 %v4241_v61, %v6971_v49  ;;  %v4243_v21 = vmul.f32 0.044715, %v4235_v10  ;;  %v6993_v25 = vadd.f32 %v4217_v15, %v4088_v23  ;;  %v4219_v16 = vpop.f32.mrb[34].mxu1 }
 0xdd3   : > { %v4256_v26 = vmul.f32 0.7978846, %v4248_v12  ;;  %v4250_v28 = vadd.f32 %v4242_v62, %v6975_v55  ;;  %v4228_v13 = vmul.f32 %v6990_v14, %v6990_v14  ;;  %v6998_v32 = vadd.f32 %v4219_v16, %v4084_v9  ;;  %v4221_v35 = vpop.f32.mrb[35].mxu1 }
 0xdd4   : > { %v4257_v51 = vmul.f32 0.7978846, %v4249_v18  ;;  %v4251_v30 = vadd.f32 %v4243_v21, %v6979_v20  ;;  %v4229_v37 = vmul.f32 %v6993_v25, %v6993_v25  ;;  %v7003_v39 = vadd.f32 %v4221_v35, %v4088_v23 }
 0xdd5   : > { %5637 = vtanh.f32 %v4256_v26  ;;  %v4258_v40 = vmul.f32 0.7978846, %v4250_v28  ;;  %v4236_v41 = vmul.f32 %v4228_v13, %v6990_v14  ;;  %v4230_v45 = vmul.f32 %v6998_v32, %v6998_v32 }
 0xdd6   : > { %5639 = vtanh.f32 %v4257_v51  ;;  %v4259_v48 = vmul.f32 0.7978846, %v4251_v30  ;;  %v4237_v43 = vmul.f32 %v4229_v37, %v6993_v25  ;;  %v4231_v53 = vmul.f32 %v7003_v39, %v7003_v39 }
 0xdd7   : > { %5641 = vtanh.f32 %v4258_v40  ;;  %v4244_v54 = vmul.f32 0.044715, %v4236_v41  ;;  %v4238_v56 = vmul.f32 %v4230_v45, %v6998_v32  ;;  %v4963_v41 = vld [vmem:[%s759_s7] ss:$0 sm:$0xff] }
 0xdd8   : > { %5643 = vtanh.f32 %v4259_v48  ;;  %v4245_v52 = vmul.f32 0.044715, %v4237_v43  ;;  %v4239_v57 = vmul.f32 %v4231_v53, %v7003_v39 }
 0xdd9   : > { %v4252_v58 = vadd.f32 %v4244_v54, %v6990_v14  ;;  %v4246_v59 = vmul.f32 0.044715, %v4238_v56 }
 0xdda   : > { %v4253_v60 = vadd.f32 %v4245_v52, %v6993_v25  ;;  %v4247_v63 = vmul.f32 0.044715, %v4239_v57 }
 0xddb   : > { %v4260_v0 = vmul.f32 0.7978846, %v4252_v58  ;;  %v4254_v1 = vadd.f32 %v4246_v59, %v6998_v32 }
 0xddc   : > { %v4261_v2 = vmul.f32 0.7978846, %v4253_v60  ;;  %v4255_v3 = vadd.f32 %v4247_v63, %v7003_v39 }
 0xddd   : > { %5645 = vtanh.f32 %v4260_v0  ;;  %v4262_v4 = vmul.f32 0.7978846, %v4254_v1 }
 0xdde   : > { %5647 = vtanh.f32 %v4261_v2  ;;  %v4263_v5 = vmul.f32 0.7978846, %v4255_v3 }
 0xddf   : > { %v5638_v6 = vpop.eup %5637  ;;  %5649 = vtanh.f32 %v4262_v4 }
 0xde0   : > { %v5640_v7 = vpop.eup %5639  ;;  %v4272_v9 = vadd.f32 1.0, %v5638_v6  ;;  %5651 = vtanh.f32 %v4263_v5 }
 0xde1   : > { %v5642_v23 = vpop.eup %5641  ;;  %v4273_v29 = vadd.f32 1.0, %v5640_v7 }
 0xde2   : > { %v5644_v47 = vpop.eup %5643  ;;  %v4280_v36 = vmul.f32 0.5, %v4272_v9  ;;  %v4274_v33 = vadd.f32 1.0, %v5642_v23 }
 0xde3   : > { %v4275_v8 = vadd.f32 1.0, %v5644_v47  ;;  %v4281_v38 = vmul.f32 0.5, %v4273_v29 }
 0xde4   : > { %v4282_v19 = vmul.f32 0.5, %v4274_v33  ;;  %v4288_v17 = vmul.f32 %v4280_v36, %v6969_v27 }
 0xde5   : > { %v4283_v22 = vmul.f32 0.5, %v4275_v8  ;;  %v4289_v46 = vmul.f32 %v4281_v38, %v6971_v49 }
 0xde6   : > { %v4290_v42 = vmul.f32 %v4282_v19, %v6975_v55 }
 0xde7   : > { %v5646_v44 = vpop.eup %5645  ;;  %v4291_v61 = vmul.f32 %v4283_v22, %v6979_v20 }
 0xde8   : > { %v5648_v10 = vpop.eup %5647  ;;  %v4276_v11 = vadd.f32 1.0, %v5646_v44  ;;  %v4296_v12 = vpack.c.bf16 %v4290_v42, %v4288_v17 }
 0xde9   : > { %v5650_v62 = vpop.eup %5649  ;;  %v4297_v15 = vpack.c.bf16 %v4291_v61, %v4289_v46  ;;  %v4277_v18 = vadd.f32 1.0, %v5648_v10 }
 0xdea   : > { %v5652_v21 = vpop.eup %5651  ;;  %v4284_v16 = vmul.f32 0.5, %v4276_v11  ;;  %v4278_v26 = vadd.f32 1.0, %v5650_v62 }
 0xdeb   : > { %4467 = vmatprep.mubr.bf16.mxu0 %v4297_v15  ;;  %v4279_v28 = vadd.f32 1.0, %v5652_v21  ;;  %v4285_v27 = vmul.f32 0.5, %v4277_v18  ;;  %v4980_v18 = vld [vmem:[%s767_s29] ss:$0 sm:$0xff] }
 0xdec   : > { %v4286_v13 = vmul.f32 0.5, %v4278_v26  ;;  %4468 = vmatmul.mubr.bf16.vlgmr.msra.gmra.mrb[32].mxu0 %v4296_v12  ;;  %v4292_v49 = vmul.f32 %v4284_v16, %v6990_v14  ;;  %v4981_v26 = vld [vmem:[%s775_s1] ss:$0 sm:$0xff] }
 0xded   : > { %v4287_v55 = vmul.f32 0.5, %v4279_v28  ;;  %v4293_v35 = vmul.f32 %v4285_v27, %v6993_v25 }
 0xdee   : > { %v4294_v20 = vmul.f32 %v4286_v13, %v6998_v32 }
 0xdef   : > { %v4295_v51 = vmul.f32 %v4287_v55, %v7003_v39 }
 0xdf0   : > { %v4298_v30 = vpack.c.bf16 %v4294_v20, %v4292_v49 }
 0xdf1   : > { %v4299_v37 = vpack.c.bf16 %v4295_v51, %v4293_v35 }
 0xdf3   : > { %4475 = vmatprep.mubr.bf16.mxu1 %v4299_v37 }
 0xdf4   : > { %4476 = vmatmul.mubr.bf16.vlgmr.msra.gmra.mrb[36].mxu1 %v4298_v30 }
 0xebf   : > { %v5089_v40 = vpop.f32.mrb[32].mxu0 }
 0xec0   : > { %v5090_v45 = vpop.f32.mrb[33].mxu0 }
 0xec1   : > { %v5091_v48 = vadd.f32 %v5090_v45, %v5089_v40  ;;  %v5092_v43 = vpop.f32.mrb[34].mxu0 }
 0xec2   : > { %v5093_v53 = vpop.f32.mrb[35].mxu0 }
 0xec3   : > { %v4470_v54 = vadd.f32 %v5091_v48, %v4963_v41  ;;  %v5094_v56 = vadd.f32 %v5093_v53, %v5092_v43 }
 0xec5   : > { %v4473_v14 = vadd.f32 %v5094_v56, %v4963_v41  ;;  %v4484_v32 = vadd.f32 %v4470_v54, %v6935_v34 }
 0xec7   : > { %v5095_v52 = vpop.f32.mrb[36].mxu1  ;;  %4490 = vadd.xlane.f32.xlu0 %v4484_v32  ;;  %v4485_v25 = vadd.f32 %v4473_v14, %v6937_v24 }
 0xec8   : > { %v5096_v39 = vpop.f32.mrb[37].mxu1 }
 0xec9   : > { %v5097_v57 = vadd.f32 %v5096_v39, %v5095_v52  ;;  %v5098_v58 = vpop.f32.mrb[38].mxu1  ;;  %4492 = vadd.xlane.f32.xlu1 %v4485_v25 }
 0xeca   : > { %v5099_v59 = vpop.f32.mrb[39].mxu1 }
 0xecb   : > { %v4478_v60 = vadd.f32 %v5097_v57, %v4963_v41  ;;  %v5100_v63 = vadd.f32 %v5099_v59, %v5098_v58 }
 0xecd   : > { %v4481_v0 = vadd.f32 %v5100_v63, %v4963_v41  ;;  %v4486_v1 = vadd.f32 %v4478_v60, %v6944_v50 }
 0xecf   : > { %4494 = vadd.xlane.f32.xlu0 %v4486_v1  ;;  %v4487_v2 = vadd.f32 %v4481_v0, %v6942_v31 }
 0xed1   : > { %4496 = vadd.xlane.f32.xlu1 %v4487_v2 }
 0xf54   : > { %v4491_v3 = vpop.xlane.xlu0 %4490 }
 0xf55   : > { %v4498_v34 = vmul.f32 0.0078125, %v4491_v3 }
 0xf56   : > { %v4493_v4 = vpop.xlane.xlu1 %4492 }
 0xf57   : > { %v4502_v5 = vsub.f32 %v4484_v32, %v4498_v34  ;;  %v4499_v6 = vmul.f32 0.0078125, %v4493_v4 }
 0xf59   : > { %v4503_v24 = vsub.f32 %v4485_v25, %v4499_v6  ;;  %v4506_v7 = vmul.f32 %v4502_v5, %v4502_v5 }
 0xf5b   : > { %4510 = vadd.xlane.f32.xlu0 %v4506_v7  ;;  %v4507_v9 = vmul.f32 %v4503_v24, %v4503_v24 }
 0xf5c   : > { %v4495_v23 = vpop.xlane.xlu0 %4494 }
 0xf5d   : > { %v4500_v29 = vmul.f32 0.0078125, %v4495_v23  ;;  %4512 = vadd.xlane.f32.xlu1 %v4507_v9 }
 0xf5e   : > { %v4497_v47 = vpop.xlane.xlu1 %4496 }
 0xf5f   : > { %v4504_v36 = vsub.f32 %v4486_v1, %v4500_v29  ;;  %v4501_v33 = vmul.f32 0.0078125, %v4497_v47 }
 0xf61   : > { %v4505_v50 = vsub.f32 %v4487_v2, %v4501_v33  ;;  %v4508_v8 = vmul.f32 %v4504_v36, %v4504_v36 }
 0xf63   : > { %4514 = vadd.xlane.f32.xlu0 %v4508_v8  ;;  %v4509_v31 = vmul.f32 %v4505_v50, %v4505_v50 }
 0xf65   : > { %4516 = vadd.xlane.f32.xlu1 %v4509_v31 }
 0xfe8   : > { %v4511_v38 = vpop.xlane.xlu0 %4510 }
 0xfe9   : > { %v4518_v19 = vmul.f32 0.0078125, %v4511_v38 }
 0xfea   : > { %v4513_v22 = vpop.xlane.xlu1 %4512 }
 0xfeb   : > { %v4522_v17 = vadd.f32 1e-12, %v4518_v19  ;;  %v4519_v42 = vmul.f32 0.0078125, %v4513_v22 }
 0xfed   : > { %5653 = vrsqrt.f32 %v4522_v17  ;;  %v4523_v44 = vadd.f32 1e-12, %v4519_v42 }
 0xfef   : > { %5655 = vrsqrt.f32 %v4523_v44 }
 0xff0   : > { %v4515_v46 = vpop.xlane.xlu0 %4514 }
 0xff1   : > { %v4520_v61 = vmul.f32 0.0078125, %v4515_v46 }
 0xff2   : > { %v4517_v10 = vpop.xlane.xlu1 %4516 }
 0xff3   : > { %v4524_v11 = vadd.f32 1e-12, %v4520_v61  ;;  %v4521_v12 = vmul.f32 0.0078125, %v4517_v10 }
 0xff5   : > { %5657 = vrsqrt.f32 %v4524_v11  ;;  %v4525_v62 = vadd.f32 1e-12, %v4521_v12 }
 0xff7   : > { %v5654_v15 = vpop.eup %5653  ;;  %5659 = vrsqrt.f32 %v4525_v62 }
 0xff8   : > { %v4530_v21 = vmul.f32 %v5654_v15, %v4502_v5 }
 0xff9   : > { %v5656_v16 = vpop.eup %5655 }
 0xffa   : > { %v4540_v28 = vmul.f32 %v4980_v18, %v4530_v21  ;;  %v4531_v27 = vmul.f32 %v5656_v16, %v4503_v24 }
 0xffc   : > { %v4550_v13 = vadd.f32 %v4981_v26, %v4540_v28  ;;  %v4541_v55 = vmul.f32 %v4980_v18, %v4531_v27 }
 0xffe   : > { %4554 = vst [vmem:[#allocation2] sm:$0xff] %v4550_v13  ;;  %v4551_v49 = vadd.f32 %v4981_v26, %v4541_v55  ;;  %4562 = vst [vmem:[%s6557_s12] sm:$0xff] (!%p4982_p10), %v4550_v13 }
 0xfff   : > { %v5658_v20 = vpop.eup %5657 }
0x1000   : > { %4555 = vst [vmem:[#allocation2 + $0x8] sm:$0xff] %v4551_v49  ;;  %v4532_v35 = vmul.f32 %v5658_v20, %v4504_v36  ;;  %4563 = vst [vmem:[%s6557_s12 + $0x8] sm:$0xff] (!%p4982_p10), %v4551_v49 }
0x1001   : > { %v5660_v51 = vpop.eup %5659 }
0x1002   : > { %v4542_v30 = vmul.f32 %v4980_v18, %v4532_v35  ;;  %v4533_v37 = vmul.f32 %v5660_v51, %v4505_v50  ;;  %4561 = sbr.rel (%p4982_p10) target bundleno = 4105 (0x1009), region = 132 }
0x1004   : > { %v4552_v40 = vadd.f32 %v4981_v26, %v4542_v30  ;;  %v4543_v41 = vmul.f32 %v4980_v18, %v4533_v37 }
0x1006   : > { %4556 = vst [vmem:[#allocation2 + $0x10] sm:$0xff] %v4552_v40  ;;  %v4553_v45 = vadd.f32 %v4981_v26, %v4543_v41  ;;  %4564 = vst [vmem:[%s6557_s12 + $0x10] sm:$0xff] (!%p4982_p10), %v4552_v40 }
0x1008   : > { %4557 = vst [vmem:[#allocation2 + $0x18] sm:$0xff] %v4553_v45  ;;  %4565 = vst [vmem:[%s6557_s12 + $0x18] sm:$0xff] (!%p4982_p10), %v4553_v45 }
0x1009 PF: > { %s28_s28 = sadd.s32 1, %s6035_s28   ;;  %s7169_s14 = sld [smem:[#allocation25_spill]] }
0x100a   : > { %p25_p2 = scmp.ge.s32.totalorder %s28_s28, 6   ;;  %s7170_s24 = sld [smem:[#allocation20_spill]] }
0x100b   : > { %s7171_s25 = sld [smem:[#allocation21_spill]]  ;;  %s7172_s26 = sld [smem:[#allocation23_spill]] }
0x100c   : > { %s7173_s27 = sld [smem:[#allocation24_spill]]  ;;  %s7174_s21 = smov %s6011_s22 }
0x100d   : > { %s7175_s22 = smov %s6015_s23  ;;  %27 = sbr.rel (!%p25_p2) target bundleno = 23 (0x17), region = 234 }
0x100f   : > { %s7176_s23 = smov %s7169_s14 }
0x1014   :  { %4587 = vsyncpa [#allocation4], 1 }
0x1015   :  { %4589 = vsyncpa [#allocation4 + $0x1], 1 }
0x1016   :  { %4590 = vsyncpa [#allocation6], 1 }

</bundles_post_ra>
